<compile_context>
chip_gen: v7x
topology: tpu7x:2x2x1
jax: 0.10.0
libtpu: 0.0.40
codegen_flags: <defaults>
</compile_context>

<pallas_src>
import math

import jax
import jax.numpy as jnp
from jax.experimental import pallas as pl
from jax.experimental.pallas import tpu as pltpu

# ---- model / problem sizes (small, but consistent with the module) ----------
B = 2            # batch
S = 8            # seq_len == opt.max_seq_len
D = 768          # opt.bert_dim (hard-coded as 768 inside MultiheadAttention)
H = 12           # n_heads (hard-coded)
DH = D // H      # 64
P = 3            # opt.polarities_dim
P_PAD = 8        # classifier padded to 8 lanes (sliced back to P on host)
VOCAB = 30
LEAKY_SLOPE = 0.01        # nn.LeakyReLU default
BS = B * S                # folded batch*seq rows (16)
BS2 = 2 * BS              # two GCN branches stacked (32)
NEG = -1e9
INV_SCALE = 1.0 / math.sqrt(float(DH))


# ----------------------------- Pallas kernel ---------------------------------
def intergcn_kernel(text_ref, asp_ref, adj2_ref, posw2_ref, msk_ref, negm_ref,
                    wqkv_ref, bqkv_ref, fca_w_ref, fca_b_ref,
                    gc1w_ref, gc1b_ref, gc2w_ref, gc2b_ref,
                    fcw_ref, fcb_ref, out_ref, xacc_ref):
    f32 = jnp.float32
    bf16 = jnp.bfloat16
    h = pl.program_id(0)
    last = pl.num_programs(0) - 1

    @pl.when(h == 0)
    def _init():
        xacc_ref[...] = jnp.zeros_like(xacc_ref)

    # ---- per-head self-attention over aspects_out (head h of 12) -------------
    # TODO(synk): dropout inside MultiheadAttention is identity (inference).
    # (BS, D) bf16 @ (D, 3*DH) bf16 -> (BS, 3*DH) f32
    qkv = jnp.dot(asp_ref[...], wqkv_ref[0],
                  preferred_element_type=f32) + bqkv_ref[0]
    q = qkv[:, 0:DH]
    k = qkv[:, DH:2 * DH]
    v = qkv[:, 2 * DH:3 * DH]

    sc = jnp.einsum('se,te->st', q.astype(bf16), k.astype(bf16),
                    preferred_element_type=f32) * INV_SCALE + negm_ref[...]
    sc = sc - jnp.max(sc, axis=-1, keepdims=True)
    e = jnp.exp(sc)
    att = e * pl.reciprocal(jnp.sum(e, axis=-1, keepdims=True), approx=True)
    ctx = jnp.dot(att.astype(bf16), v.astype(bf16),
                  preferred_element_type=f32)                 # (BS, DH)

    # head-h row-block of fc_a, accumulated over the grid
    # (sum over heads == concat(heads) @ W_fca)
    xacc_ref[...] += jnp.dot(ctx.astype(bf16), fca_w_ref[0],
                             preferred_element_type=f32)      # (BS, D)

    # ---- tail: GCN branches + gating + pooling + classifier (last head) ------
    @pl.when(h == last)
    def _tail():
        text = text_ref[...]            # (BS, D)   text_out (BERT stub output)
        adj2 = adj2_ref[...]            # (BS2, BS2) block-diag adjacency x2
        posw2 = posw2_ref[...]          # (BS2, 1)  position weights x2
        msk = msk_ref[...]              # (BS, 1)   aspect mask

        # GraphConvolution: out = adj @ hidden / (sum(adj, -1) + 1) + b.
        # Fold 1/denom into adj once (EUP reciprocal, free slot).
        denom = jnp.sum(adj2, axis=-1, keepdims=True) + 1.0
        adj_n = (adj2 * pl.reciprocal(denom, approx=True)).astype(bf16)

        x_inter0 = xacc_ref[...] + fca_b_ref[...]             # (BS, D)

        def gcn(x2, w_ref, b_ref):
            hidden = jnp.dot((posw2 * x2).astype(bf16), w_ref[...],
                             preferred_element_type=f32)      # (BS2, D)
            out = jnp.dot(adj_n, hidden.astype(bf16),
                          preferred_element_type=f32) + b_ref[...]
            return jnp.maximum(out, 0.0)                      # F.relu

        # rows [0:BS) syntactic branch, rows [BS:2BS) inter-aspect branch
        x0 = jnp.concatenate([text, x_inter0], axis=0)        # (BS2, D)
        z1 = gcn(x0, gc1w_ref, gc1b_ref)
        z2 = gcn(z1, gc2w_ref, gc2b_ref)
        x_s = z2[0:BS]
        x_inter = z2[BS:BS2]

        # gated fusion (LeakyReLU gate, as written in the reference) + mask
        x_t = x_inter + x_s
        x_t = jnp.where(x_t >= 0.0, x_t, LEAKY_SLOPE * x_t)
        x = x_inter * x_t + x_s * (1.0 - x_t)
        x = msk * x                                           # (BS, D)

        # per-batch attention pooling + classifier
        pooled_rows = []
        for b in range(B):
            xb = x[b * S:(b + 1) * S, :]                      # (S, D)
            tb = text[b * S:(b + 1) * S, :]                   # (S, D)
            am = jnp.einsum('sd,td->st', xb.astype(bf16), tb.astype(bf16),
                            preferred_element_type=f32)       # (S, S)
            a_sum = jnp.sum(am, axis=0, keepdims=True)        # (1, S)
            a_sum = a_sum - jnp.max(a_sum, axis=-1, keepdims=True)
            ee = jnp.exp(a_sum)
            alpha = ee * pl.reciprocal(jnp.sum(ee, axis=-1, keepdims=True),
                                       approx=True)           # (1, S)
            pooled_rows.append(jnp.dot(alpha.astype(bf16), tb.astype(bf16),
                                       preferred_element_type=f32))
        pooled = jnp.concatenate(pooled_rows, axis=0)         # (B, D)

        out_ref[...] = jnp.dot(pooled.astype(bf16), fcw_ref[...],
                               preferred_element_type=f32) + fcb_ref[...]


# --------------------------- specs / pallas_call ------------------------------
def _invariant_spec(shape):
    n = len(shape)
    return pl.BlockSpec(shape, lambda h, _n=n: (0,) * _n)


def _head_spec(shape):
    n = len(shape)
    return pl.BlockSpec((1,) + tuple(shape[1:]),
                        lambda h, _n=n: (h,) + (0,) * (_n - 1))


def intergcn_pallas(text_flat, asp_flat_bf, adj2, posw2, msk_flat, negm, kp):
    args = (text_flat, asp_flat_bf, adj2, posw2, msk_flat, negm,
            kp["wqkv_h"], kp["bqkv_h"], kp["fca_w_h"], kp["fca_b"],
            kp["gc1_w"], kp["gc1_b"], kp["gc2_w"], kp["gc2_b"],
            kp["fc_w_pad"], kp["fc_b_pad"])
    head_indexed = {6, 7, 8}          # wqkv_h, bqkv_h, fca_w_h
    in_specs = [
        _head_spec(a.shape) if i in head_indexed else _invariant_spec(a.shape)
        for i, a in enumerate(args)]

    out = pl.pallas_call(
        intergcn_kernel,
        out_shape=jax.ShapeDtypeStruct((B, P_PAD), jnp.float32),
        grid_spec=pltpu.PrefetchScalarGridSpec(
            num_scalar_prefetch=0,
            grid=(H,),                           # pipeline over heads
            in_specs=in_specs,
            out_specs=_invariant_spec((B, P_PAD)),
            scratch_shapes=[pltpu.VMEM((BS, D), jnp.float32)],   # x_inter0 acc
        ),
        compiler_params=pltpu.CompilerParams(
            dimension_semantics=("arbitrary",),  # accumulator + final tail
            vmem_limit_bytes=32 * 1024 * 1024,
        ),
    )(*args)
    return out[:, :P]


# --------------------------- weight packing (host) ----------------------------
def pack_kernel_params(params):
    bf16 = jnp.bfloat16
    f32 = jnp.float32

    def to_heads(w):                    # (D, D) -> (H, D, DH), head-major
        return jnp.transpose(w.reshape(D, H, DH), (1, 0, 2))

    wqkv_h = jnp.concatenate(
        [to_heads(params["wq"]), to_heads(params["wk"]), to_heads(params["wv"])],
        axis=-1).astype(bf16)                                  # (H, D, 3*DH)
    bqkv_h = jnp.concatenate(
        [params["bq"].reshape(H, 1, DH), params["bk"].reshape(H, 1, DH),
         params["bv"].reshape(H, 1, DH)], axis=-1).astype(f32)  # (H, 1, 3*DH)

    fc_w_pad = jnp.zeros((D, P_PAD), f32).at[:, :P].set(params["fc_w"])
    fc_b_pad = jnp.zeros((1, P_PAD), f32).at[0, :P].set(params["fc_b"])

    return {
        "wqkv_h": wqkv_h, "bqkv_h": bqkv_h,
        "fca_w_h": params["fca_w"].reshape(H, DH, D).astype(bf16),
        "fca_b": params["fca_b"].reshape(1, D).astype(f32),
        "gc1_w": params["gc1_w"].astype(bf16),
        "gc1_b": params["gc1_b"].reshape(1, D).astype(f32),
        "gc2_w": params["gc2_w"].astype(bf16),
        "gc2_b": params["gc2_b"].reshape(1, D).astype(f32),
        "fc_w_pad": fc_w_pad.astype(bf16),
        "fc_b_pad": fc_b_pad,
    }


# ------------------------------ plain-JAX glue --------------------------------
def position_weight_vec(left_len, aspect_len, text_len):
    # vectorized equivalent of INTERGCN_BERT.position_weight (per-token scalar)
    j = jnp.arange(S, dtype=jnp.float32)[None, :]
    a0 = left_len[:, None].astype(jnp.float32)
    a1 = (left_len + aspect_len - 1)[:, None].astype(jnp.float32)
    tl = text_len[:, None].astype(jnp.float32)
    ctx = (text_len - aspect_len)[:, None].astype(jnp.float32)
    w = jnp.where(
        j < a0, 1.0 - (a0 - j) / ctx,
        jnp.where(j <= a1, 0.0,
                  jnp.where(j < tl, 1.0 - (j - a1) / ctx, 0.0)))
    return w  # (B, S)


def aspect_mask_vec(left_len, aspect_len):
    # vectorized equivalent of INTERGCN_BERT.mask (per-token 0/1)
    j = jnp.arange(S)[None, :]
    a0 = left_len[:, None]
    a1 = (left_len + aspect_len - 1)[:, None]
    return ((j >= a0) & (j <= a1)).astype(jnp.float32)  # (B, S)


def block_diag_adj(adj):                # (B, S, S) -> (B*S, B*S) block-diagonal
    eye = jnp.eye(B, dtype=adj.dtype)[:, None, :, None]          # (B,1,B,1)
    big = eye * adj[:, :, None, :]                               # (B,S,B,S)
    return big.reshape(BS, BS)


def init_params(key):
    ks = jax.random.split(key, 16)
    n = lambda k, shp: (0.02 * jax.random.normal(k, shp, jnp.float32))
    return {
        # BERT stub embedding table (stands in for the external encoder)
        "emb": n(ks[0], (VOCAB, D)),
        # attention projections (stored (in, out) so x @ W + b)
        "wq": n(ks[1], (D, D)), "bq": n(ks[2], (D,)),
        "wk": n(ks[3], (D, D)), "bk": n(ks[4], (D,)),
        "wv": n(ks[5], (D, D)), "bv": n(ks[6], (D,)),
        "fca_w": n(ks[7], (D, D)), "fca_b": n(ks[8], (D,)),
        # GraphConvolution weights (shape (in_features, out_features))
        "gc1_w": n(ks[9], (D, D)), "gc1_b": n(ks[10], (D,)),
        "gc2_w": n(ks[11], (D, D)), "gc2_b": n(ks[12], (D,)),
        # classifier
        "fc_w": n(ks[13], (D, P)), "fc_b": n(ks[14], (P,)),
    }


def intergcn_forward(params, inputs):
    (text_bert_indices, bert_segments_ids, aspect_indices, aspects_indices,
     left_indices, text_indices, adj) = inputs

    text_len = jnp.sum(text_indices != 0, axis=-1)
    aspect_len = jnp.sum(aspect_indices != 0, axis=-1)
    left_len = jnp.sum(left_indices != 0, axis=-1)

    # TODO(synk): external pretrained BERT encoder is out of scope; replaced by
    #             a deterministic embedding lookup producing (B, S, 768).
    text_out = params["emb"][text_bert_indices].astype(jnp.float32)
    aspects_out = params["emb"][aspects_indices].astype(jnp.float32)
    del bert_segments_ids  # consumed only by the (stubbed) BERT encoder

    posw = position_weight_vec(left_len, aspect_len, text_len)   # (B, S)
    msk = aspect_mask_vec(left_len, aspect_len)                  # (B, S)

    # fold batch into the row (M) dimension
    text_flat = text_out.reshape(BS, D)
    asp_flat_bf = aspects_out.reshape(BS, D).astype(jnp.bfloat16)
    posw_flat = posw.reshape(BS, 1)
    msk_flat = msk.reshape(BS, 1)

    adj_bd = block_diag_adj(adj.astype(jnp.float32))             # (BS, BS)
    zeros = jnp.zeros_like(adj_bd)
    adj2 = jnp.concatenate(
        [jnp.concatenate([adj_bd, zeros], axis=1),
         jnp.concatenate([zeros, adj_bd], axis=1)], axis=0)      # (BS2, BS2)
    posw2 = jnp.concatenate([posw_flat, posw_flat], axis=0)      # (BS2, 1)

    # additive mask killing cross-batch attention after batch folding
    bid = jnp.arange(BS) // S
    negm = jnp.where(bid[:, None] == bid[None, :], 0.0, NEG).astype(jnp.float32)

    kparams = pack_kernel_params(params)
    return intergcn_pallas(text_flat, asp_flat_bf, adj2, posw2, msk_flat, negm,
                           kparams)


# ---------------------------------- main --------------------------------------
if __name__ == "__main__":
    key = jax.random.PRNGKey(0)
    k_param, k_text, k_asp, k_asps, k_adj = jax.random.split(key, 5)

    params = init_params(k_param)

    # deterministic token-id inputs with varying valid lengths
    text_lens = jnp.array([7, 6], dtype=jnp.int32)
    aspect_lens = jnp.array([2, 1], dtype=jnp.int32)
    left_lens = jnp.array([2, 3], dtype=jnp.int32)

    def make_ids(k, lens):
        ids = jax.random.randint(k, (B, S), 1, VOCAB, dtype=jnp.int32)
        valid = (jnp.arange(S)[None, :] < lens[:, None]).astype(jnp.int32)
        return ids * valid

    text_indices = make_ids(k_text, text_lens)
    text_bert_indices = text_indices
    bert_segments_ids = jnp.zeros((B, S), dtype=jnp.int32)
    aspect_indices = make_ids(k_asp, aspect_lens)
    aspects_indices = make_ids(k_asps, text_lens)
    left_indices = make_ids(k_text, left_lens)

    adj = (jax.random.uniform(k_adj, (B, S, S)) > 0.5).astype(jnp.float32)
    adj = jnp.maximum(adj, jnp.eye(S)[None, :, :])  # self-loops

    inputs = (text_bert_indices, bert_segments_ids, aspect_indices,
              aspects_indices, left_indices, text_indices, adj)

    out = intergcn_forward(params, inputs)
    out = jax.block_until_ready(out)
    assert out.shape == (B, P) and out.dtype == jnp.float32
    assert bool(jnp.all(jnp.isfinite(out)))
    print("KERNEL_OK")
</pallas_src>

<mosaic_0001>
module attributes {stable_mosaic.version = 11 : i64} {
  func.func @intergcn_kernel(%arg0: i32, %arg1: memref<16x768xf32, #tpu.memory_space<vmem>>, %arg2: memref<16x768xbf16, #tpu.memory_space<vmem>>, %arg3: memref<32x32xf32, #tpu.memory_space<vmem>>, %arg4: memref<32x1xf32, #tpu.memory_space<vmem>>, %arg5: memref<16x1xf32, #tpu.memory_space<vmem>>, %arg6: memref<16x16xf32, #tpu.memory_space<vmem>>, %arg7: memref<1x768x192xbf16, #tpu.memory_space<vmem>>, %arg8: memref<1x1x192xf32, #tpu.memory_space<vmem>>, %arg9: memref<1x64x768xbf16, #tpu.memory_space<vmem>>, %arg10: memref<1x768xf32, #tpu.memory_space<vmem>>, %arg11: memref<768x768xbf16, #tpu.memory_space<vmem>>, %arg12: memref<1x768xf32, #tpu.memory_space<vmem>>, %arg13: memref<768x768xbf16, #tpu.memory_space<vmem>>, %arg14: memref<1x768xf32, #tpu.memory_space<vmem>>, %arg15: memref<768x8xbf16, #tpu.memory_space<vmem>>, %arg16: memref<1x8xf32, #tpu.memory_space<vmem>>, %arg17: memref<2x8xf32, #tpu.memory_space<vmem>>, %arg18: memref<16x768xf32, #tpu.memory_space<vmem>>) attributes {dimension_semantics = [#tpu.dimension_semantics<arbitrary>], iteration_bounds = array<i64: 12>, scalar_prefetch = 0 : i64, scratch_operands = 1 : i64, tpu.core_type = #tpu.core_type<tc>, window_params = [{pipeline_mode = #tpu.pipeline_mode<synchronous>, transform_indices = @transform_0, window_bounds = array<i64: 16, 768>}, {pipeline_mode = #tpu.pipeline_mode<synchronous>, transform_indices = @transform_1, window_bounds = array<i64: 16, 768>}, {pipeline_mode = #tpu.pipeline_mode<synchronous>, transform_indices = @transform_2, window_bounds = array<i64: 32, 32>}, {pipeline_mode = #tpu.pipeline_mode<synchronous>, transform_indices = @transform_3, window_bounds = array<i64: 32, 1>}, {pipeline_mode = #tpu.pipeline_mode<synchronous>, transform_indices = @transform_4, window_bounds = array<i64: 16, 1>}, {pipeline_mode = #tpu.pipeline_mode<synchronous>, transform_indices = @transform_5, window_bounds = array<i64: 16, 16>}, {transform_indices = @transform_6, window_bounds = array<i64: 1, 768, 192>}, {transform_indices = @transform_7, window_bounds = array<i64: 1, 1, 192>}, {transform_indices = @transform_8, window_bounds = array<i64: 1, 64, 768>}, {pipeline_mode = #tpu.pipeline_mode<synchronous>, transform_indices = @transform_9, window_bounds = array<i64: 1, 768>}, {pipeline_mode = #tpu.pipeline_mode<synchronous>, transform_indices = @transform_10, window_bounds = array<i64: 768, 768>}, {pipeline_mode = #tpu.pipeline_mode<synchronous>, transform_indices = @transform_11, window_bounds = array<i64: 1, 768>}, {pipeline_mode = #tpu.pipeline_mode<synchronous>, transform_indices = @transform_12, window_bounds = array<i64: 768, 768>}, {pipeline_mode = #tpu.pipeline_mode<synchronous>, transform_indices = @transform_13, window_bounds = array<i64: 1, 768>}, {pipeline_mode = #tpu.pipeline_mode<synchronous>, transform_indices = @transform_14, window_bounds = array<i64: 768, 8>}, {pipeline_mode = #tpu.pipeline_mode<synchronous>, transform_indices = @transform_15, window_bounds = array<i64: 1, 8>}, {pipeline_mode = #tpu.pipeline_mode<synchronous>, transform_indices = @transform_16, window_bounds = array<i64: 2, 8>}]} {
    %c0_i32 = arith.constant 0 : i32
    %0 = arith.cmpi eq, %arg0, %c0_i32 : i32
    %1 = arith.extui %0 : i1 to i32
    %c0_i32_0 = arith.constant 0 : i32
    %2 = arith.cmpi ne, %1, %c0_i32_0 : i32
    scf.if %2 {
      %cst_24 = arith.constant 0.000000e+00 : f32
      %44 = vector.broadcast %cst_24 : f32 to vector<16x768xf32>
      %c0_25 = arith.constant 0 : index
      %c0_26 = arith.constant 0 : index
      %45 = vector.load %arg18[%c0_25, %c0_26] : memref<16x768xf32, #tpu.memory_space<vmem>>, vector<16x768xf32>
      tpu.vector_store %arg18[%c0_25, %c0_26], %44 {strides = array<i32>} : memref<16x768xf32, #tpu.memory_space<vmem>>, vector<16x768xf32>,
    } else {
    }
    %c0 = arith.constant 0 : index
    %c0_1 = arith.constant 0 : index
    %3 = vector.load %arg2[%c0, %c0_1] : memref<16x768xbf16, #tpu.memory_space<vmem>>, vector<16x768xbf16>
    %c0_2 = arith.constant 0 : index
    %c0_3 = arith.constant 0 : index
    %c0_4 = arith.constant 0 : index
    %4 = vector.load %arg7[%c0_2, %c0_3, %c0_4] : memref<1x768x192xbf16, #tpu.memory_space<vmem>>, vector<1x768x192xbf16>
    %5 = vector.shape_cast %4 : vector<1x768x192xbf16> to vector<768x192xbf16>
    %cst = arith.constant dense<0.000000e+00> : vector<16x192xf32>
    %6 = tpu.matmul %3, %5, %cst {dimension_numbers = #tpu.dot_dimension_numbers<[1], [0], [0], [1], [0, 0, 1, 1], [], []>} : vector<16x768xbf16>, vector<768x192xbf16>, vector<16x192xf32> -> vector<16x192xf32>
    %c0_5 = arith.constant 0 : index
    %c0_6 = arith.constant 0 : index
    %c0_7 = arith.constant 0 : index
    %7 = vector.load %arg8[%c0_5, %c0_6, %c0_7] : memref<1x1x192xf32, #tpu.memory_space<vmem>>, vector<1x1x192xf32>
    %8 = vector.shape_cast %7 : vector<1x1x192xf32> to vector<1x192xf32>
    %9 = vector.broadcast %8 : vector<1x192xf32> to vector<16x192xf32>
    %10 = arith.addf %6, %9 : vector<16x192xf32>
    %11 = vector.extract_strided_slice %10 {offsets = [0, 0], sizes = [16, 64], strides = [1, 1]} : vector<16x192xf32> to vector<16x64xf32>
    %12 = vector.extract_strided_slice %10 {offsets = [0, 64], sizes = [16, 64], strides = [1, 1]} : vector<16x192xf32> to vector<16x64xf32>
    %13 = vector.extract_strided_slice %10 {offsets = [0, 128], sizes = [16, 64], strides = [1, 1]} : vector<16x192xf32> to vector<16x64xf32>
    %14 = arith.truncf %11 : vector<16x64xf32> to vector<16x64xbf16>
    %15 = arith.truncf %12 : vector<16x64xf32> to vector<16x64xbf16>
    "tpu.trace_start"() <{level = 10 : i32, message = "se,te->st"}> : () -> ()
    %cst_8 = arith.constant dense<0.000000e+00> : vector<16x16xf32>
    %16 = tpu.matmul %14, %15, %cst_8 {dimension_numbers = #tpu.dot_dimension_numbers<[1], [1], [0], [0], [0, 0, 1, 0], [], []>} : vector<16x64xbf16>, vector<16x64xbf16>, vector<16x16xf32> -> vector<16x16xf32>
    "tpu.trace_stop"() : () -> ()
    %cst_9 = arith.constant 1.250000e-01 : f32
    %17 = vector.broadcast %cst_9 : f32 to vector<16x16xf32>
    %18 = arith.mulf %16, %17 : vector<16x16xf32>
    %c0_10 = arith.constant 0 : index
    %c0_11 = arith.constant 0 : index
    %19 = vector.load %arg6[%c0_10, %c0_11] : memref<16x16xf32, #tpu.memory_space<vmem>>, vector<16x16xf32>
    %20 = arith.addf %18, %19 : vector<16x16xf32>
    %cst_12 = arith.constant dense<0xFF800000> : vector<16xf32>
    %21 = vector.multi_reduction <maximumf>, %20, %cst_12 [1] : vector<16x16xf32> to vector<16xf32>
    %22 = vector.shape_cast %21 : vector<16xf32> to vector<16x1xf32>
    %23 = vector.broadcast %22 : vector<16x1xf32> to vector<16x16xf32>
    %24 = arith.subf %20, %23 : vector<16x16xf32>
    %25 = math.exp %24 : vector<16x16xf32>
    %cst_13 = arith.constant dense<0.000000e+00> : vector<16xf32>
    %26 = vector.multi_reduction <add>, %25, %cst_13 [1] : vector<16x16xf32> to vector<16xf32>
    %27 = vector.shape_cast %26 : vector<16xf32> to vector<16x1xf32>
    %28 = tpu.reciprocal %27 {approx = true} : vector<16x1xf32> -> vector<16x1xf32>
    %29 = vector.broadcast %28 : vector<16x1xf32> to vector<16x16xf32>
    %30 = arith.mulf %25, %29 : vector<16x16xf32>
    %31 = arith.truncf %30 : vector<16x16xf32> to vector<16x16xbf16>
    %32 = arith.truncf %13 : vector<16x64xf32> to vector<16x64xbf16>
    %cst_14 = arith.constant dense<0.000000e+00> : vector<16x64xf32>
    %33 = tpu.matmul %31, %32, %cst_14 {dimension_numbers = #tpu.dot_dimension_numbers<[1], [0], [0], [1], [0, 0, 1, 1], [], []>} : vector<16x16xbf16>, vector<16x64xbf16>, vector<16x64xf32> -> vector<16x64xf32>
    %c0_15 = arith.constant 0 : index
    %c0_16 = arith.constant 0 : index
    %34 = vector.load %arg18[%c0_15, %c0_16] : memref<16x768xf32, #tpu.memory_space<vmem>>, vector<16x768xf32>
    %35 = arith.truncf %33 : vector<16x64xf32> to vector<16x64xbf16>
    %c0_17 = arith.constant 0 : index
    %c0_18 = arith.constant 0 : index
    %c0_19 = arith.constant 0 : index
    %36 = vector.load %arg9[%c0_17, %c0_18, %c0_19] : memref<1x64x768xbf16, #tpu.memory_space<vmem>>, vector<1x64x768xbf16>
    %37 = vector.shape_cast %36 : vector<1x64x768xbf16> to vector<64x768xbf16>
    %cst_20 = arith.constant dense<0.000000e+00> : vector<16x768xf32>
    %38 = tpu.matmul %35, %37, %cst_20 {dimension_numbers = #tpu.dot_dimension_numbers<[1], [0], [0], [1], [0, 0, 1, 1], [], []>} : vector<16x64xbf16>, vector<64x768xbf16>, vector<16x768xf32> -> vector<16x768xf32>
    %39 = arith.addf %34, %38 : vector<16x768xf32>
    %c0_21 = arith.constant 0 : index
    %c0_22 = arith.constant 0 : index
    %40 = vector.load %arg18[%c0_21, %c0_22] : memref<16x768xf32, #tpu.memory_space<vmem>>, vector<16x768xf32>
    tpu.vector_store %arg18[%c0_21, %c0_22], %39 {strides = array<i32>} : memref<16x768xf32, #tpu.memory_space<vmem>>, vector<16x768xf32>,
    %c11_i32 = arith.constant 11 : i32
    %41 = arith.cmpi eq, %arg0, %c11_i32 : i32
    %42 = arith.extui %41 : i1 to i32
    %c0_i32_23 = arith.constant 0 : i32
    %43 = arith.cmpi ne, %42, %c0_i32_23 : i32
    scf.if %43 {
      %c0_24 = arith.constant 0 : index
      %c0_25 = arith.constant 0 : index
      %44 = vector.load %arg1[%c0_24, %c0_25] : memref<16x768xf32, #tpu.memory_space<vmem>>, vector<16x768xf32>
      %c0_26 = arith.constant 0 : index
      %c0_27 = arith.constant 0 : index
      %45 = vector.load %arg3[%c0_26, %c0_27] : memref<32x32xf32, #tpu.memory_space<vmem>>, vector<32x32xf32>
      %c0_28 = arith.constant 0 : index
      %c0_29 = arith.constant 0 : index
      %46 = vector.load %arg4[%c0_28, %c0_29] : memref<32x1xf32, #tpu.memory_space<vmem>>, vector<32x1xf32>
      %c0_30 = arith.constant 0 : index
      %c0_31 = arith.constant 0 : index
      %47 = vector.load %arg5[%c0_30, %c0_31] : memref<16x1xf32, #tpu.memory_space<vmem>>, vector<16x1xf32>
      %cst_32 = arith.constant dense<0.000000e+00> : vector<32xf32>
      %48 = vector.multi_reduction <add>, %45, %cst_32 [1] : vector<32x32xf32> to vector<32xf32>
      %49 = vector.shape_cast %48 : vector<32xf32> to vector<32x1xf32>
      %cst_33 = arith.constant 1.000000e+00 : f32
      %50 = vector.broadcast %cst_33 : f32 to vector<32x1xf32>
      %51 = arith.addf %49, %50 : vector<32x1xf32>
      %52 = tpu.reciprocal %51 {approx = true} : vector<32x1xf32> -> vector<32x1xf32>
      %53 = vector.broadcast %52 : vector<32x1xf32> to vector<32x32xf32>
      %54 = arith.mulf %45, %53 : vector<32x32xf32>
      %55 = arith.truncf %54 : vector<32x32xf32> to vector<32x32xbf16>
      %c0_34 = arith.constant 0 : index
      %c0_35 = arith.constant 0 : index
      %56 = vector.load %arg18[%c0_34, %c0_35] : memref<16x768xf32, #tpu.memory_space<vmem>>, vector<16x768xf32>
      %c0_36 = arith.constant 0 : index
      %c0_37 = arith.constant 0 : index
      %57 = vector.load %arg10[%c0_36, %c0_37] : memref<1x768xf32, #tpu.memory_space<vmem>>, vector<1x768xf32>
      %58 = vector.broadcast %57 : vector<1x768xf32> to vector<16x768xf32>
      %59 = arith.addf %56, %58 : vector<16x768xf32>
      %60 = tpu.concatenate %44, %59 in 0 : vector<16x768xf32>, vector<16x768xf32> -> vector<32x768xf32>
      %61 = vector.broadcast %46 : vector<32x1xf32> to vector<32x768xf32>
      %62 = arith.mulf %61, %60 : vector<32x768xf32>
      %63 = arith.truncf %62 : vector<32x768xf32> to vector<32x768xbf16>
      %c0_38 = arith.constant 0 : index
      %c0_39 = arith.constant 0 : index
      %64 = vector.load %arg11[%c0_38, %c0_39] : memref<768x768xbf16, #tpu.memory_space<vmem>>, vector<768x768xbf16>
      %cst_40 = arith.constant dense<0.000000e+00> : vector<32x768xf32>
      %65 = tpu.matmul %63, %64, %cst_40 {dimension_numbers = #tpu.dot_dimension_numbers<[1], [0], [0], [1], [0, 0, 1, 1], [], []>} : vector<32x768xbf16>, vector<768x768xbf16>, vector<32x768xf32> -> vector<32x768xf32>
      %66 = arith.truncf %65 : vector<32x768xf32> to vector<32x768xbf16>
      %cst_41 = arith.constant dense<0.000000e+00> : vector<32x768xf32>
      %67 = tpu.matmul %55, %66, %cst_41 {dimension_numbers = #tpu.dot_dimension_numbers<[1], [0], [0], [1], [0, 0, 1, 1], [], []>} : vector<32x32xbf16>, vector<32x768xbf16>, vector<32x768xf32> -> vector<32x768xf32>
      %c0_42 = arith.constant 0 : index
      %c0_43 = arith.constant 0 : index
      %68 = vector.load %arg12[%c0_42, %c0_43] : memref<1x768xf32, #tpu.memory_space<vmem>>, vector<1x768xf32>
      %69 = vector.broadcast %68 : vector<1x768xf32> to vector<32x768xf32>
      %70 = arith.addf %67, %69 : vector<32x768xf32>
      %cst_44 = arith.constant 0.000000e+00 : f32
      %71 = vector.broadcast %cst_44 : f32 to vector<32x768xf32>
      %72 = arith.maximumf %70, %71 : vector<32x768xf32>
      %73 = vector.broadcast %46 : vector<32x1xf32> to vector<32x768xf32>
      %74 = arith.mulf %73, %72 : vector<32x768xf32>
      %75 = arith.truncf %74 : vector<32x768xf32> to vector<32x768xbf16>
      %c0_45 = arith.constant 0 : index
      %c0_46 = arith.constant 0 : index
      %76 = vector.load %arg13[%c0_45, %c0_46] : memref<768x768xbf16, #tpu.memory_space<vmem>>, vector<768x768xbf16>
      %cst_47 = arith.constant dense<0.000000e+00> : vector<32x768xf32>
      %77 = tpu.matmul %75, %76, %cst_47 {dimension_numbers = #tpu.dot_dimension_numbers<[1], [0], [0], [1], [0, 0, 1, 1], [], []>} : vector<32x768xbf16>, vector<768x768xbf16>, vector<32x768xf32> -> vector<32x768xf32>
      %78 = arith.truncf %77 : vector<32x768xf32> to vector<32x768xbf16>
      %cst_48 = arith.constant dense<0.000000e+00> : vector<32x768xf32>
      %79 = tpu.matmul %55, %78, %cst_48 {dimension_numbers = #tpu.dot_dimension_numbers<[1], [0], [0], [1], [0, 0, 1, 1], [], []>} : vector<32x32xbf16>, vector<32x768xbf16>, vector<32x768xf32> -> vector<32x768xf32>
      %c0_49 = arith.constant 0 : index
      %c0_50 = arith.constant 0 : index
      %80 = vector.load %arg14[%c0_49, %c0_50] : memref<1x768xf32, #tpu.memory_space<vmem>>, vector<1x768xf32>
      %81 = vector.broadcast %80 : vector<1x768xf32> to vector<32x768xf32>
      %82 = arith.addf %79, %81 : vector<32x768xf32>
      %cst_51 = arith.constant 0.000000e+00 : f32
      %83 = vector.broadcast %cst_51 : f32 to vector<32x768xf32>
      %84 = arith.maximumf %82, %83 : vector<32x768xf32>
      %85 = vector.extract_strided_slice %84 {offsets = [0, 0], sizes = [16, 768], strides = [1, 1]} : vector<32x768xf32> to vector<16x768xf32>
      %86 = vector.extract_strided_slice %84 {offsets = [16, 0], sizes = [16, 768], strides = [1, 1]} : vector<32x768xf32> to vector<16x768xf32>
      %87 = arith.addf %86, %85 : vector<16x768xf32>
      %cst_52 = arith.constant 0.000000e+00 : f32
      %88 = vector.broadcast %cst_52 : f32 to vector<16x768xf32>
      %89 = arith.cmpf oge, %87, %88 : vector<16x768xf32>
      %cst_53 = arith.constant 0.00999999977 : f32
      %90 = vector.broadcast %cst_53 : f32 to vector<16x768xf32>
      %91 = arith.mulf %90, %87 : vector<16x768xf32>
      %92 = arith.select %89, %87, %91 : vector<16x768xi1>, vector<16x768xf32>
      %93 = arith.mulf %86, %92 : vector<16x768xf32>
      %cst_54 = arith.constant 1.000000e+00 : f32
      %94 = vector.broadcast %cst_54 : f32 to vector<16x768xf32>
      %95 = arith.subf %94, %92 : vector<16x768xf32>
      %96 = arith.mulf %85, %95 : vector<16x768xf32>
      %97 = arith.addf %93, %96 : vector<16x768xf32>
      %98 = vector.broadcast %47 : vector<16x1xf32> to vector<16x768xf32>
      %99 = arith.mulf %98, %97 : vector<16x768xf32>
      %100 = vector.extract_strided_slice %99 {offsets = [0, 0], sizes = [8, 768], strides = [1, 1]} : vector<16x768xf32> to vector<8x768xf32>
      %101 = vector.extract_strided_slice %44 {offsets = [0, 0], sizes = [8, 768], strides = [1, 1]} : vector<16x768xf32> to vector<8x768xf32>
      %102 = arith.truncf %100 : vector<8x768xf32> to vector<8x768xbf16>
      %103 = arith.truncf %101 : vector<8x768xf32> to vector<8x768xbf16>
      "tpu.trace_start"() <{level = 10 : i32, message = "sd,td->st"}> : () -> ()
      %cst_55 = arith.constant dense<0.000000e+00> : vector<8x8xf32>
      %104 = tpu.matmul %102, %103, %cst_55 {dimension_numbers = #tpu.dot_dimension_numbers<[1], [1], [0], [0], [0, 0, 1, 0], [], []>} : vector<8x768xbf16>, vector<8x768xbf16>, vector<8x8xf32> -> vector<8x8xf32>
      "tpu.trace_stop"() : () -> ()
      %cst_56 = arith.constant dense<0.000000e+00> : vector<8xf32>
      %105 = vector.multi_reduction <add>, %104, %cst_56 [0] : vector<8x8xf32> to vector<8xf32>
      %106 = vector.shape_cast %105 : vector<8xf32> to vector<1x8xf32>
      %cst_57 = arith.constant dense<0xFF800000> : vector<1xf32>
      %107 = vector.multi_reduction <maximumf>, %106, %cst_57 [1] : vector<1x8xf32> to vector<1xf32>
      %108 = vector.shape_cast %107 : vector<1xf32> to vector<1x1xf32>
      %109 = vector.broadcast %108 : vector<1x1xf32> to vector<1x8xf32>
      %110 = arith.subf %106, %109 : vector<1x8xf32>
      %111 = math.exp %110 : vector<1x8xf32>
      %cst_58 = arith.constant dense<0.000000e+00> : vector<1xf32>
      %112 = vector.multi_reduction <add>, %111, %cst_58 [1] : vector<1x8xf32> to vector<1xf32>
      %113 = vector.shape_cast %112 : vector<1xf32> to vector<1x1xf32>
      %114 = tpu.reciprocal %113 {approx = true} : vector<1x1xf32> -> vector<1x1xf32>
      %115 = vector.broadcast %114 : vector<1x1xf32> to vector<1x8xf32>
      %116 = arith.mulf %111, %115 : vector<1x8xf32>
      %117 = arith.truncf %116 : vector<1x8xf32> to vector<1x8xbf16>
      %118 = arith.truncf %101 : vector<8x768xf32> to vector<8x768xbf16>
      %cst_59 = arith.constant dense<0.000000e+00> : vector<1x768xf32>
      %119 = tpu.matmul %117, %118, %cst_59 {dimension_numbers = #tpu.dot_dimension_numbers<[1], [0], [0], [1], [0, 0, 1, 1], [], []>} : vector<1x8xbf16>, vector<8x768xbf16>, vector<1x768xf32> -> vector<1x768xf32>
      %120 = vector.extract_strided_slice %99 {offsets = [8, 0], sizes = [8, 768], strides = [1, 1]} : vector<16x768xf32> to vector<8x768xf32>
      %121 = vector.extract_strided_slice %44 {offsets = [8, 0], sizes = [8, 768], strides = [1, 1]} : vector<16x768xf32> to vector<8x768xf32>
      %122 = arith.truncf %120 : vector<8x768xf32> to vector<8x768xbf16>
      %123 = arith.truncf %121 : vector<8x768xf32> to vector<8x768xbf16>
      "tpu.trace_start"() <{level = 10 : i32, message = "sd,td->st"}> : () -> ()
      %cst_60 = arith.constant dense<0.000000e+00> : vector<8x8xf32>
      %124 = tpu.matmul %122, %123, %cst_60 {dimension_numbers = #tpu.dot_dimension_numbers<[1], [1], [0], [0], [0, 0, 1, 0], [], []>} : vector<8x768xbf16>, vector<8x768xbf16>, vector<8x8xf32> -> vector<8x8xf32>
      "tpu.trace_stop"() : () -> ()
      %cst_61 = arith.constant dense<0.000000e+00> : vector<8xf32>
      %125 = vector.multi_reduction <add>, %124, %cst_61 [0] : vector<8x8xf32> to vector<8xf32>
      %126 = vector.shape_cast %125 : vector<8xf32> to vector<1x8xf32>
      %cst_62 = arith.constant dense<0xFF800000> : vector<1xf32>
      %127 = vector.multi_reduction <maximumf>, %126, %cst_62 [1] : vector<1x8xf32> to vector<1xf32>
      %128 = vector.shape_cast %127 : vector<1xf32> to vector<1x1xf32>
      %129 = vector.broadcast %128 : vector<1x1xf32> to vector<1x8xf32>
      %130 = arith.subf %126, %129 : vector<1x8xf32>
      %131 = math.exp %130 : vector<1x8xf32>
      %cst_63 = arith.constant dense<0.000000e+00> : vector<1xf32>
      %132 = vector.multi_reduction <add>, %131, %cst_63 [1] : vector<1x8xf32> to vector<1xf32>
      %133 = vector.shape_cast %132 : vector<1xf32> to vector<1x1xf32>
      %134 = tpu.reciprocal %133 {approx = true} : vector<1x1xf32> -> vector<1x1xf32>
      %135 = vector.broadcast %134 : vector<1x1xf32> to vector<1x8xf32>
      %136 = arith.mulf %131, %135 : vector<1x8xf32>
      %137 = arith.truncf %136 : vector<1x8xf32> to vector<1x8xbf16>
      %138 = arith.truncf %121 : vector<8x768xf32> to vector<8x768xbf16>
      %cst_64 = arith.constant dense<0.000000e+00> : vector<1x768xf32>
      %139 = tpu.matmul %137, %138, %cst_64 {dimension_numbers = #tpu.dot_dimension_numbers<[1], [0], [0], [1], [0, 0, 1, 1], [], []>} : vector<1x8xbf16>, vector<8x768xbf16>, vector<1x768xf32> -> vector<1x768xf32>
      %140 = tpu.concatenate %119, %139 in 0 : vector<1x768xf32>, vector<1x768xf32> -> vector<2x768xf32>
      %141 = arith.truncf %140 : vector<2x768xf32> to vector<2x768xbf16>
      %c0_65 = arith.constant 0 : index
      %c0_66 = arith.constant 0 : index
      %142 = vector.load %arg15[%c0_65, %c0_66] : memref<768x8xbf16, #tpu.memory_space<vmem>>, vector<768x8xbf16>
      %cst_67 = arith.constant dense<0.000000e+00> : vector<2x8xf32>
      %143 = tpu.matmul %141, %142, %cst_67 {dimension_numbers = #tpu.dot_dimension_numbers<[1], [0], [0], [1], [0, 0, 1, 1], [], []>} : vector<2x768xbf16>, vector<768x8xbf16>, vector<2x8xf32> -> vector<2x8xf32>
      %c0_68 = arith.constant 0 : index
      %c0_69 = arith.constant 0 : index
      %144 = vector.load %arg16[%c0_68, %c0_69] : memref<1x8xf32, #tpu.memory_space<vmem>>, vector<1x8xf32>
      %145 = vector.broadcast %144 : vector<1x8xf32> to vector<2x8xf32>
      %146 = arith.addf %143, %145 : vector<2x8xf32>
      %c0_70 = arith.constant 0 : index
      %c0_71 = arith.constant 0 : index
      %147 = vector.load %arg17[%c0_70, %c0_71] : memref<2x8xf32, #tpu.memory_space<vmem>>, vector<2x8xf32>
      tpu.vector_store %arg17[%c0_70, %c0_71], %146 {strides = array<i32>} : memref<2x8xf32, #tpu.memory_space<vmem>>, vector<2x8xf32>,
    } else {
    }
    return
  }
  func.func @transform_0(%arg0: i32) -> (i32, i32) {
    %c0_i32 = arith.constant 0 : i32
    %c0_i32_0 = arith.constant 0 : i32
    %c0_i32_1 = arith.constant 0 : i32
    return %c0_i32, %c0_i32_0 : i32, i32
  }
  func.func @transform_1(%arg0: i32) -> (i32, i32) {
    %c0_i32 = arith.constant 0 : i32
    %c0_i32_0 = arith.constant 0 : i32
    %c0_i32_1 = arith.constant 0 : i32
    return %c0_i32, %c0_i32_0 : i32, i32
  }
  func.func @transform_2(%arg0: i32) -> (i32, i32) {
    %c0_i32 = arith.constant 0 : i32
    %c0_i32_0 = arith.constant 0 : i32
    %c0_i32_1 = arith.constant 0 : i32
    return %c0_i32, %c0_i32_0 : i32, i32
  }
  func.func @transform_3(%arg0: i32) -> (i32, i32) {
    %c0_i32 = arith.constant 0 : i32
    %c0_i32_0 = arith.constant 0 : i32
    %c0_i32_1 = arith.constant 0 : i32
    return %c0_i32, %c0_i32_0 : i32, i32
  }
  func.func @transform_4(%arg0: i32) -> (i32, i32) {
    %c0_i32 = arith.constant 0 : i32
    %c0_i32_0 = arith.constant 0 : i32
    %c0_i32_1 = arith.constant 0 : i32
    return %c0_i32, %c0_i32_0 : i32, i32
  }
  func.func @transform_5(%arg0: i32) -> (i32, i32) {
    %c0_i32 = arith.constant 0 : i32
    %c0_i32_0 = arith.constant 0 : i32
    %c0_i32_1 = arith.constant 0 : i32
    return %c0_i32, %c0_i32_0 : i32, i32
  }
  func.func @transform_6(%arg0: i32) -> (i32, i32, i32) {
    %c0_i32 = arith.constant 0 : i32
    %c0_i32_0 = arith.constant 0 : i32
    %c0_i32_1 = arith.constant 0 : i32
    return %arg0, %c0_i32, %c0_i32_0 : i32, i32, i32
  }
  func.func @transform_7(%arg0: i32) -> (i32, i32, i32) {
    %c0_i32 = arith.constant 0 : i32
    %c0_i32_0 = arith.constant 0 : i32
    %c0_i32_1 = arith.constant 0 : i32
    return %arg0, %c0_i32, %c0_i32_0 : i32, i32, i32
  }
  func.func @transform_8(%arg0: i32) -> (i32, i32, i32) {
    %c0_i32 = arith.constant 0 : i32
    %c0_i32_0 = arith.constant 0 : i32
    %c0_i32_1 = arith.constant 0 : i32
    return %arg0, %c0_i32, %c0_i32_0 : i32, i32, i32
  }
  func.func @transform_9(%arg0: i32) -> (i32, i32) {
    %c0_i32 = arith.constant 0 : i32
    %c0_i32_0 = arith.constant 0 : i32
    %c0_i32_1 = arith.constant 0 : i32
    return %c0_i32, %c0_i32_0 : i32, i32
  }
  func.func @transform_10(%arg0: i32) -> (i32, i32) {
    %c0_i32 = arith.constant 0 : i32
    %c0_i32_0 = arith.constant 0 : i32
    %c0_i32_1 = arith.constant 0 : i32
    return %c0_i32, %c0_i32_0 : i32, i32
  }
  func.func @transform_11(%arg0: i32) -> (i32, i32) {
    %c0_i32 = arith.constant 0 : i32
    %c0_i32_0 = arith.constant 0 : i32
    %c0_i32_1 = arith.constant 0 : i32
    return %c0_i32, %c0_i32_0 : i32, i32
  }
  func.func @transform_12(%arg0: i32) -> (i32, i32) {
    %c0_i32 = arith.constant 0 : i32
    %c0_i32_0 = arith.constant 0 : i32
    %c0_i32_1 = arith.constant 0 : i32
    return %c0_i32, %c0_i32_0 : i32, i32
  }
  func.func @transform_13(%arg0: i32) -> (i32, i32) {
    %c0_i32 = arith.constant 0 : i32
    %c0_i32_0 = arith.constant 0 : i32
    %c0_i32_1 = arith.constant 0 : i32
    return %c0_i32, %c0_i32_0 : i32, i32
  }
  func.func @transform_14(%arg0: i32) -> (i32, i32) {
    %c0_i32 = arith.constant 0 : i32
    %c0_i32_0 = arith.constant 0 : i32
    %c0_i32_1 = arith.constant 0 : i32
    return %c0_i32, %c0_i32_0 : i32, i32
  }
  func.func @transform_15(%arg0: i32) -> (i32, i32) {
    %c0_i32 = arith.constant 0 : i32
    %c0_i32_0 = arith.constant 0 : i32
    %c0_i32_1 = arith.constant 0 : i32
    return %c0_i32, %c0_i32_0 : i32, i32
  }
  func.func @transform_16(%arg0: i32) -> (i32, i32) {
    %c0_i32 = arith.constant 0 : i32
    %c0_i32_0 = arith.constant 0 : i32
    %c0_i32_1 = arith.constant 0 : i32
    return %c0_i32, %c0_i32_0 : i32, i32
  }
}

</mosaic_0001>

<bundles_post_ra>
// kernel: tpu_custom_call.1
= control target key start
LH: loop header
LB: loop body
LE: loop exit
PB: predicated region body
PF: predicated region fallthrough
CT: control target
= control target key end

     0   :  { %s13107_s0 = inlined_call_operand.vmem [shape: f32[16,768], index: 0, kind: input, shape index: {}]   ;;  %s13108_s1 = inlined_call_operand.vmem [shape: bf16[16,768], index: 1, kind: input, shape index: {}]   ;;  %s13109_s2 = inlined_call_operand.vmem [shape: f32[32,32], index: 2, kind: input, shape index: {}]   ;;  %s13110_s3 = inlined_call_operand.vmem [shape: f32[32,1], index: 3, kind: input, shape index: {}]   ;;  %s13111_s4 = inlined_call_operand.vmem [shape: f32[16,1], index: 4, kind: input, shape index: {}]   ;;  %s13112_s5 = inlined_call_operand.vmem [shape: f32[16,16], index: 5, kind: input, shape index: {}]   ;;  %s13113_s6 = inlined_call_operand.vmem [shape: bf16[12,768,192], index: 6, kind: input, shape index: {}]   ;;  %s13114_s7 = inlined_call_operand.vmem [shape: f32[12,1,192], index: 7, kind: input, shape index: {}]   ;;  %s13115_s8 = inlined_call_operand.vmem [shape: bf16[12,64,768], index: 8, kind: input, shape index: {}]   ;;  %s13116_s9 = inlined_call_operand.vmem [shape: f32[1,768], index: 9, kind: input, shape index: {}]   ;;  %s13117_s10 = inlined_call_operand.vmem [shape: bf16[768,768], index: 10, kind: input, shape index: {}]   ;;  %s13118_s11 = inlined_call_operand.vmem [shape: f32[1,768], index: 11, kind: input, shape index: {}]   ;;  %s13119_s12 = inlined_call_operand.vmem [shape: bf16[768,768], index: 12, kind: input, shape index: {}]   ;;  %s13120_s13 = inlined_call_operand.vmem [shape: f32[1,768], index: 13, kind: input, shape index: {}]   ;;  %s13121_s14 = inlined_call_operand.vmem [shape: bf16[768,8], index: 14, kind: input, shape index: {}]   ;;  %s13122_s15 = inlined_call_operand.vmem [shape: f32[1,8], index: 15, kind: input, shape index: {}]   ;;  %s13123_s16 = inlined_call_operand.hbm [shape: f32[2,8], index: 16, kind: output, shape index: {}]  }
   0x1   :  { %13125 = sst [smem:[#allocation6_spill]] %s13107_s0 }
   0x2   :  { %21 = vsyncpa [#allocation4], 0  ;;  %s10446_s21 = smov 0  }
   0x3 LB: > { %s10452_s22 = sadd.s32 4294967295, %s10352_s21   ;;  %p8153_p0 = scmp.ge.s32.totalorder %s10352_s21, 1  ;;  %s10352_s21 = sphi %s10446_s21, %s27_s21  }
   0x4   : > { %p477_p1 = scmp.lt.s32.totalorder %s10352_s21, 13 }
   0x6   : > { %p478_p2 = pnand %p8153_p0, %p477_p1 }
   0x7   : > { %p531_p3 = scmp.lt.s32.totalorder (!%p478_p2), %s10452_s22, 11  ;;  %p8157_p4 = scmp.ne.s32.totalorder (!%p478_p2), %s10452_s22, 0 }
   0x8   : > { %481 = sbr.rel (%p478_p2) target bundleno = 4022 (0xfb6), region = 84 }
   0xf   : > { %s532_s23 = scalar_select %p531_p3, %s10452_s22, 11 }
  0x10   : > { %549 = sbr.rel (%p8157_p4) target bundleno = 23 (0x17), region = 88  ;;  %v10354_v0 = vmov (!%p8157_p4), 0.0  }
  0x11   : > { %s9149_s24 = smul.u32 768, %s532_s23  ;;  %s8155_s25 = sshll.u32 %s532_s23, 1  ;;  %550 = vst [vmem:[#allocation2] sm:$0xff] (!%p8157_p4), %v10354_v0  ;;  %551 = vst [vmem:[#allocation2 + $0x8] sm:$0xff] (!%p8157_p4), %v10354_v0 }
  0x12   : > { %s10461_s28 = scalar_lea.vmem %s13114_s7, %s8155_s25  ;;  %s9150_s29 = smul.u32 192, %s532_s23  ;;  %552 = vst [vmem:[#allocation2 + $0x10] sm:$0xff] (!%p8157_p4), %v10354_v0  ;;  %553 = vst [vmem:[#allocation2 + $0x18] sm:$0xff] (!%p8157_p4), %v10354_v0 }
  0x13   : > { %s10466_s17 = scalar_lea.vmem %s13113_s6, %s9149_s24  ;;  %554 = vst [vmem:[#allocation2 + $0x20] sm:$0xff] (!%p8157_p4), %v10354_v0  ;;  %555 = vst [vmem:[#allocation2 + $0x28] sm:$0xff] (!%p8157_p4), %v10354_v0 }
  0x14   : > { %s10471_s20 = scalar_lea.vmem %s13115_s8, %s9150_s29  ;;  %556 = vst [vmem:[#allocation2 + $0x30] sm:$0xff] (!%p8157_p4), %v10354_v0  ;;  %557 = vst [vmem:[#allocation2 + $0x38] sm:$0xff] (!%p8157_p4), %v10354_v0 }
  0x15   : > { %558 = vst [vmem:[#allocation2 + $0x40] sm:$0xff] (!%p8157_p4), %v10354_v0  ;;  %559 = vst [vmem:[#allocation2 + $0x48] sm:$0xff] (!%p8157_p4), %v10354_v0 }
  0x16   : > { %560 = vst [vmem:[#allocation2 + $0x50] sm:$0xff] (!%p8157_p4), %v10354_v0  ;;  %561 = vst [vmem:[#allocation2 + $0x58] sm:$0xff] (!%p8157_p4), %v10354_v0 }
  0x17 PF: > { %v9172_v1 = vld [vmem:[%s10466_s17 + $0x104] ss:$8 sps:$4 sm:$0xff]   ;;  %v9174_v2 = vld [vmem:[%s10466_s17 + $0x100] ss:$8 sps:$4 sm:$0xff]   ;;  %v9175_v3 = vld [vmem:[%s10466_s17 + $0x114] ss:$8 sps:$4 sm:$0xff]  }
  0x18   : > { %1229 = vmatprep.subr.bf16.mxu0 %v9172_v1  ;;  %v9177_v4 = vld [vmem:[%s10466_s17 + $0x110] ss:$8 sps:$4 sm:$0xff]   ;;  %v9178_v5 = vld [vmem:[%s10466_s17 + $0x124] ss:$8 sps:$4 sm:$0xff]   ;;  %v9180_v6 = vld [vmem:[%s10466_s17 + $0x120] ss:$8 sps:$4 sm:$0xff]  }
  0x19   : > { %1230 = vmatpush1.bf16.msra.mxu0 %v9174_v2  ;;  %v9181_v7 = vld [vmem:[%s10466_s17 + $0x134] ss:$8 sps:$4 sm:$0xff]   ;;  %v9183_v8 = vld [vmem:[%s10466_s17 + $0x130] ss:$8 sps:$4 sm:$0xff]   ;;  %v9184_v9 = vld [vmem:[%s10466_s17 + $0x144] ss:$8 sps:$4 sm:$0xff]  }
  0x1a   : > { %1231 = vmatprep.subr.bf16.mxu0 %v9175_v3  ;;  %v9186_v10 = vld [vmem:[%s10466_s17 + $0x140] ss:$8 sps:$4 sm:$0xff]   ;;  %v9187_v11 = vld [vmem:[%s10466_s17 + $0x154] ss:$8 sps:$4 sm:$0xff]   ;;  %v9189_v12 = vld [vmem:[%s10466_s17 + $0x150] ss:$8 sps:$4 sm:$0xff]  }
  0x1b   : > { %v9190_v13 = vld [vmem:[%s10466_s17 + $0x164] ss:$8 sps:$4 sm:$0xff]   ;;  %v9219_v15 = vld [vmem:[%s10466_s17] ss:$8 sps:$4 sm:$0xff]   ;;  %v9223_v17 = vld [vmem:[%s10466_s17 + $0x14] ss:$8 sps:$4 sm:$0xff]  }
  0x1c   : > { %v9217_v14 = vld [vmem:[%s10466_s17 + $0x4] ss:$8 sps:$4 sm:$0xff]   ;;  %v9192_v16 = vld [vmem:[%s10466_s17 + $0x160] ss:$8 sps:$4 sm:$0xff]   ;;  %v9225_v18 = vld [vmem:[%s10466_s17 + $0x10] ss:$8 sps:$4 sm:$0xff]  }
  0x1d   : > { %1232 = vmatpush1.bf16.msra.mxu0 %v9177_v4  ;;  %1186 = vmatprep.subr.bf16.mxu1 %v9217_v14  ;;  %v9193_v19 = vld [vmem:[%s10466_s17 + $0x174] ss:$8 sps:$4 sm:$0xff]   ;;  %v9228_v20 = vld [vmem:[%s13108_s1 + $0xc] ss:$24 sps:$4 sm:$0xff]   ;;  %v9195_v21 = vld [vmem:[%s10466_s17 + $0x170] ss:$8 sps:$4 sm:$0xff]  }
  0x1e   : > { %1233 = vmatprep.subr.bf16.mxu0 %v9178_v5  ;;  %1187 = vmatpush1.bf16.msra.mxu1 %v9219_v15  ;;  %v9232_v22 = vld [vmem:[%s10466_s17 + $0x24] ss:$8 sps:$4 sm:$0xff]   ;;  %v9234_v23 = vld [vmem:[%s10466_s17 + $0x20] ss:$8 sps:$4 sm:$0xff]   ;;  %v9238_v26 = vld [vmem:[%s10466_s17 + $0x34] ss:$8 sps:$4 sm:$0xff]  }
  0x1f   : > { %1188 = vmatprep.subr.bf16.mxu1 %v9223_v17  ;;  %v9196_v24 = vld [vmem:[%s10466_s17 + $0x184] ss:$8 sps:$4 sm:$0xff]   ;;  %1261 = vmatprep.mubr.bf16.mxu0 %v9228_v20  ;;  %v9198_v25 = vld [vmem:[%s10466_s17 + $0x180] ss:$8 sps:$4 sm:$0xff]   ;;  %v9199_v27 = vld [vmem:[%s10466_s17 + $0x194] ss:$8 sps:$4 sm:$0xff]  }
  0x20   : > { %v9240_v28 = vld [vmem:[%s10466_s17 + $0x30] ss:$8 sps:$4 sm:$0xff]   ;;  %v9244_v29 = vld [vmem:[%s10466_s17 + $0x44] ss:$8 sps:$4 sm:$0xff]   ;;  %v9246_v32 = vld [vmem:[%s10466_s17 + $0x40] ss:$8 sps:$4 sm:$0xff]  }
  0x21   : > { %1234 = vmatpush1.bf16.msra.mxu0 %v9180_v6  ;;  %v9201_v30 = vld [vmem:[%s10466_s17 + $0x190] ss:$8 sps:$4 sm:$0xff]   ;;  %v9202_v31 = vld [vmem:[%s10466_s17 + $0x1a4] ss:$8 sps:$4 sm:$0xff]   ;;  %v9250_v33 = vld [vmem:[%s10466_s17 + $0x54] ss:$8 sps:$4 sm:$0xff]  }
  0x22   : > { %1235 = vmatprep.subr.bf16.mxu0 %v9181_v7  ;;  %1189 = vmatpush1.bf16.msra.mxu1 %v9225_v18  ;;  %v9204_v34 = vld [vmem:[%s10466_s17 + $0x1a0] ss:$8 sps:$4 sm:$0xff]   ;;  %v9205_v35 = vld [vmem:[%s10466_s17 + $0x1b4] ss:$8 sps:$4 sm:$0xff]   ;;  %v9252_v36 = vld [vmem:[%s10466_s17 + $0x50] ss:$8 sps:$4 sm:$0xff]  }
  0x23   : > { %1190 = vmatprep.subr.bf16.mxu1 %v9232_v22  ;;  %v9256_v37 = vld [vmem:[%s10466_s17 + $0x64] ss:$8 sps:$4 sm:$0xff]   ;;  %v9207_v38 = vld [vmem:[%s10466_s17 + $0x1b0] ss:$8 sps:$4 sm:$0xff]   ;;  %v9258_v40 = vld [vmem:[%s10466_s17 + $0x60] ss:$8 sps:$4 sm:$0xff]  }
  0x24   : > { %v9208_v39 = vld [vmem:[%s10466_s17 + $0x1c4] ss:$8 sps:$4 sm:$0xff]   ;;  %v9262_v41 = vld [vmem:[%s10466_s17 + $0x74] ss:$8 sps:$4 sm:$0xff]   ;;  %v9210_v42 = vld [vmem:[%s10466_s17 + $0x1c0] ss:$8 sps:$4 sm:$0xff]  }
  0x25   : > { %1236 = vmatpush1.bf16.msra.mxu0 %v9183_v8  ;;  %v9211_v43 = vld [vmem:[%s10466_s17 + $0x1d4] ss:$8 sps:$4 sm:$0xff]   ;;  %v9264_v44 = vld [vmem:[%s10466_s17 + $0x70] ss:$8 sps:$4 sm:$0xff]   ;;  %v9268_v45 = vld [vmem:[%s10466_s17 + $0x84] ss:$8 sps:$4 sm:$0xff]  }
  0x26   : > { %1237 = vmatprep.subr.bf16.mxu0 %v9184_v9  ;;  %1191 = vmatpush1.bf16.msra.mxu1 %v9234_v23  ;;  %v9213_v46 = vld [vmem:[%s10466_s17 + $0x1d0] ss:$8 sps:$4 sm:$0xff]   ;;  %v9214_v47 = vld [vmem:[%s10466_s17 + $0x1e4] ss:$8 sps:$4 sm:$0xff]   ;;  %v9270_v48 = vld [vmem:[%s10466_s17 + $0x80] ss:$8 sps:$4 sm:$0xff]  }
  0x27   : > { %1192 = vmatprep.subr.bf16.mxu1 %v9238_v26  ;;  %v9274_v49 = vld [vmem:[%s10466_s17 + $0x94] ss:$8 sps:$4 sm:$0xff]   ;;  %v9216_v50 = vld [vmem:[%s10466_s17 + $0x1e0] ss:$8 sps:$4 sm:$0xff]   ;;  %v9276_v52 = vld [vmem:[%s10466_s17 + $0x90] ss:$8 sps:$4 sm:$0xff]  }
  0x28   : > { %v9220_v51 = vld [vmem:[%s10466_s17 + $0x1f4] ss:$8 sps:$4 sm:$0xff]   ;;  %v9280_v53 = vld [vmem:[%s10466_s17 + $0xa4] ss:$8 sps:$4 sm:$0xff]   ;;  %v9222_v54 = vld [vmem:[%s10466_s17 + $0x1f0] ss:$8 sps:$4 sm:$0xff]  }
  0x29   : > { %1238 = vmatpush1.bf16.msra.mxu0 %v9186_v10  ;;  %v9231_v55 = vld [vmem:[%s10466_s17 + $0x204] ss:$8 sps:$4 sm:$0xff]   ;;  %v9282_v56 = vld [vmem:[%s10466_s17 + $0xa0] ss:$8 sps:$4 sm:$0xff]   ;;  %v9286_v57 = vld [vmem:[%s10466_s17 + $0xb4] ss:$8 sps:$4 sm:$0xff]  }
  0x2a   : > { %1239 = vmatprep.subr.bf16.mxu0 %v9187_v11  ;;  %1193 = vmatpush1.bf16.msra.mxu1 %v9240_v28  ;;  %v9226_v58 = vld [vmem:[%s13108_s1 + $0x8] ss:$24 sps:$4 sm:$0xff]   ;;  %v9237_v60 = vld [vmem:[%s10466_s17 + $0x214] ss:$8 sps:$4 sm:$0xff]   ;;  %v9288_v61 = vld [vmem:[%s10466_s17 + $0xb0] ss:$8 sps:$4 sm:$0xff]  }
  0x2b   : > { %1194 = vmatprep.subr.bf16.mxu1 %v9244_v29  ;;  %v9229_v59 = vld [vmem:[%s10466_s17 + $0x200] ss:$8 sps:$4 sm:$0xff]   ;;  %v9292_v62 = vld [vmem:[%s10466_s17 + $0xc4] ss:$8 sps:$4 sm:$0xff]   ;;  %v9235_v0 = vld [vmem:[%s10466_s17 + $0x210] ss:$8 sps:$4 sm:$0xff]  }
  0x2c   : > { %v9318_v63 = vld [vmem:[%s13108_s1 + $0x4] ss:$24 sps:$4 sm:$0xff]   ;;  %v9294_v2 = vld [vmem:[%s10466_s17 + $0xc0] ss:$8 sps:$4 sm:$0xff]   ;;  %v9324_v3 = vld [vmem:[%s13108_s1 + $0x14] ss:$24 sps:$4 sm:$0xff]  }
  0x2d   : > { %1240 = vmatpush1.bf16.msra.mxu0 %v9189_v12  ;;  %v9243_v1 = vld [vmem:[%s10466_s17 + $0x224] ss:$8 sps:$4 sm:$0xff]   ;;  %v9298_v4 = vld [vmem:[%s10466_s17 + $0xd4] ss:$8 sps:$4 sm:$0xff]   ;;  %v9241_v5 = vld [vmem:[%s10466_s17 + $0x220] ss:$8 sps:$4 sm:$0xff]   ;;  %1218 = vmatprep.mubr.bf16.mxu1 %v9318_v63 }
  0x2e   : > { %1241 = vmatprep.subr.bf16.mxu0 %v9190_v13  ;;  %1195 = vmatpush1.bf16.msra.mxu1 %v9246_v32  ;;  %v9300_v6 = vld [vmem:[%s10466_s17 + $0xd0] ss:$8 sps:$4 sm:$0xff]   ;;  %v9249_v7 = vld [vmem:[%s10466_s17 + $0x234] ss:$8 sps:$4 sm:$0xff]   ;;  %v9304_v8 = vld [vmem:[%s10466_s17 + $0xe4] ss:$8 sps:$4 sm:$0xff]  }
  0x2f   : > { %1196 = vmatprep.subr.bf16.mxu1 %v9250_v33  ;;  %v9247_v9 = vld [vmem:[%s10466_s17 + $0x230] ss:$8 sps:$4 sm:$0xff]   ;;  %v9306_v10 = vld [vmem:[%s10466_s17 + $0xe0] ss:$8 sps:$4 sm:$0xff]   ;;  %v9255_v11 = vld [vmem:[%s10466_s17 + $0x244] ss:$8 sps:$4 sm:$0xff]  }
  0x30   : > { %v9310_v12 = vld [vmem:[%s10466_s17 + $0xf4] ss:$8 sps:$4 sm:$0xff]   ;;  %v9253_v13 = vld [vmem:[%s10466_s17 + $0x240] ss:$8 sps:$4 sm:$0xff]   ;;  %v9312_v14 = vld [vmem:[%s10466_s17 + $0xf0] ss:$8 sps:$4 sm:$0xff]  }
  0x31   : > { %1242 = vmatpush1.bf16.msra.mxu0 %v9192_v16  ;;  %v9261_v15 = vld [vmem:[%s10466_s17 + $0x254] ss:$8 sps:$4 sm:$0xff]   ;;  %v9316_v16 = vld [vmem:[%s13108_s1] ss:$24 sps:$4 sm:$0xff]   ;;  %v9267_v18 = vld [vmem:[%s10466_s17 + $0x264] ss:$8 sps:$4 sm:$0xff]  }
  0x32   : > { %1243 = vmatprep.subr.bf16.mxu0 %v9193_v19  ;;  %1197 = vmatpush1.bf16.msra.mxu1 %v9252_v36  ;;  %v9259_v17 = vld [vmem:[%s10466_s17 + $0x250] ss:$8 sps:$4 sm:$0xff]   ;;  %v9265_v19 = vld [vmem:[%s10466_s17 + $0x260] ss:$8 sps:$4 sm:$0xff]   ;;  %v9273_v20 = vld [vmem:[%s10466_s17 + $0x274] ss:$8 sps:$4 sm:$0xff]  }
  0x33   : > { %1198 = vmatprep.subr.bf16.mxu1 %v9256_v37  ;;  %v9279_v22 = vld [vmem:[%s10466_s17 + $0x284] ss:$8 sps:$4 sm:$0xff]   ;;  %v9277_v23 = vld [vmem:[%s10466_s17 + $0x280] ss:$8 sps:$4 sm:$0xff]   ;;  %v9297_v28 = vld [vmem:[%s10466_s17 + $0x2b4] ss:$8 sps:$4 sm:$0xff]  }
  0x34   : > { %v9291_v26 = vld [vmem:[%s10466_s17 + $0x2a4] ss:$8 sps:$4 sm:$0xff]   ;;  %v9295_v29 = vld [vmem:[%s10466_s17 + $0x2b0] ss:$8 sps:$4 sm:$0xff]   ;;  %v9309_v32 = vld [vmem:[%s10466_s17 + $0x2d4] ss:$8 sps:$4 sm:$0xff]  }
  0x35   : > { %1244 = vmatpush1.bf16.msra.mxu0 %v9195_v21  ;;  %v9271_v21 = vld [vmem:[%s10466_s17 + $0x270] ss:$8 sps:$4 sm:$0xff]   ;;  %v9321_v36 = vld [vmem:[%s10466_s17 + $0x2f4] ss:$8 sps:$4 sm:$0xff]   ;;  %vm10356_vm0 = vmmov 0   ;;  %vm1319_vm1 = vcmask 523264  }
  0x36   : > { %1245 = vmatprep.subr.bf16.mxu0 %v9196_v24  ;;  %1199 = vmatpush1.bf16.msra.mxu1 %v9258_v40  ;;  %v9285_v24 = vld [vmem:[%s10466_s17 + $0x294] ss:$8 sps:$4 sm:$0xff]   ;;  %v9307_v33 = vld [vmem:[%s10466_s17 + $0x2d0] ss:$8 sps:$4 sm:$0xff]   ;;  %vm1373_vm2 = vcmask 130048   ;;  %p8289_p5 = scmp.ne.s32.totalorder %s10452_s22, 11 }
  0x37   : > { %1200 = vmatprep.subr.bf16.mxu1 %v9262_v41  ;;  %v9319_v37 = vld [vmem:[%s10466_s17 + $0x2f0] ss:$8 sps:$4 sm:$0xff]   ;;  %vm1781_vm3 = vcmask (!%p8289_p5), 261120  }
  0x39   : > { %1246 = vmatpush1.bf16.msra.mxu0 %v9198_v25  ;;  %v9283_v25 = vld [vmem:[%s10466_s17 + $0x290] ss:$8 sps:$4 sm:$0xff]  }
  0x3a   : > { %1247 = vmatprep.subr.bf16.mxu0 %v9199_v27  ;;  %1201 = vmatpush1.bf16.msra.mxu1 %v9264_v44  ;;  %v9289_v27 = vld [vmem:[%s10466_s17 + $0x2a0] ss:$8 sps:$4 sm:$0xff]  }
  0x3b   : > { %1202 = vmatprep.subr.bf16.mxu1 %v9268_v45 }
  0x3d   : > { %1248 = vmatpush1.bf16.msra.mxu0 %v9201_v30  ;;  %v9303_v30 = vld [vmem:[%s10466_s17 + $0x2c4] ss:$8 sps:$4 sm:$0xff]  }
  0x3e   : > { %1249 = vmatprep.subr.bf16.mxu0 %v9202_v31  ;;  %1203 = vmatpush1.bf16.msra.mxu1 %v9270_v48  ;;  %v9301_v31 = vld [vmem:[%s10466_s17 + $0x2c0] ss:$8 sps:$4 sm:$0xff]  }
  0x3f   : > { %1204 = vmatprep.subr.bf16.mxu1 %v9274_v49 }
  0x41   : > { %1250 = vmatpush1.bf16.msra.mxu0 %v9204_v34  ;;  %v9315_v34 = vld [vmem:[%s10466_s17 + $0x2e4] ss:$8 sps:$4 sm:$0xff]  }
  0x42   : > { %1251 = vmatprep.subr.bf16.mxu0 %v9205_v35  ;;  %1205 = vmatpush1.bf16.msra.mxu1 %v9276_v52  ;;  %v9313_v35 = vld [vmem:[%s10466_s17 + $0x2e0] ss:$8 sps:$4 sm:$0xff]  }
  0x43   : > { %1206 = vmatprep.subr.bf16.mxu1 %v9280_v53 }
  0x45   : > { %1252 = vmatpush1.bf16.msra.mxu0 %v9207_v38  ;;  %v9322_v38 = vld [vmem:[%s13108_s1 + $0x10] ss:$24 sps:$4 sm:$0xff]  }
  0x46   : > { %1253 = vmatprep.subr.bf16.mxu0 %v9208_v39  ;;  %1207 = vmatpush1.bf16.msra.mxu1 %v9282_v56 }
  0x47   : > { %1208 = vmatprep.subr.bf16.mxu1 %v9286_v57 }
  0x49   : > { %1254 = vmatpush1.bf16.msra.mxu0 %v9210_v42 }
  0x4a   : > { %1255 = vmatprep.subr.bf16.mxu0 %v9211_v43  ;;  %1209 = vmatpush1.bf16.msra.mxu1 %v9288_v61  ;;  %v666_v43 = vlaneseq }
  0x4b   : > { %1210 = vmatprep.subr.bf16.mxu1 %v9292_v62 }
  0x4c   : > { %v10588_v44 = vshrl.u32 %v666_v43, 7 }
  0x4d   : > { %1256 = vmatpush1.bf16.msra.mxu0 %v9213_v46  ;;  %v664_v46 = vld [vmem:[%s10461_s28] sm:$0x3]  ;;  %s10357_s28 = smov 64  }
  0x4e   : > { %1257 = vmatprep.subr.bf16.mxu0 %v9214_v47  ;;  %1211 = vmatpush1.bf16.msra.mxu1 %v9294_v2  ;;  %v10591_v45 = vsub.s32 0, %v10588_v44  ;;  %v10595_v47 = vsub.s32 1, %v10588_v44 }
  0x4f   : > { %1212 = vmatprep.subr.bf16.mxu1 %v9298_v4  ;;  %v1369_v4 = vld [vmem:[%s13112_s5] sm:$0xff] }
  0x50   : > { %v669_v48 = vrot.slane %v664_v46, %v10591_v45  ;;  %v673_v49 = vrot.slane %v664_v46, %v10595_v47 }
  0x51   : > { %1258 = vmatpush1.bf16.msra.mxu0 %v9216_v50  ;;  %v10355_v50 = vmov 0.0  }
  0x52   : > { %1259 = vmatprep.subr.bf16.mxu0 %v9220_v51  ;;  %1213 = vmatpush1.bf16.msra.mxu1 %v9300_v6 }
  0x53   : > { %1214 = vmatprep.subr.bf16.mxu1 %v9304_v8  ;;  %v1370_v8 = vld [vmem:[%s13112_s5 + $0x8] sm:$0xff] }
  0x55   : > { %1260 = vmatpush1.bf16.msra.mxu0 %v9222_v54 }
  0x56   : > { %1272 = vmatprep.subr.bf16.mxu0 %v9231_v55  ;;  %1215 = vmatpush1.bf16.msra.mxu1 %v9306_v10 }
  0x57   : > { %1216 = vmatprep.subr.bf16.mxu1 %v9310_v12 }
  0x58   : > { %1262 = vmatmul.mubr.bf16.vlgmr.msra.gmra.mrb[0].mxu0 %v9226_v58 }
  0x59   : > { %1273 = vmatpush1.bf16.msra.mxu0 %v9229_v59  ;;  %1304 = vmatprep.mubr.bf16.mxu0 %v9324_v3 }
  0x5a   : > { %1274 = vmatprep.subr.bf16.mxu0 %v9237_v60  ;;  %1217 = vmatpush1.bf16.msra.mxu1 %v9312_v14 }
  0x5b   : > { %9013 = vmatprep.subr.bf16.mxu1 %v10355_v50 }
  0x5d   : > { %1275 = vmatpush1.bf16.msra.mxu0 %v9235_v0  ;;  %1219 = vmatmul.mubr.bf16.vlgmr.msra.gmra.mrb[0].mxu1 %v9316_v16 }
  0x5e   : > { %1276 = vmatprep.subr.bf16.mxu0 %v9243_v1  ;;  %9015 = vmatprep.mubr.msk.bf16.mxu1 %vm10356_vm0, %v10355_v50 }
  0x61   : > { %1277 = vmatpush1.bf16.msra.mxu0 %v9241_v5 }
  0x62   : > { %1278 = vmatprep.subr.bf16.mxu0 %v9249_v7 }
  0x65   : > { %1279 = vmatpush1.bf16.msra.mxu0 %v9247_v9 }
  0x66   : > { %1280 = vmatprep.subr.bf16.mxu0 %v9255_v11 }
  0x69   : > { %1281 = vmatpush1.bf16.msra.mxu0 %v9253_v13 }
  0x6a   : > { %1282 = vmatprep.subr.bf16.mxu0 %v9261_v15 }
  0x6d   : > { %1283 = vmatpush1.bf16.msra.mxu0 %v9259_v17 }
  0x6e   : > { %1284 = vmatprep.subr.bf16.mxu0 %v9267_v18 }
  0x71   : > { %1285 = vmatpush1.bf16.msra.mxu0 %v9265_v19 }
  0x72   : > { %1286 = vmatprep.subr.bf16.mxu0 %v9273_v20 }
  0x75   : > { %1287 = vmatpush1.bf16.msra.mxu0 %v9271_v21 }
  0x76   : > { %1288 = vmatprep.subr.bf16.mxu0 %v9279_v22 }
  0x79   : > { %1289 = vmatpush1.bf16.msra.mxu0 %v9277_v23 }
  0x7a   : > { %1290 = vmatprep.subr.bf16.mxu0 %v9285_v24 }
  0x7d   : > { %1291 = vmatpush1.bf16.msra.mxu0 %v9283_v25  ;;  %v9327_v25 = vld [vmem:[%s10471_s20 + $0x4] ss:$24 sps:$4 sm:$0xff]  }
  0x7e   : > { %1292 = vmatprep.subr.bf16.mxu0 %v9291_v26 }
  0x81   : > { %1293 = vmatpush1.bf16.msra.mxu0 %v9289_v27 }
  0x82   : > { %1294 = vmatprep.subr.bf16.mxu0 %v9297_v28 }
  0x85   : > { %1295 = vmatpush1.bf16.msra.mxu0 %v9295_v29 }
  0x86   : > { %1296 = vmatprep.subr.bf16.mxu0 %v9303_v30 }
  0x89   : > { %1297 = vmatpush1.bf16.msra.mxu0 %v9301_v31 }
  0x8a   : > { %1298 = vmatprep.subr.bf16.mxu0 %v9309_v32  ;;  %v9325_v32 = vld [vmem:[%s10471_s20] ss:$24 sps:$4 sm:$0xff]  }
  0x8d   : > { %1299 = vmatpush1.bf16.msra.mxu0 %v9307_v33 }
  0x8e   : > { %1300 = vmatprep.subr.bf16.mxu0 %v9315_v34  ;;  %v9330_v34 = vld [vmem:[%s10471_s20 + $0x34] ss:$24 sps:$4 sm:$0xff]  }
  0x91   : > { %1301 = vmatpush1.bf16.msra.mxu0 %v9313_v35  ;;  %v9328_v35 = vld [vmem:[%s10471_s20 + $0x30] ss:$24 sps:$4 sm:$0xff]  }
  0x92   : > { %1302 = vmatprep.subr.bf16.mxu0 %v9321_v36  ;;  %v9333_v36 = vld [vmem:[%s10471_s20 + $0x64] ss:$24 sps:$4 sm:$0xff]  }
  0x95   : > { %1303 = vmatpush1.bf16.msra.mxu0 %v9319_v37  ;;  %v9331_v37 = vld [vmem:[%s10471_s20 + $0x60] ss:$24 sps:$4 sm:$0xff]  }
  0x98   : > { %1305 = vmatmul.mubr.bf16.vlgmr.msra.gmra.mrb[0].mxu0 %v9322_v38  ;;  %v9336_v38 = vld [vmem:[%s10471_s20 + $0x94] ss:$24 sps:$4 sm:$0xff]  }
 0x130   : > { %v1220_v39 = vpop.f32.mrb[0].mxu1 }
 0x131   : > { %v1222_v40 = vpop.f32.mrb[1].mxu1  ;;  %v1221_v51 = vadd.f32 %v1220_v39, %v669_v48  ;;  %v9334_v39 = vld [vmem:[%s10471_s20 + $0x90] ss:$24 sps:$4 sm:$0xff]  }
 0x132   : > { %v1224_v41 = vpop.f32.mrb[2].mxu1  ;;  %v1223_v52 = vadd.f32 %v1222_v40, %v673_v49  ;;  %v9339_v40 = vld [vmem:[%s10471_s20 + $0xc] ss:$24 sps:$4 sm:$0xff]  }
 0x133   : > { %v1226_v42 = vpop.f32.mrb[3].mxu1  ;;  %v1225_v54 = vadd.f32 %v1224_v41, %v669_v48  ;;  %v10358_v41 = vmov 0   ;;  %v9337_v48 = vld [vmem:[%s10471_s20 + $0x8] ss:$24 sps:$4 sm:$0xff]  }
 0x134   : > { %v1227_v57 = vadd.f32 %v1226_v42, %v673_v49 }
 0x16b   : > { %v1306_v53 = vpop.f32.mrb[0].mxu0 }
 0x16c   : > { %v9026_v55 = vadd.f32 %v1306_v53, %v1221_v51  ;;  %v1308_v56 = vpop.f32.mrb[1].mxu0  ;;  %v9342_v51 = vld [vmem:[%s10471_s20 + $0x3c] ss:$24 sps:$4 sm:$0xff]   ;;  %v9345_v53 = vld [vmem:[%s10471_s20 + $0x6c] ss:$24 sps:$4 sm:$0xff]  }
 0x16d   : > { %v9028_v58 = vadd.f32 %v1308_v56, %v1223_v52  ;;  %v1310_v59 = vpop.f32.mrb[2].mxu0  ;;  %v9340_v52 = vld [vmem:[%s10471_s20 + $0x38] ss:$24 sps:$4 sm:$0xff]  }
 0x16e   : > { %v9030_v60 = vadd.f32 %v1310_v59, %v1225_v54  ;;  %v1312_v61 = vpop.f32.mrb[3].mxu0  ;;  %v9343_v54 = vld [vmem:[%s10471_s20 + $0x68] ss:$24 sps:$4 sm:$0xff]   ;;  %v9346_v56 = vld [vmem:[%s10471_s20 + $0x98] ss:$24 sps:$4 sm:$0xff]  }
 0x16f   : > { %v9032_v62 = vadd.f32 %v1312_v61, %v1227_v57  ;;  %v9351_v57 = vld [vmem:[%s10471_s20 + $0x14] ss:$24 sps:$4 sm:$0xff]   ;;  %v9354_v59 = vld [vmem:[%s10471_s20 + $0x44] ss:$24 sps:$4 sm:$0xff]  }
 0x170   : > { %v1315_v63 = vpack.c.bf16 %v9030_v60, %v9026_v55  ;;  %v9348_v55 = vld [vmem:[%s10471_s20 + $0x9c] ss:$24 sps:$4 sm:$0xff]   ;;  %v9352_v60 = vld [vmem:[%s10471_s20 + $0x40] ss:$24 sps:$4 sm:$0xff]  }
 0x171   : > { %v1397_v0 = vpack.c.bf16 %v9032_v62, %v9028_v58  ;;  %v9349_v58 = vld [vmem:[%s10471_s20 + $0x10] ss:$24 sps:$4 sm:$0xff]   ;;  %v9357_v61 = vld [vmem:[%s10471_s20 + $0x74] ss:$24 sps:$4 sm:$0xff]  }
 0x172   : > { %1317 = vrot.lane.b32.xlu0 %v1315_v63, %s10357_s28  ;;  %v9355_v62 = vld [vmem:[%s10471_s20 + $0x70] ss:$24 sps:$4 sm:$0xff]  }
 0x1e4   : > { %v1318_v1 = vpop.permute.xlu0 %1317 }
 0x1e5   : > { %v1324_v2 = vsel %vm1319_vm1, %v1318_v1, 0  ;;  %v1442_v1 = vld [vmem:[#allocation2] sm:$0xff] }
 0x1e6   : > { %9014 = vmatpush3.bf16.xpose.msra.mxu1 %v1324_v2  ;;  %v1443_v2 = vld [vmem:[#allocation2 + $0x8] sm:$0xff] }
 0x1e7   : > { %9019 = vmatprep.subr.bf16.mxu1 %v10355_v50 }
 0x1ed   : > { %9016 = vmatmul.mubr.msk.bf16.vlgmr.msra.gmra.mrb[4].mxu1 %vm1319_vm1, %v1315_v63  ;;  %v9360_v63 = vld [vmem:[%s10471_s20 + $0xa4] ss:$24 sps:$4 sm:$0xff]  }
 0x1ee   : > { %9020 = vmatpush3.bf16.msra.mxu1 %v1397_v0  ;;  %9021 = vmatprep.mubr.msk.bf16.mxu1 %vm10356_vm0, %v10355_v50  ;;  %v9358_v0 = vld [vmem:[%s10471_s20 + $0xa0] ss:$24 sps:$4 sm:$0xff]   ;;  %s13126_s20 = sld [smem:[#allocation6_spill]] (!%p8289_p5)  ;;  %vm7076_vm0 = vcmask (!%p8289_p5), 64512  }
 0x1ef   : > { %1602 = vmatprep.subr.bf16.mxu1 %v9327_v25  ;;  %v1446_v25 = vld [vmem:[#allocation2 + $0x20] sm:$0xff] }
 0x2c0   : > { %v1360_v3 = vpop.f32.mrb[4].mxu1 }
 0x2c1   : > { %v1367_v5 = vmul.f32 0.125, %v1360_v3  ;;  %v9017_v6 = vpop.f32.mrb[5].mxu1 }
 0x2c2   : > { %v1363_v7 = vpop.f32.mrb[6].mxu1 }
 0x2c3   : > { %v1368_v9 = vmul.f32 0.125, %v1363_v7  ;;  %v9018_v10 = vpop.f32.mrb[7].mxu1  ;;  %v1371_v11 = vadd.f32 %v1369_v4, %v1367_v5  ;;  %v1448_v4 = vld [vmem:[#allocation2 + $0x30] sm:$0xff]  ;;  %v1449_v7 = vld [vmem:[#allocation2 + $0x38] sm:$0xff] }
 0x2c5   : > { %v1374_v12 = vsel %vm1373_vm2, %v1371_v11, -inf  ;;  %v1372_v13 = vadd.f32 %v1370_v8, %v1368_v9 }
 0x2c6   : > { %1375 = vmax.xlane.f32.xlu0 %v1374_v12 }
 0x2c7   : > { %v1377_v14 = vsel %vm1373_vm2, %v1372_v13, -inf }
 0x2c8   : > { %1378 = vmax.xlane.f32.xlu1 %v1377_v14  ;;  %v1445_v14 = vld [vmem:[#allocation2 + $0x18] sm:$0xff] }
 0x353   : > { %v1376_v15 = vpop.xlane.xlu0 %1375 }
 0x354   : > { %v1380_v16 = vsub.f32 %v1371_v11, %v1376_v15 }
 0x355   : > { %v1379_v17 = vpop.xlane.xlu1 %1378 }
 0x356   : > { %v1382_v18 = vmul.f32 1.442695, %v1380_v16  ;;  %v1381_v19 = vsub.f32 %v1372_v13, %v1379_v17  ;;  %v1444_v13 = vld [vmem:[#allocation2 + $0x10] sm:$0xff]  ;;  %v1450_v16 = vld [vmem:[#allocation2 + $0x40] sm:$0xff] }
 0x358   : > { %9361 = vpow2.f32 %v1382_v18  ;;  %v1384_v20 = vmul.f32 1.442695, %v1381_v19  ;;  %v1451_v19 = vld [vmem:[#allocation2 + $0x48] sm:$0xff] }
 0x35a   : > { %9363 = vpow2.f32 %v1384_v20 }
 0x362   : > { %v9362_v21 = vpop.eup %9361 }
 0x363   : > { %v1386_v22 = vsel %vm1373_vm2, %v9362_v21, 0.0 }
 0x364   : > { %v9364_v23 = vpop.eup %9363  ;;  %1387 = vadd.xlane.f32.xlu1 %v1386_v22 }
 0x365   : > { %v1389_v24 = vsel %vm1373_vm2, %v9364_v23, 0.0 }
 0x368   : > { %1390 = vadd.xlane.f32.xlu1 %v1389_v24 }
 0x3f1   : > { %v1388_v26 = vpop.xlane.xlu1 %1387 }
 0x3f2   : > { %9365 = vrcp.f32 %v1388_v26  ;;  %v1447_v26 = vld [vmem:[#allocation2 + $0x28] sm:$0xff] }
 0x3f5   : > { %v1391_v27 = vpop.xlane.xlu1 %1390 }
 0x3f6   : > { %9367 = vrcp.f32 %v1391_v27 }
 0x3fc   : > { %v9366_v28 = vpop.eup %9365 }
 0x3fd   : > { %v1394_v30 = vmul.f32 %v9366_v28, %v9362_v21  ;;  %v1452_v28 = vld [vmem:[#allocation2 + $0x50] sm:$0xff] }
 0x400   : > { %v9368_v29 = vpop.eup %9367 }
 0x401   : > { %v1395_v31 = vmul.f32 %v9368_v29, %v9364_v23 }
 0x403   : > { %v1396_v33 = vpack.c.bf16 %v1395_v31, %v1394_v30  ;;  %v1453_v31 = vld [vmem:[#allocation2 + $0x58] sm:$0xff] }
 0x405   : > { %9022 = vmatmul.mubr.msk.bf16.vlgmr.msra.gmra.mrb[8].mxu1 %vm1373_vm2, %v1396_v33  ;;  %vm7554_vm2 = vcmask (!%p8289_p5), 1040384  }
 0x406   : > { %1603 = vmatpush1.bf16.msra.mxu1 %v9325_v32  ;;  %1634 = vmatprep.mubr.bf16.mxu1 %v10358_v41 }
 0x407   : > { %1604 = vmatprep.subr.bf16.mxu1 %v9330_v34 }
 0x40a   : > { %1605 = vmatpush1.bf16.msra.mxu1 %v9328_v35 }
 0x40b   : > { %1606 = vmatprep.subr.bf16.mxu1 %v9333_v36 }
 0x40e   : > { %1607 = vmatpush1.bf16.msra.mxu1 %v9331_v37  ;;  %v1777_v37 = vld [vmem:[%s13110_s3 + $0x10] sm:$0xff] (!%p8289_p5) }
 0x40f   : > { %1608 = vmatprep.subr.bf16.mxu1 %v9336_v38  ;;  %v1775_v38 = vld [vmem:[%s13110_s3] sm:$0xff] (!%p8289_p5) }
 0x412   : > { %1609 = vmatpush1.bf16.msra.mxu1 %v9334_v39  ;;  %v10359_v39 = vmov (!%p8289_p5), 0  }
 0x413   : > { %1645 = vmatprep.subr.bf16.mxu1 %v9339_v40  ;;  %9370 = vset.pattern.permute.xlu1 (!%p8289_p5), %v10359_v39  ;;  %v1778_v40 = vld [vmem:[%s13110_s3 + $0x18] sm:$0xff] (!%p8289_p5) }
 0x414   : > { %9369 = vset.pattern.permute.xlu0 (!%p8289_p5), %v10359_v39  ;;  %1876 = vperm.xlu1 (!%p8289_p5), %9370, %v1777_v37   ;;  %v9443_v37 = vld [vmem:[%s13117_s10 + $0x244] ss:$24 sps:$4 sm:$0xff] (!%p8289_p5)  }
 0x415   : > { %1866 = vperm.xlu0 (!%p8289_p5), %9369, %v1775_v38   ;;  %v9445_v38 = vld [vmem:[%s13117_s10 + $0x24c] ss:$24 sps:$4 sm:$0xff] (!%p8289_p5)  }
 0x418   : > { %1881 = vperm.xlu1 (!%p8289_p5), %9370, %v1778_v40   ;;  %v9447_v40 = vld [vmem:[%s13117_s10 + $0x240] ss:$24 sps:$4 sm:$0xff] (!%p8289_p5)  }
 0x4d8   : > { %v1435_v42 = vpop.f32.mrb[8].mxu1 }
 0x4d9   : > { %v9023_v43 = vpop.f32.mrb[9].mxu1 }
 0x4da   : > { %v1438_v46 = vpop.f32.mrb[10].mxu1  ;;  %v9373_v43 = vld [vmem:[%s13117_s10 + $0xc] ss:$24 sps:$4 sm:$0xff] (!%p8289_p5)  }
 0x4db   : > { %v1454_v49 = vpack.c.bf16 %v1438_v46, %v1435_v42  ;;  %v9024_v50 = vpop.f32.mrb[11].mxu1  ;;  %v9371_v42 = vld [vmem:[%s13117_s10 + $0x4] ss:$24 sps:$4 sm:$0xff] (!%p8289_p5)   ;;  %v9375_v46 = vld [vmem:[%s13117_s10] ss:$24 sps:$4 sm:$0xff] (!%p8289_p5)  }
 0x4dc   : > { %3648 = vmatprep.subr.bf16.mxu0 (!%p8289_p5), %v9371_v42  ;;  %v9379_v50 = vld [vmem:[%s13117_s10 + $0x3c] ss:$24 sps:$4 sm:$0xff] (!%p8289_p5)  }
 0x4dd   : > { %8286 = vmatmul.mubr.msk.bf16.vlgmr.msra.gmra.mrb[12].mxu1 %vm1319_vm1, %v1454_v49  ;;  %3649 = vmatpush1.bf16.msra.mxu0 (!%p8289_p5), %v9375_v46  ;;  %v9449_v42 = vld [vmem:[%s13117_s10 + $0x274] ss:$24 sps:$4 sm:$0xff] (!%p8289_p5)   ;;  %v1779_v46 = vld [vmem:[%s13111_s4] sm:$0xff] (!%p8289_p5) }
 0x4de   : > { %1646 = vmatpush1.bf16.msra.mxu1 %v9337_v48  ;;  %1677 = vmatprep.mubr.bf16.mxu1 %v10358_v41  ;;  %v9376_v48 = vld [vmem:[%s13117_s10 + $0x8] ss:$24 sps:$4 sm:$0xff] (!%p8289_p5)  }
 0x4df   : > { %1647 = vmatprep.subr.bf16.mxu1 %v9342_v51  ;;  %v9381_v51 = vld [vmem:[%s13117_s10 + $0x30] ss:$24 sps:$4 sm:$0xff] (!%p8289_p5)  }
 0x4e2   : > { %1648 = vmatpush1.bf16.msra.mxu1 %v9340_v52  ;;  %v9382_v52 = vld [vmem:[%s13117_s10 + $0x38] ss:$24 sps:$4 sm:$0xff] (!%p8289_p5)  }
 0x4e3   : > { %1649 = vmatprep.subr.bf16.mxu1 %v9345_v53  ;;  %v9383_v53 = vld [vmem:[%s13117_s10 + $0x64] ss:$24 sps:$4 sm:$0xff] (!%p8289_p5)  }
 0x4e6   : > { %1650 = vmatpush1.bf16.msra.mxu1 %v9343_v54  ;;  %v9385_v54 = vld [vmem:[%s13117_s10 + $0x6c] ss:$24 sps:$4 sm:$0xff] (!%p8289_p5)  }
 0x4e7   : > { %1651 = vmatprep.subr.bf16.mxu1 %v9348_v55  ;;  %v9387_v55 = vld [vmem:[%s13117_s10 + $0x60] ss:$24 sps:$4 sm:$0xff] (!%p8289_p5)  }
 0x4ea   : > { %1652 = vmatpush1.bf16.msra.mxu1 %v9346_v56  ;;  %v9388_v56 = vld [vmem:[%s13117_s10 + $0x68] ss:$24 sps:$4 sm:$0xff] (!%p8289_p5)  }
 0x4eb   : > { %1688 = vmatprep.subr.bf16.mxu1 %v9351_v57  ;;  %v9389_v57 = vld [vmem:[%s13117_s10 + $0x94] ss:$24 sps:$4 sm:$0xff] (!%p8289_p5)  }
 0x4ed   : > { %8287 = vmatmul.mubr.msk.bf16.vlgmr.msra.gmra.mrb[16].mxu1 %vm1319_vm1, %v1454_v49 }
 0x4ee   : > { %1689 = vmatpush1.bf16.msra.mxu1 %v9349_v58  ;;  %1720 = vmatprep.mubr.bf16.mxu1 %v10358_v41  ;;  %v1776_v41 = vld [vmem:[%s13110_s3 + $0x8] sm:$0xff] (!%p8289_p5)  ;;  %v9391_v58 = vld [vmem:[%s13117_s10 + $0x9c] ss:$24 sps:$4 sm:$0xff] (!%p8289_p5)  }
 0x4ef   : > { %1690 = vmatprep.subr.bf16.mxu1 %v9354_v59  ;;  %1871 = vperm.xlu0 (!%p8289_p5), %9369, %v1776_v41   ;;  %v9393_v59 = vld [vmem:[%s13117_s10 + $0x90] ss:$24 sps:$4 sm:$0xff] (!%p8289_p5)  }
 0x4f0   : > { %v9448_v41 = vld [vmem:[%s13117_s10 + $0x248] ss:$24 sps:$4 sm:$0xff] (!%p8289_p5)  }
 0x4f2   : > { %1691 = vmatpush1.bf16.msra.mxu1 %v9352_v60  ;;  %v9394_v60 = vld [vmem:[%s13117_s10 + $0x98] ss:$24 sps:$4 sm:$0xff] (!%p8289_p5)  }
 0x4f3   : > { %1692 = vmatprep.subr.bf16.mxu1 %v9357_v61  ;;  %v9395_v61 = vld [vmem:[%s13117_s10 + $0xc4] ss:$24 sps:$4 sm:$0xff] (!%p8289_p5)  }
 0x4f6   : > { %1693 = vmatpush1.bf16.msra.mxu1 %v9355_v62  ;;  %v9397_v62 = vld [vmem:[%s13117_s10 + $0xcc] ss:$24 sps:$4 sm:$0xff] (!%p8289_p5)  }
 0x4f7   : > { %1694 = vmatprep.subr.bf16.mxu1 %v9360_v63  ;;  %v9399_v63 = vld [vmem:[%s13117_s10 + $0xc0] ss:$24 sps:$4 sm:$0xff] (!%p8289_p5)  }
 0x4fa   : > { %1695 = vmatpush1.bf16.msra.mxu1 %v9358_v0  ;;  %v9400_v0 = vld [vmem:[%s13117_s10 + $0xc8] ss:$24 sps:$4 sm:$0xff] (!%p8289_p5)  }
 0x4fb   : > { %3807 = vmatprep.subr.bf16.mxu1 (!%p8289_p5), %v9373_v43  ;;  %v9451_v43 = vld [vmem:[%s13117_s10 + $0x27c] ss:$24 sps:$4 sm:$0xff] (!%p8289_p5)  }
 0x4fd   : > { %8288 = vmatmul.mubr.msk.bf16.vlgmr.msra.gmra.mrb[20].mxu1 %vm1319_vm1, %v1454_v49  ;;  %v9377_v49 = vld [vmem:[%s13117_s10 + $0x34] ss:$24 sps:$4 sm:$0xff] (!%p8289_p5)   ;;  %vm7099_vm1 = vcmask (!%p8289_p5), 1043456  }
 0x4fe   : > { %3808 = vmatpush1.bf16.msra.mxu1 (!%p8289_p5), %v9376_v48  ;;  %3650 = vmatprep.subr.bf16.mxu0 (!%p8289_p5), %v9377_v49  ;;  %v9453_v48 = vld [vmem:[%s13117_s10 + $0x270] ss:$24 sps:$4 sm:$0xff] (!%p8289_p5)  }
 0x4ff   : > { %3809 = vmatprep.subr.bf16.mxu1 (!%p8289_p5), %v9379_v50  ;;  %3651 = vmatpush1.bf16.msra.mxu0 (!%p8289_p5), %v9381_v51  ;;  %v9454_v49 = vld [vmem:[%s13117_s10 + $0x278] ss:$24 sps:$4 sm:$0xff] (!%p8289_p5)   ;;  %v9455_v50 = vld [vmem:[%s13117_s10 + $0x2a4] ss:$24 sps:$4 sm:$0xff] (!%p8289_p5)  }
 0x500   : > { %3652 = vmatprep.subr.bf16.mxu0 (!%p8289_p5), %v9383_v53  ;;  %v9457_v51 = vld [vmem:[%s13117_s10 + $0x2ac] ss:$24 sps:$4 sm:$0xff] (!%p8289_p5)   ;;  %v9460_v53 = vld [vmem:[%s13117_s10 + $0x2a8] ss:$24 sps:$4 sm:$0xff] (!%p8289_p5)  }
 0x502   : > { %3810 = vmatpush1.bf16.msra.mxu1 (!%p8289_p5), %v9382_v52  ;;  %v9459_v52 = vld [vmem:[%s13117_s10 + $0x2a0] ss:$24 sps:$4 sm:$0xff] (!%p8289_p5)  }
 0x503   : > { %3811 = vmatprep.subr.bf16.mxu1 (!%p8289_p5), %v9385_v54  ;;  %3653 = vmatpush1.bf16.msra.mxu0 (!%p8289_p5), %v9387_v55  ;;  %v9461_v54 = vld [vmem:[%s13117_s10 + $0x2d4] ss:$24 sps:$4 sm:$0xff] (!%p8289_p5)  }
 0x504   : > { %3654 = vmatprep.subr.bf16.mxu0 (!%p8289_p5), %v9389_v57  ;;  %v9463_v55 = vld [vmem:[%s13117_s10 + $0x2dc] ss:$24 sps:$4 sm:$0xff] (!%p8289_p5)   ;;  %v9465_v57 = vld [vmem:[%s13117_s10 + $0x2d0] ss:$24 sps:$4 sm:$0xff] (!%p8289_p5)  }
 0x506   : > { %3812 = vmatpush1.bf16.msra.mxu1 (!%p8289_p5), %v9388_v56  ;;  %v1780_v56 = vld [vmem:[%s13111_s4 + $0x8] sm:$0xff] (!%p8289_p5) }
 0x507   : > { %3813 = vmatprep.subr.bf16.mxu1 (!%p8289_p5), %v9391_v58  ;;  %3655 = vmatpush1.bf16.msra.mxu0 (!%p8289_p5), %v9393_v59  ;;  %v9466_v58 = vld [vmem:[%s13117_s10 + $0x2d8] ss:$24 sps:$4 sm:$0xff] (!%p8289_p5)   ;;  %v9469_v59 = vld [vmem:[%s13117_s10 + $0x304] ss:$24 sps:$4 sm:$0xff] (!%p8289_p5)  }
 0x508   : > { %3656 = vmatprep.subr.bf16.mxu0 (!%p8289_p5), %v9395_v61  ;;  %v10879_v61 = vld [vmem:[%s13116_s9] sm:$0x3f] (!%p8289_p5) }
 0x50a   : > { %3814 = vmatpush1.bf16.msra.mxu1 (!%p8289_p5), %v9394_v60  ;;  %v9472_v60 = vld [vmem:[%s13117_s10 + $0x30c] ss:$24 sps:$4 sm:$0xff] (!%p8289_p5)  }
 0x50b   : > { %3815 = vmatprep.subr.bf16.mxu1 (!%p8289_p5), %v9397_v62  ;;  %3657 = vmatpush1.bf16.msra.mxu0 (!%p8289_p5), %v9399_v63  ;;  %v1829_v63 = vrot.slane (!%p8289_p5), %v10879_v61, %v10595_v47 }
 0x50e   : > { %3816 = vmatpush1.bf16.msra.mxu1 (!%p8289_p5), %v9400_v0 }
 0x5b0   : > { %v1636_v3 = vpop.f32.mrb[12].mxu1 }
 0x5b1   : > { %v1731_v5 = vadd.f32 %v1636_v3, %v1442_v1  ;;  %v1638_v6 = vpop.f32.mrb[13].mxu1  ;;  %v9401_v1 = vld [vmem:[%s13117_s10 + $0xf4] ss:$24 sps:$4 sm:$0xff] (!%p8289_p5)   ;;  %v9405_v3 = vld [vmem:[%s13117_s10 + $0xf0] ss:$24 sps:$4 sm:$0xff] (!%p8289_p5)  }
 0x5b2   : > { %v1732_v8 = vadd.f32 %v1638_v6, %v1443_v2  ;;  %v1640_v9 = vpop.f32.mrb[14].mxu1  ;;  %v9403_v2 = vld [vmem:[%s13117_s10 + $0xfc] ss:$24 sps:$4 sm:$0xff] (!%p8289_p5)   ;;  %3658 = vmatprep.subr.bf16.mxu0 (!%p8289_p5), %v9401_v1  ;;  %v9409_v6 = vld [vmem:[%s13117_s10 + $0x12c] ss:$24 sps:$4 sm:$0xff] (!%p8289_p5)   ;;  %v10883_v1 = vpop.permute.xlu0 (!%p8289_p5), %1866 }
 0x5b3   : > { %1743 = vst [vmem:[#allocation2] sm:$0xff] %v1731_v5  ;;  %v1737_v10 = vadd.f32 %v1640_v9, %v1448_v4  ;;  %v1642_v11 = vpop.f32.mrb[15].mxu1  ;;  %v9406_v4 = vld [vmem:[%s13117_s10 + $0xf8] ss:$24 sps:$4 sm:$0xff] (!%p8289_p5)   ;;  %v9407_v5 = vld [vmem:[%s13117_s10 + $0x124] ss:$24 sps:$4 sm:$0xff] (!%p8289_p5)   ;;  %3817 = vmatprep.subr.bf16.mxu1 (!%p8289_p5), %v9403_v2  ;;  %3659 = vmatpush1.bf16.msra.mxu0 (!%p8289_p5), %v9405_v3  ;;  %v10885_v2 = vpop.permute.xlu1 (!%p8289_p5), %1876 }
 0x5b4   : > { %1744 = vst [vmem:[#allocation2 + $0x8] sm:$0xff] %v1732_v8  ;;  %v1738_v12 = vadd.f32 %v1642_v11, %v1449_v7  ;;  %v9411_v7 = vld [vmem:[%s13117_s10 + $0x120] ss:$24 sps:$4 sm:$0xff] (!%p8289_p5)   ;;  %3818 = vmatpush1.bf16.msra.mxu1 (!%p8289_p5), %v9406_v4  ;;  %3660 = vmatprep.subr.bf16.mxu0 (!%p8289_p5), %v9407_v5  ;;  %v9413_v9 = vld [vmem:[%s13117_s10 + $0x154] ss:$24 sps:$4 sm:$0xff] (!%p8289_p5)  }
 0x5b5   : > { %1749 = vst [vmem:[#allocation2 + $0x30] sm:$0xff] %v1737_v10  ;;  %v9412_v8 = vld [vmem:[%s13117_s10 + $0x128] ss:$24 sps:$4 sm:$0xff] (!%p8289_p5)   ;;  %3819 = vmatprep.subr.bf16.mxu1 (!%p8289_p5), %v9409_v6  ;;  %v9415_v10 = vld [vmem:[%s13117_s10 + $0x15c] ss:$24 sps:$4 sm:$0xff] (!%p8289_p5)  }
 0x5b6   : > { %1750 = vst [vmem:[#allocation2 + $0x38] sm:$0xff] %v1738_v12  ;;  %v1771_v11 = vld [vmem:[%s13109_s2] sm:$0xff] (!%p8289_p5)  ;;  %v9417_v12 = vld [vmem:[%s13117_s10 + $0x150] ss:$24 sps:$4 sm:$0xff] (!%p8289_p5)   ;;  %v1766_v4 = vld [vmem:[%s13126_s20 + $0x38] sm:$0xff] (!%p8289_p5) }
 0x5b7   : > { %3661 = vmatpush1.bf16.msra.mxu0 (!%p8289_p5), %v9411_v7  ;;  %v1760_v3 = vld [vmem:[%s13126_s20 + $0x8] sm:$0xff] (!%p8289_p5)  ;;  %v1759_v5 = vld [vmem:[%s13126_s20] sm:$0xff] (!%p8289_p5)  ;;  %v1765_v6 = vld [vmem:[%s13126_s20 + $0x30] sm:$0xff] (!%p8289_p5) }
 0x5b8   : > { %3820 = vmatpush1.bf16.msra.mxu1 (!%p8289_p5), %v9412_v8  ;;  %3662 = vmatprep.subr.bf16.mxu0 (!%p8289_p5), %v9413_v9 }
 0x5b9   : > { %3821 = vmatprep.subr.bf16.mxu1 (!%p8289_p5), %v9415_v10  ;;  %v1825_v10 = vrot.slane (!%p8289_p5), %v10879_v61, %v10591_v45 }
 0x5ba   : > { %v1808_v9 = vld [vmem:[#allocation2] sm:$0xff] (!%p8289_p5) }
 0x5bb   : > { %3663 = vmatpush1.bf16.msra.mxu0 (!%p8289_p5), %v9417_v12  ;;  %v1809_v62 = vld [vmem:[#allocation2 + $0x8] sm:$0xff] (!%p8289_p5)  ;;  %v10901_v12 = vpop.permute.xlu0 (!%p8289_p5), %1871 }
 0x5bc   : > { %v1853_v7 = vadd.f32 (!%p8289_p5), %v1829_v63, %v1809_v62  ;;  %v9503_v62 = vld [vmem:[%s13117_s10 + $0x420] ss:$24 sps:$4 sm:$0xff] (!%p8289_p5)  }
 0x5bd   : > { %v1815_v0 = vld [vmem:[#allocation2 + $0x38] sm:$0xff] (!%p8289_p5) }
 0x5be   : > { %v1859_v8 = vadd.f32 (!%p8289_p5), %v1829_v63, %v1815_v0  ;;  %v9506_v63 = vld [vmem:[%s13117_s10 + $0x428] ss:$24 sps:$4 sm:$0xff] (!%p8289_p5)   ;;  %v9511_v0 = vld [vmem:[%s13117_s10 + $0x454] ss:$24 sps:$4 sm:$0xff] (!%p8289_p5)  }
 0x5c0   : > { %v1679_v15 = vpop.f32.mrb[16].mxu1 }
 0x5c1   : > { %v1733_v17 = vadd.f32 %v1679_v15, %v1444_v13  ;;  %v1681_v18 = vpop.f32.mrb[17].mxu1  ;;  %v9418_v13 = vld [vmem:[%s13117_s10 + $0x158] ss:$24 sps:$4 sm:$0xff] (!%p8289_p5)   ;;  %v9419_v15 = vld [vmem:[%s13117_s10 + $0x184] ss:$24 sps:$4 sm:$0xff] (!%p8289_p5)  }
 0x5c2   : > { %v1734_v20 = vadd.f32 %v1681_v18, %v1445_v14  ;;  %v1683_v21 = vpop.f32.mrb[18].mxu1  ;;  %v1773_v14 = vld [vmem:[%s13109_s2 + $0x10] sm:$0xff] (!%p8289_p5)  ;;  %v9421_v18 = vld [vmem:[%s13117_s10 + $0x18c] ss:$24 sps:$4 sm:$0xff] (!%p8289_p5)   ;;  %3822 = vmatpush1.bf16.msra.mxu1 (!%p8289_p5), %v9418_v13  ;;  %3664 = vmatprep.subr.bf16.mxu0 (!%p8289_p5), %v9419_v15  ;;  %v1885_v13 = vmul.f32 (!%p8289_p5), %v10883_v1, %v1760_v3  ;;  %v10905_v15 = vpop.permute.xlu1 (!%p8289_p5), %1881 }
 0x5c3   : > { %1745 = vst [vmem:[#allocation2 + $0x10] sm:$0xff] %v1733_v17  ;;  %v1739_v22 = vadd.f32 %v1683_v21, %v1450_v16  ;;  %v1685_v23 = vpop.f32.mrb[19].mxu1  ;;  %v1782_v16 = vsel (!%p8289_p5), %vm1781_vm3, %v1771_v11, 0.0  ;;  %v1772_v17 = vld [vmem:[%s13109_s2 + $0x8] sm:$0xff] (!%p8289_p5)  ;;  %3823 = vmatprep.subr.bf16.mxu1 (!%p8289_p5), %v9421_v18  ;;  %v1814_v11 = vld [vmem:[#allocation2 + $0x30] sm:$0xff] (!%p8289_p5)  ;;  %v1897_v18 = vmul.f32 (!%p8289_p5), %v10885_v2, %v1853_v7 }
 0x5c4   : > { %1746 = vst [vmem:[#allocation2 + $0x18] sm:$0xff] %v1734_v20  ;;  %v1740_v24 = vadd.f32 %v1685_v23, %v1451_v19  ;;  %v9423_v19 = vld [vmem:[%s13117_s10 + $0x180] ss:$24 sps:$4 sm:$0xff] (!%p8289_p5)   ;;  %1783 = vadd.xlane.f32.xlu0 (!%p8289_p5), %v1782_v16  ;;  %v9425_v21 = vld [vmem:[%s13117_s10 + $0x1b4] ss:$24 sps:$4 sm:$0xff] (!%p8289_p5)   ;;  %v1891_v16 = vmul.f32 (!%p8289_p5), %v10901_v12, %v1766_v4 }
 0x5c5   : > { %1751 = vst [vmem:[#allocation2 + $0x40] sm:$0xff] %v1739_v22  ;;  %v9424_v20 = vld [vmem:[%s13117_s10 + $0x188] ss:$24 sps:$4 sm:$0xff] (!%p8289_p5)   ;;  %v1788_v22 = vsel (!%p8289_p5), %vm1781_vm3, %v1773_v14, 0.0  ;;  %v9427_v23 = vld [vmem:[%s13117_s10 + $0x1bc] ss:$24 sps:$4 sm:$0xff] (!%p8289_p5)   ;;  %3665 = vmatpush1.bf16.msra.mxu0 (!%p8289_p5), %v9423_v19  ;;  %v1884_v14 = vmul.f32 (!%p8289_p5), %v10883_v1, %v1759_v5  ;;  %v1903_v19 = vmul.f32 (!%p8289_p5), %v10905_v15, %v1859_v8 }
 0x5c6   : > { %1752 = vst [vmem:[#allocation2 + $0x48] sm:$0xff] %v1740_v24  ;;  %v1785_v24 = vsel (!%p8289_p5), %vm1781_vm3, %v1772_v17, 0.0  ;;  %3824 = vmatpush1.bf16.msra.mxu1 (!%p8289_p5), %v9424_v20  ;;  %3666 = vmatprep.subr.bf16.mxu0 (!%p8289_p5), %v9425_v21  ;;  %v1890_v17 = vmul.f32 (!%p8289_p5), %v10901_v12, %v1765_v6  ;;  %v9467_v20 = vld [vmem:[%s13117_s10 + $0x300] ss:$24 sps:$4 sm:$0xff] (!%p8289_p5)   ;;  %v1852_v21 = vadd.f32 (!%p8289_p5), %v1825_v10, %v1808_v9  ;;  %v9514_v3 = vld [vmem:[%s13117_s10 + $0x45c] ss:$24 sps:$4 sm:$0xff] (!%p8289_p5)  }
 0x5c7   : > { %1786 = vadd.xlane.f32.xlu1 (!%p8289_p5), %v1785_v24  ;;  %3825 = vmatprep.subr.bf16.mxu1 (!%p8289_p5), %v9427_v23  ;;  %v10914_v23 = vpack.c.bf16 (!%p8289_p5), %v1891_v16, %v1885_v13  ;;  %v9470_v24 = vld [vmem:[%s13117_s10 + $0x308] ss:$24 sps:$4 sm:$0xff] (!%p8289_p5)   ;;  %v9512_v5 = vld [vmem:[%s13117_s10 + $0x458] ss:$24 sps:$4 sm:$0xff] (!%p8289_p5)   ;;  %v9517_v6 = vld [vmem:[%s13117_s10 + $0x484] ss:$24 sps:$4 sm:$0xff] (!%p8289_p5)  }
 0x5c8   : > { %1789 = vadd.xlane.f32.xlu0 (!%p8289_p5), %v1788_v22  ;;  %v1858_v22 = vadd.f32 (!%p8289_p5), %v1825_v10, %v1814_v11  ;;  %v9509_v4 = vld [vmem:[%s13117_s10 + $0x450] ss:$24 sps:$4 sm:$0xff] (!%p8289_p5)   ;;  %v9520_v7 = vld [vmem:[%s13117_s10 + $0x48c] ss:$24 sps:$4 sm:$0xff] (!%p8289_p5)   ;;  %v9515_v8 = vld [vmem:[%s13117_s10 + $0x480] ss:$24 sps:$4 sm:$0xff] (!%p8289_p5)  }
 0x5c9   : > { %3680 = vmatprep.mubr.bf16.mxu0 (!%p8289_p5), %v10914_v23  ;;  %3839 = vmatprep.mubr.bf16.mxu1 (!%p8289_p5), %v10914_v23  ;;  %v9518_v9 = vld [vmem:[%s13117_s10 + $0x488] ss:$24 sps:$4 sm:$0xff] (!%p8289_p5)   ;;  %v9523_v10 = vld [vmem:[%s13117_s10 + $0x4b4] ss:$24 sps:$4 sm:$0xff] (!%p8289_p5)   ;;  %v9529_v16 = vld [vmem:[%s13117_s10 + $0x4e4] ss:$24 sps:$4 sm:$0xff] (!%p8289_p5)  }
 0x5ca   : > { %v9526_v11 = vld [vmem:[%s13117_s10 + $0x4bc] ss:$24 sps:$4 sm:$0xff] (!%p8289_p5)   ;;  %v9521_v13 = vld [vmem:[%s13117_s10 + $0x4b0] ss:$24 sps:$4 sm:$0xff] (!%p8289_p5)  }
 0x5d0   : > { %v1722_v27 = vpop.f32.mrb[20].mxu1  ;;  %1758 = sbr.rel (%p8289_p5) target bundleno = 3997 (0xf9d), region = 92 }
 0x5d1   : > { %v1735_v29 = vadd.f32 %v1722_v27, %v1446_v25  ;;  %v1724_v30 = vpop.f32.mrb[21].mxu1  ;;  %v1774_v25 = vld [vmem:[%s13109_s2 + $0x18] sm:$0xff] (!%p8289_p5) }
 0x5d2   : > { %v1736_v32 = vadd.f32 %v1724_v30, %v1447_v26  ;;  %v1726_v33 = vpop.f32.mrb[22].mxu1  ;;  %v9429_v26 = vld [vmem:[%s13117_s10 + $0x1b0] ss:$24 sps:$4 sm:$0xff] (!%p8289_p5)   ;;  %v9433_v30 = vld [vmem:[%s13117_s10 + $0x1ec] ss:$24 sps:$4 sm:$0xff] (!%p8289_p5)  }
 0x5d3   : > { %1747 = vst [vmem:[#allocation2 + $0x20] sm:$0xff] %v1735_v29  ;;  %v1741_v34 = vadd.f32 %v1726_v33, %v1452_v28  ;;  %v1728_v35 = vpop.f32.mrb[23].mxu1  ;;  %v9430_v27 = vld [vmem:[%s13117_s10 + $0x1b8] ss:$24 sps:$4 sm:$0xff] (!%p8289_p5)   ;;  %v9431_v28 = vld [vmem:[%s13117_s10 + $0x1e4] ss:$24 sps:$4 sm:$0xff] (!%p8289_p5)   ;;  %3667 = vmatpush1.bf16.msra.mxu0 (!%p8289_p5), %v9429_v26 }
 0x5d4   : > { %1748 = vst [vmem:[#allocation2 + $0x28] sm:$0xff] %v1736_v32  ;;  %v1742_v36 = vadd.f32 %v1728_v35, %v1453_v31  ;;  %v1791_v29 = vsel (!%p8289_p5), %vm1781_vm3, %v1774_v25, 0.0  ;;  %v9435_v31 = vld [vmem:[%s13117_s10 + $0x1e0] ss:$24 sps:$4 sm:$0xff] (!%p8289_p5)   ;;  %3826 = vmatpush1.bf16.msra.mxu1 (!%p8289_p5), %v9430_v27  ;;  %3668 = vmatprep.subr.bf16.mxu0 (!%p8289_p5), %v9431_v28  ;;  %v9437_v33 = vld [vmem:[%s13117_s10 + $0x214] ss:$24 sps:$4 sm:$0xff] (!%p8289_p5)   ;;  %v10919_v25 = vpack.c.bf16 (!%p8289_p5), %v1890_v17, %v1884_v14 }
 0x5d5   : > { %1753 = vst [vmem:[#allocation2 + $0x50] sm:$0xff] %v1741_v34  ;;  %v9436_v32 = vld [vmem:[%s13117_s10 + $0x1e8] ss:$24 sps:$4 sm:$0xff] (!%p8289_p5)   ;;  %1792 = vadd.xlane.f32.xlu0 (!%p8289_p5), %v1791_v29  ;;  %v9439_v34 = vld [vmem:[%s13117_s10 + $0x21c] ss:$24 sps:$4 sm:$0xff] (!%p8289_p5)   ;;  %3827 = vmatprep.subr.bf16.mxu1 (!%p8289_p5), %v9433_v30  ;;  %v10929_v28 = vpack.c.bf16 (!%p8289_p5), %v1903_v19, %v1897_v18  ;;  %v1896_v30 = vmul.f32 (!%p8289_p5), %v10885_v2, %v1852_v21 }
 0x5d6   : > { %1754 = vst [vmem:[#allocation2 + $0x58] sm:$0xff] %v1742_v36  ;;  %v9441_v35 = vld [vmem:[%s13117_s10 + $0x210] ss:$24 sps:$4 sm:$0xff] (!%p8289_p5)   ;;  %v9475_v26 = vld [vmem:[%s13117_s10 + $0x334] ss:$24 sps:$4 sm:$0xff] (!%p8289_p5)  }
 0x5d7   : > { %3669 = vmatpush1.bf16.msra.mxu0 %v9435_v31  ;;  %v9442_v36 = vld [vmem:[%s13117_s10 + $0x218] ss:$24 sps:$4 sm:$0xff]   ;;  %v9478_v27 = vld [vmem:[%s13117_s10 + $0x33c] ss:$24 sps:$4 sm:$0xff]   ;;  %v1902_v31 = vmul.f32 %v10905_v15, %v1858_v22  ;;  %v9532_v17 = vld [vmem:[%s13117_s10 + $0x4ec] ss:$24 sps:$4 sm:$0xff]  }
 0x5d8   : > { %3828 = vmatpush1.bf16.msra.mxu1 %v9436_v32  ;;  %3670 = vmatprep.subr.bf16.mxu0 %v9437_v33  ;;  %v9473_v29 = vld [vmem:[%s13117_s10 + $0x330] ss:$24 sps:$4 sm:$0xff]   ;;  %v9527_v18 = vld [vmem:[%s13117_s10 + $0x4e0] ss:$24 sps:$4 sm:$0xff]   ;;  %v9538_v21 = vld [vmem:[%s13117_s10 + $0x51c] ss:$24 sps:$4 sm:$0xff]  }
 0x5d9   : > { %3829 = vmatprep.subr.bf16.mxu1 %v9439_v34  ;;  %6924 = vperm.xlu1 %9370, %v1779_v46   ;;  %v9476_v32 = vld [vmem:[%s13117_s10 + $0x338] ss:$24 sps:$4 sm:$0xff]   ;;  %v1768_v33 = vld [vmem:[%s13126_s20 + $0x48] sm:$0xff]  ;;  %v9481_v34 = vld [vmem:[%s13117_s10 + $0x364] ss:$24 sps:$4 sm:$0xff]  }
 0x5da   : > { %v9524_v14 = vld [vmem:[%s13117_s10 + $0x4b8] ss:$24 sps:$4 sm:$0xff]   ;;  %v9530_v19 = vld [vmem:[%s13117_s10 + $0x4e8] ss:$24 sps:$4 sm:$0xff]  }
 0x5db   : > { %3671 = vmatpush1.bf16.msra.mxu0 %v9441_v35  ;;  %v9484_v35 = vld [vmem:[%s13117_s10 + $0x36c] ss:$24 sps:$4 sm:$0xff]   ;;  %v9533_v22 = vld [vmem:[%s13117_s10 + $0x510] ss:$24 sps:$4 sm:$0xff]  }
 0x5dc   : > { %3830 = vmatpush1.bf16.msra.mxu1 %v9442_v36  ;;  %3672 = vmatprep.subr.bf16.mxu0 %v9443_v37  ;;  %v9479_v36 = vld [vmem:[%s13117_s10 + $0x360] ss:$24 sps:$4 sm:$0xff]  }
 0x5dd   : > { %3831 = vmatprep.subr.bf16.mxu1 %v9445_v38  ;;  %v9482_v37 = vld [vmem:[%s13117_s10 + $0x368] ss:$24 sps:$4 sm:$0xff]   ;;  %v1762_v38 = vld [vmem:[%s13126_s20 + $0x18] sm:$0xff] }
 0x5de   : > { %v1887_v46 = vmul.f32 %v10883_v1, %v1762_v38  ;;  %v1811_v38 = vld [vmem:[#allocation2 + $0x18] sm:$0xff] }
 0x5df   : > { %3673 = vmatpush1.bf16.msra.mxu0 %v9447_v40  ;;  %v10961_v40 = vpack.c.bf16 %v1902_v31, %v1896_v30  ;;  %v9542_v30 = vld [vmem:[%s13117_s10 + $0x548] ss:$24 sps:$4 sm:$0xff]   ;;  %v9547_v31 = vld [vmem:[%s13117_s10 + $0x574] ss:$24 sps:$4 sm:$0xff]  }
 0x5e0   : > { %3832 = vmatpush1.bf16.msra.mxu1 %v9448_v41  ;;  %3674 = vmatprep.subr.bf16.mxu0 %v9449_v42  ;;  %v1893_v41 = vmul.f32 %v10901_v12, %v1768_v33  ;;  %v9487_v42 = vld [vmem:[%s13117_s10 + $0x394] ss:$24 sps:$4 sm:$0xff]   ;;  %v9545_v33 = vld [vmem:[%s13117_s10 + $0x570] ss:$24 sps:$4 sm:$0xff]  }
 0x5e1   : > { %3833 = vmatprep.subr.bf16.mxu1 %v9451_v43  ;;  %v9490_v43 = vld [vmem:[%s13117_s10 + $0x39c] ss:$24 sps:$4 sm:$0xff]  }
 0x5e3   : > { %3675 = vmatpush1.bf16.msra.mxu0 %v9453_v48  ;;  %v10973_v48 = vpack.c.bf16 %v1893_v41, %v1887_v46  ;;  %v1817_v41 = vld [vmem:[#allocation2 + $0x48] sm:$0xff] }
 0x5e4   : > { %3834 = vmatpush1.bf16.msra.mxu1 %v9454_v49  ;;  %3676 = vmatprep.subr.bf16.mxu0 %v9455_v50  ;;  %v9485_v49 = vld [vmem:[%s13117_s10 + $0x390] ss:$24 sps:$4 sm:$0xff]  }
 0x5e5   : > { %3835 = vmatprep.subr.bf16.mxu1 %v9457_v51  ;;  %v9488_v50 = vld [vmem:[%s13117_s10 + $0x398] ss:$24 sps:$4 sm:$0xff]   ;;  %v9493_v51 = vld [vmem:[%s13117_s10 + $0x3c4] ss:$24 sps:$4 sm:$0xff]  }
 0x5e7   : > { %3677 = vmatpush1.bf16.msra.mxu0 %v9459_v52  ;;  %v9496_v52 = vld [vmem:[%s13117_s10 + $0x3cc] ss:$24 sps:$4 sm:$0xff]  }
 0x5e8   : > { %3836 = vmatpush1.bf16.msra.mxu1 %v9460_v53  ;;  %3678 = vmatprep.subr.bf16.mxu0 %v9461_v54  ;;  %v9491_v53 = vld [vmem:[%s13117_s10 + $0x3c0] ss:$24 sps:$4 sm:$0xff]  }
 0x5e9   : > { %3837 = vmatprep.subr.bf16.mxu1 %v9463_v55  ;;  %v9494_v54 = vld [vmem:[%s13117_s10 + $0x3c8] ss:$24 sps:$4 sm:$0xff]   ;;  %v9499_v55 = vld [vmem:[%s13117_s10 + $0x3f4] ss:$24 sps:$4 sm:$0xff]  }
 0x5eb   : > { %6929 = vperm.xlu0 %9369, %v1780_v56   ;;  %3679 = vmatpush1.bf16.msra.mxu0 %v9465_v57  ;;  %v9502_v56 = vld [vmem:[%s13117_s10 + $0x3fc] ss:$24 sps:$4 sm:$0xff]   ;;  %v9497_v57 = vld [vmem:[%s13117_s10 + $0x3f0] ss:$24 sps:$4 sm:$0xff]  }
 0x5ec   : > { %3838 = vmatpush1.bf16.msra.mxu1 %v9466_v58  ;;  %3701 = vmatprep.subr.bf16.mxu0 %v9469_v59  ;;  %v9500_v58 = vld [vmem:[%s13117_s10 + $0x3f8] ss:$24 sps:$4 sm:$0xff]   ;;  %v9505_v59 = vld [vmem:[%s13117_s10 + $0x424] ss:$24 sps:$4 sm:$0xff]  }
 0x5ed   : > { %3860 = vmatprep.subr.bf16.mxu1 %v9472_v60  ;;  %v9508_v60 = vld [vmem:[%s13117_s10 + $0x42c] ss:$24 sps:$4 sm:$0xff]  }
 0x5ee   : > { %3681 = vmatmul.mubr.bf16.vlgmr.msra.gmra.mrb[0].mxu0 %v10919_v25 }
 0x5ef   : > { %3840 = vmatmul.mubr.bf16.vlgmr.msra.gmra.mrb[0].mxu1 %v10919_v25  ;;  %3702 = vmatpush1.bf16.msra.mxu0 %v9467_v20  ;;  %v9535_v20 = vld [vmem:[%s13117_s10 + $0x514] ss:$24 sps:$4 sm:$0xff]  }
 0x5f0   : > { %3861 = vmatpush1.bf16.msra.mxu1 %v9470_v24  ;;  %3703 = vmatprep.subr.bf16.mxu0 %v9475_v26  ;;  %v9536_v24 = vld [vmem:[%s13117_s10 + $0x518] ss:$24 sps:$4 sm:$0xff]   ;;  %v9541_v26 = vld [vmem:[%s13117_s10 + $0x544] ss:$24 sps:$4 sm:$0xff]  }
 0x5f1   : > { %3862 = vmatprep.subr.bf16.mxu1 %v9478_v27  ;;  %3690 = vmatprep.mubr.bf16.mxu0 %v10929_v28  ;;  %v9544_v27 = vld [vmem:[%s13117_s10 + $0x54c] ss:$24 sps:$4 sm:$0xff]  }
 0x5f2   : > { %3849 = vmatprep.mubr.bf16.mxu1 %v10929_v28 }
 0x5f3   : > { %3704 = vmatpush1.bf16.msra.mxu0 %v9473_v29  ;;  %v9539_v29 = vld [vmem:[%s13117_s10 + $0x540] ss:$24 sps:$4 sm:$0xff]  }
 0x5f4   : > { %3863 = vmatpush1.bf16.msra.mxu1 %v9476_v32  ;;  %3705 = vmatprep.subr.bf16.mxu0 %v9481_v34  ;;  %v9550_v32 = vld [vmem:[%s13117_s10 + $0x57c] ss:$24 sps:$4 sm:$0xff]   ;;  %v9548_v34 = vld [vmem:[%s13117_s10 + $0x578] ss:$24 sps:$4 sm:$0xff]  }
 0x5f5   : > { %3864 = vmatprep.subr.bf16.mxu1 %v9484_v35  ;;  %v11104_v35 = vsub.s32 3, %v10588_v44 }
 0x5f6   : > { %3691 = vmatmul.mubr.bf16.gmra.mrb[4].mxu0 %v10961_v40 }
 0x5f7   : > { %3850 = vmatmul.mubr.bf16.gmra.mrb[4].mxu1 %v10961_v40  ;;  %3706 = vmatpush1.bf16.msra.mxu0 %v9479_v36  ;;  %v9553_v36 = vld [vmem:[%s13117_s10 + $0x5a4] ss:$24 sps:$4 sm:$0xff]   ;;  %v1837_v46 = vrot.slane %v10879_v61, %v11104_v35 }
 0x5f8   : > { %3865 = vmatpush1.bf16.msra.mxu1 %v9482_v37  ;;  %3733 = vmatprep.mubr.bf16.mxu0 %v10973_v48  ;;  %v9556_v37 = vld [vmem:[%s13117_s10 + $0x5ac] ss:$24 sps:$4 sm:$0xff]  }
 0x5f9   : > { %3892 = vmatprep.mubr.bf16.mxu1 %v10973_v48  ;;  %3707 = vmatprep.subr.bf16.mxu0 %v9487_v42  ;;  %v9551_v42 = vld [vmem:[%s13117_s10 + $0x5a0] ss:$24 sps:$4 sm:$0xff]  }
 0x5fa   : > { %3866 = vmatprep.subr.bf16.mxu1 %v9490_v43  ;;  %v9554_v43 = vld [vmem:[%s13117_s10 + $0x5a8] ss:$24 sps:$4 sm:$0xff]  }
 0x5fb   : > { %3708 = vmatpush1.bf16.msra.mxu0 %v9485_v49  ;;  %v9559_v49 = vld [vmem:[%s13117_s10 + $0x5d4] ss:$24 sps:$4 sm:$0xff]  }
 0x5fc   : > { %3867 = vmatpush1.bf16.msra.mxu1 %v9488_v50  ;;  %3709 = vmatprep.subr.bf16.mxu0 %v9493_v51  ;;  %v9562_v50 = vld [vmem:[%s13117_s10 + $0x5dc] ss:$24 sps:$4 sm:$0xff]   ;;  %v1767_v51 = vld [vmem:[%s13126_s20 + $0x40] sm:$0xff] }
 0x5fd   : > { %3868 = vmatprep.subr.bf16.mxu1 %v9496_v52  ;;  %v11130_v52 = vsub.s32 2, %v10588_v44 }
 0x5ff   : > { %3710 = vmatpush1.bf16.msra.mxu0 %v9491_v53  ;;  %v9557_v53 = vld [vmem:[%s13117_s10 + $0x5d0] ss:$24 sps:$4 sm:$0xff]  }
 0x600   : > { %3869 = vmatpush1.bf16.msra.mxu1 %v9494_v54  ;;  %3711 = vmatprep.subr.bf16.mxu0 %v9499_v55  ;;  %v9560_v54 = vld [vmem:[%s13117_s10 + $0x5d8] ss:$24 sps:$4 sm:$0xff]  }
 0x601   : > { %3870 = vmatprep.subr.bf16.mxu1 %v9502_v56  ;;  %v1761_v55 = vld [vmem:[%s13126_s20 + $0x10] sm:$0xff]  ;;  %v1855_v56 = vadd.f32 %v1837_v46, %v1811_v38  ;;  %v9592_v38 = vld [vmem:[%s13117_s10 + $0x6cc] ss:$24 sps:$4 sm:$0xff]  }
 0x603   : > { %3712 = vmatpush1.bf16.msra.mxu0 %v9497_v57  ;;  %v1861_v57 = vadd.f32 %v1837_v46, %v1817_v41  ;;  %v9587_v41 = vld [vmem:[%s13117_s10 + $0x6c0] ss:$24 sps:$4 sm:$0xff]   ;;  %v9598_v46 = vld [vmem:[%s13117_s10 + $0x6fc] ss:$24 sps:$4 sm:$0xff]  }
 0x604   : > { %3871 = vmatpush1.bf16.msra.mxu1 %v9500_v58  ;;  %3713 = vmatprep.subr.bf16.mxu0 %v9505_v59  ;;  %v9565_v58 = vld [vmem:[%s13117_s10 + $0x604] ss:$24 sps:$4 sm:$0xff]  }
 0x605   : > { %3872 = vmatprep.subr.bf16.mxu1 %v9508_v60  ;;  %v9568_v59 = vld [vmem:[%s13117_s10 + $0x60c] ss:$24 sps:$4 sm:$0xff]   ;;  %v1892_v60 = vmul.f32 %v10901_v12, %v1767_v51 }
 0x606   : > { %v9601_v51 = vld [vmem:[%s13117_s10 + $0x724] ss:$24 sps:$4 sm:$0xff]  }
 0x607   : > { %3714 = vmatpush1.bf16.msra.mxu0 %v9503_v62  ;;  %v1810_v62 = vld [vmem:[#allocation2 + $0x10] sm:$0xff] }
 0x608   : > { %3873 = vmatpush1.bf16.msra.mxu1 %v9506_v63  ;;  %3715 = vmatprep.subr.bf16.mxu0 %v9511_v0  ;;  %v1816_v63 = vld [vmem:[#allocation2 + $0x40] sm:$0xff]  ;;  %v1833_v0 = vrot.slane %v10879_v61, %v11130_v52  ;;  %v9571_v61 = vld [vmem:[%s13117_s10 + $0x634] ss:$24 sps:$4 sm:$0xff]  }
 0x609   : > { %3874 = vmatprep.subr.bf16.mxu1 %v9514_v3  ;;  %v9563_v3 = vld [vmem:[%s13117_s10 + $0x600] ss:$24 sps:$4 sm:$0xff]  }
 0x60b   : > { %3716 = vmatpush1.bf16.msra.mxu0 %v9509_v4  ;;  %v1899_v4 = vmul.f32 %v10885_v2, %v1855_v56  ;;  %v9607_v56 = vld [vmem:[%s13117_s10 + $0x754] ss:$24 sps:$4 sm:$0xff]  }
 0x60c   : > { %3875 = vmatpush1.bf16.msra.mxu1 %v9512_v5  ;;  %3717 = vmatprep.subr.bf16.mxu0 %v9517_v6  ;;  %v1905_v5 = vmul.f32 %v10905_v15, %v1861_v57  ;;  %v1886_v6 = vmul.f32 %v10883_v1, %v1761_v55  ;;  %v9602_v55 = vld [vmem:[%s13117_s10 + $0x728] ss:$24 sps:$4 sm:$0xff]   ;;  %v9610_v57 = vld [vmem:[%s13117_s10 + $0x75c] ss:$24 sps:$4 sm:$0xff]  }
 0x60d   : > { %3876 = vmatprep.subr.bf16.mxu1 %v9520_v7  ;;  %v9566_v7 = vld [vmem:[%s13117_s10 + $0x608] ss:$24 sps:$4 sm:$0xff]  }
 0x60f   : > { %3718 = vmatpush1.bf16.msra.mxu0 %v9515_v8  ;;  %v9574_v8 = vld [vmem:[%s13117_s10 + $0x63c] ss:$24 sps:$4 sm:$0xff]  }
 0x610   : > { %3877 = vmatpush1.bf16.msra.mxu1 %v9518_v9  ;;  %3719 = vmatprep.subr.bf16.mxu0 %v9523_v10  ;;  %v11165_v9 = vpack.c.bf16 %v1892_v60, %v1886_v6  ;;  %v1854_v10 = vadd.f32 %v1833_v0, %v1810_v62  ;;  %v9613_v60 = vld [vmem:[%s13117_s10 + $0x784] ss:$24 sps:$4 sm:$0xff]   ;;  %v9620_v6 = vld [vmem:[%s13117_s10 + $0x7b8] ss:$24 sps:$4 sm:$0xff]  }
 0x611   : > { %3878 = vmatprep.subr.bf16.mxu1 %v9526_v11  ;;  %v1860_v11 = vadd.f32 %v1833_v0, %v1816_v63  ;;  %v9616_v62 = vld [vmem:[%s13117_s10 + $0x78c] ss:$24 sps:$4 sm:$0xff]   ;;  %v9611_v63 = vld [vmem:[%s13117_s10 + $0x780] ss:$24 sps:$4 sm:$0xff]  }
 0x612   : > { %v9614_v0 = vld [vmem:[%s13117_s10 + $0x788] ss:$24 sps:$4 sm:$0xff]  }
 0x613   : > { %3720 = vmatpush1.bf16.msra.mxu0 %v9521_v13  ;;  %v1770_v13 = vld [vmem:[%s13126_s20 + $0x58] sm:$0xff] }
 0x614   : > { %3879 = vmatpush1.bf16.msra.mxu1 %v9524_v14  ;;  %3721 = vmatprep.subr.bf16.mxu0 %v9529_v16  ;;  %v11170_v14 = vpack.c.bf16 %v1905_v5, %v1899_v4  ;;  %v9569_v16 = vld [vmem:[%s13117_s10 + $0x630] ss:$24 sps:$4 sm:$0xff]   ;;  %v9622_v4 = vld [vmem:[%s13117_s10 + $0x7bc] ss:$24 sps:$4 sm:$0xff]  }
 0x615   : > { %3880 = vmatprep.subr.bf16.mxu1 %v9532_v17  ;;  %v9572_v17 = vld [vmem:[%s13117_s10 + $0x638] ss:$24 sps:$4 sm:$0xff]  }
 0x616   : > { %v9617_v5 = vld [vmem:[%s13117_s10 + $0x7b0] ss:$24 sps:$4 sm:$0xff]  }
 0x617   : > { %3722 = vmatpush1.bf16.msra.mxu0 %v9527_v18  ;;  %v9577_v18 = vld [vmem:[%s13117_s10 + $0x664] ss:$24 sps:$4 sm:$0xff]  }
 0x618   : > { %3881 = vmatpush1.bf16.msra.mxu1 %v9530_v19  ;;  %3723 = vmatprep.subr.bf16.mxu0 %v9535_v20  ;;  %v1898_v19 = vmul.f32 %v10885_v2, %v1854_v10  ;;  %v1904_v20 = vmul.f32 %v10905_v15, %v1860_v11  ;;  %v9626_v10 = vld [vmem:[%s13117_s10 + $0x7e8] ss:$24 sps:$4 sm:$0xff]   ;;  %v9631_v11 = vld [vmem:[%s13117_s10 + $0x814] ss:$24 sps:$4 sm:$0xff]  }
 0x619   : > { %3882 = vmatprep.subr.bf16.mxu1 %v9538_v21  ;;  %v9580_v21 = vld [vmem:[%s13117_s10 + $0x66c] ss:$24 sps:$4 sm:$0xff]  }
 0x61b   : > { %3724 = vmatpush1.bf16.msra.mxu0 %v9533_v22  ;;  %v1764_v22 = vld [vmem:[%s13126_s20 + $0x28] sm:$0xff] }
 0x61c   : > { %3883 = vmatpush1.bf16.msra.mxu1 %v9536_v24  ;;  %3725 = vmatprep.subr.bf16.mxu0 %v9541_v26  ;;  %v9575_v24 = vld [vmem:[%s13117_s10 + $0x660] ss:$24 sps:$4 sm:$0xff]   ;;  %v1895_v26 = vmul.f32 %v10901_v12, %v1770_v13  ;;  %v9634_v13 = vld [vmem:[%s13117_s10 + $0x81c] ss:$24 sps:$4 sm:$0xff]  }
 0x61d   : > { %3884 = vmatprep.subr.bf16.mxu1 %v9544_v27  ;;  %v9578_v27 = vld [vmem:[%s13117_s10 + $0x668] ss:$24 sps:$4 sm:$0xff]  }
 0x61f   : > { %3726 = vmatpush1.bf16.msra.mxu0 %v9539_v29  ;;  %v1889_v29 = vmul.f32 %v10883_v1, %v1764_v22  ;;  %v9643_v22 = vld [vmem:[%s13117_s10 + $0x874] ss:$24 sps:$4 sm:$0xff]  }
 0x620   : > { %3885 = vmatpush1.bf16.msra.mxu1 %v9542_v30  ;;  %3727 = vmatprep.subr.bf16.mxu0 %v9547_v31  ;;  %v9583_v30 = vld [vmem:[%s13117_s10 + $0x694] ss:$24 sps:$4 sm:$0xff]  }
 0x621   : > { %3886 = vmatprep.subr.bf16.mxu1 %v9550_v32  ;;  %v9586_v31 = vld [vmem:[%s13117_s10 + $0x69c] ss:$24 sps:$4 sm:$0xff]   ;;  %v11207_v32 = vpack.c.bf16 %v1904_v20, %v1898_v19  ;;  %v9640_v19 = vld [vmem:[%s13117_s10 + $0x84c] ss:$24 sps:$4 sm:$0xff]   ;;  %v9635_v20 = vld [vmem:[%s13117_s10 + $0x840] ss:$24 sps:$4 sm:$0xff]  }
 0x623   : > { %3728 = vmatpush1.bf16.msra.mxu0 %v9545_v33  ;;  %v11209_v33 = vpack.c.bf16 %v1895_v26, %v1889_v29  ;;  %v9641_v26 = vld [vmem:[%s13117_s10 + $0x870] ss:$24 sps:$4 sm:$0xff]  }
 0x624   : > { %3887 = vmatpush1.bf16.msra.mxu1 %v9548_v34  ;;  %3729 = vmatprep.subr.bf16.mxu0 %v9553_v36  ;;  %v9581_v34 = vld [vmem:[%s13117_s10 + $0x690] ss:$24 sps:$4 sm:$0xff]  }
 0x625   : > { %3888 = vmatprep.subr.bf16.mxu1 %v9556_v37  ;;  %v9584_v36 = vld [vmem:[%s13117_s10 + $0x698] ss:$24 sps:$4 sm:$0xff]   ;;  %v9589_v37 = vld [vmem:[%s13117_s10 + $0x6c4] ss:$24 sps:$4 sm:$0xff]  }
 0x626   : > { %v9644_v29 = vld [vmem:[%s13117_s10 + $0x878] ss:$24 sps:$4 sm:$0xff]  }
 0x627   : > { %3730 = vmatpush1.bf16.msra.mxu0 %v9551_v42  ;;  %v9590_v42 = vld [vmem:[%s13117_s10 + $0x6c8] ss:$24 sps:$4 sm:$0xff]  }
 0x628   : > { %3889 = vmatpush1.bf16.msra.mxu1 %v9554_v43  ;;  %3731 = vmatprep.subr.bf16.mxu0 %v9559_v49  ;;  %v9595_v43 = vld [vmem:[%s13117_s10 + $0x6f4] ss:$24 sps:$4 sm:$0xff]   ;;  %v9593_v49 = vld [vmem:[%s13117_s10 + $0x6f0] ss:$24 sps:$4 sm:$0xff]  }
 0x629   : > { %3890 = vmatprep.subr.bf16.mxu1 %v9562_v50  ;;  %v9596_v50 = vld [vmem:[%s13117_s10 + $0x6f8] ss:$24 sps:$4 sm:$0xff]  }
 0x62b   : > { %3732 = vmatpush1.bf16.msra.mxu0 %v9557_v53  ;;  %v9604_v53 = vld [vmem:[%s13117_s10 + $0x72c] ss:$24 sps:$4 sm:$0xff]  }
 0x62c   : > { %3891 = vmatpush1.bf16.msra.mxu1 %v9560_v54  ;;  %3754 = vmatprep.subr.bf16.mxu0 %v9565_v58  ;;  %v9599_v54 = vld [vmem:[%s13117_s10 + $0x720] ss:$24 sps:$4 sm:$0xff]   ;;  %v9605_v58 = vld [vmem:[%s13117_s10 + $0x750] ss:$24 sps:$4 sm:$0xff]  }
 0x62d   : > { %3913 = vmatprep.subr.bf16.mxu1 %v9568_v59  ;;  %v9608_v59 = vld [vmem:[%s13117_s10 + $0x758] ss:$24 sps:$4 sm:$0xff]  }
 0x62e   : > { %3734 = vmatmul.mubr.bf16.vlgmr.msra.gmra.mrb[0].mxu0 %v11165_v9 }
 0x62f   : > { %3893 = vmatmul.mubr.bf16.vlgmr.msra.gmra.mrb[0].mxu1 %v11165_v9  ;;  %3743 = vmatprep.mubr.bf16.mxu0 %v11170_v14 }
 0x630   : > { %3755 = vmatpush1.bf16.msra.mxu0 %v9563_v3  ;;  %3902 = vmatprep.mubr.bf16.mxu1 %v11170_v14  ;;  %v9619_v3 = vld [vmem:[%s13117_s10 + $0x7b4] ss:$24 sps:$4 sm:$0xff]  }
 0x631   : > { %3914 = vmatpush1.bf16.msra.mxu1 %v9566_v7  ;;  %3756 = vmatprep.subr.bf16.mxu0 %v9571_v61  ;;  %v9625_v7 = vld [vmem:[%s13117_s10 + $0x7e4] ss:$24 sps:$4 sm:$0xff]  }
 0x632   : > { %3915 = vmatprep.subr.bf16.mxu1 %v9574_v8  ;;  %v9628_v61 = vld [vmem:[%s13117_s10 + $0x7ec] ss:$24 sps:$4 sm:$0xff]   ;;  %v9623_v8 = vld [vmem:[%s13117_s10 + $0x7e0] ss:$24 sps:$4 sm:$0xff]  }
 0x634   : > { %3757 = vmatpush1.bf16.msra.mxu0 %v9569_v16  ;;  %v9629_v16 = vld [vmem:[%s13117_s10 + $0x810] ss:$24 sps:$4 sm:$0xff]  }
 0x635   : > { %3916 = vmatpush1.bf16.msra.mxu1 %v9572_v17  ;;  %3758 = vmatprep.subr.bf16.mxu0 %v9577_v18  ;;  %v9632_v17 = vld [vmem:[%s13117_s10 + $0x818] ss:$24 sps:$4 sm:$0xff]   ;;  %v9637_v18 = vld [vmem:[%s13117_s10 + $0x844] ss:$24 sps:$4 sm:$0xff]  }
 0x636   : > { %3917 = vmatprep.subr.bf16.mxu1 %v9580_v21  ;;  %3744 = vmatmul.mubr.bf16.gmra.mrb[4].mxu0 %v11207_v32  ;;  %v9638_v21 = vld [vmem:[%s13117_s10 + $0x848] ss:$24 sps:$4 sm:$0xff]  }
 0x637   : > { %3903 = vmatmul.mubr.bf16.gmra.mrb[4].mxu1 %v11207_v32  ;;  %3786 = vmatprep.mubr.bf16.mxu0 %v11209_v33 }
 0x638   : > { %3759 = vmatpush1.bf16.msra.mxu0 %v9575_v24  ;;  %3945 = vmatprep.mubr.bf16.mxu1 %v11209_v33  ;;  %v9646_v24 = vld [vmem:[%s13117_s10 + $0x87c] ss:$24 sps:$4 sm:$0xff]  }
 0x639   : > { %3918 = vmatpush1.bf16.msra.mxu1 %v9578_v27  ;;  %3760 = vmatprep.subr.bf16.mxu0 %v9583_v30  ;;  %v11339_v27 = vsub.s32 5, %v10588_v44  ;;  %v9649_v30 = vld [vmem:[%s13117_s10 + $0x8a4] ss:$24 sps:$4 sm:$0xff]  }
 0x63a   : > { %3919 = vmatprep.subr.bf16.mxu1 %v9586_v31  ;;  %v9652_v31 = vld [vmem:[%s13117_s10 + $0x8ac] ss:$24 sps:$4 sm:$0xff]  }
 0x63c   : > { %3761 = vmatpush1.bf16.msra.mxu0 %v9581_v34  ;;  %v1813_v34 = vld [vmem:[#allocation2 + $0x28] sm:$0xff] }
 0x63d   : > { %3920 = vmatpush1.bf16.msra.mxu1 %v9584_v36  ;;  %3762 = vmatprep.subr.bf16.mxu0 %v9589_v37  ;;  %v1819_v36 = vld [vmem:[#allocation2 + $0x58] sm:$0xff] }
 0x63e   : > { %3921 = vmatprep.subr.bf16.mxu1 %v9592_v38  ;;  %v9647_v37 = vld [vmem:[%s13117_s10 + $0x8a0] ss:$24 sps:$4 sm:$0xff]  }
 0x63f   : > { %v10299_v38 = vld [vmem:[%s13116_s9] sm:$0x3f] }
 0x640   : > { %3763 = vmatpush1.bf16.msra.mxu0 %v9587_v41  ;;  %v1845_v41 = vrot.slane %v10299_v38, %v11339_v27 }
 0x641   : > { %3922 = vmatpush1.bf16.msra.mxu1 %v9590_v42  ;;  %3764 = vmatprep.subr.bf16.mxu0 %v9595_v43  ;;  %v9650_v42 = vld [vmem:[%s13117_s10 + $0x8a8] ss:$24 sps:$4 sm:$0xff]   ;;  %v9655_v43 = vld [vmem:[%s13117_s10 + $0x8d4] ss:$24 sps:$4 sm:$0xff]  }
 0x642   : > { %3923 = vmatprep.subr.bf16.mxu1 %v9598_v46  ;;  %v9658_v46 = vld [vmem:[%s13117_s10 + $0x8dc] ss:$24 sps:$4 sm:$0xff]  }
 0x644   : > { %3765 = vmatpush1.bf16.msra.mxu0 %v9593_v49  ;;  %v1769_v49 = vld [vmem:[%s13126_s20 + $0x50] sm:$0xff] }
 0x645   : > { %3924 = vmatpush1.bf16.msra.mxu1 %v9596_v50  ;;  %3766 = vmatprep.subr.bf16.mxu0 %v9601_v51  ;;  %v11370_v50 = vsub.s32 4, %v10588_v44  ;;  %v9653_v51 = vld [vmem:[%s13117_s10 + $0x8d0] ss:$24 sps:$4 sm:$0xff]   ;;  %v9661_v44 = vld [vmem:[%s13117_s10 + $0x14] ss:$24 sps:$4 sm:$0xff]  }
 0x646   : > { %3925 = vmatprep.subr.bf16.mxu1 %v9604_v53  ;;  %v1763_v53 = vld [vmem:[%s13126_s20 + $0x20] sm:$0xff] }
 0x648   : > { %3767 = vmatpush1.bf16.msra.mxu0 %v9599_v54  ;;  %v1857_v54 = vadd.f32 %v1845_v41, %v1813_v34  ;;  %v9683_v34 = vld [vmem:[%s13117_s10 + $0x190] ss:$24 sps:$4 sm:$0xff]  }
 0x649   : > { %3926 = vmatpush1.bf16.msra.mxu1 %v9602_v55  ;;  %3768 = vmatprep.subr.bf16.mxu0 %v9607_v56  ;;  %v1863_v55 = vadd.f32 %v1845_v41, %v1819_v36  ;;  %v9656_v56 = vld [vmem:[%s13117_s10 + $0x8d8] ss:$24 sps:$4 sm:$0xff]   ;;  %v9688_v36 = vld [vmem:[%s13117_s10 + $0x1c4] ss:$24 sps:$4 sm:$0xff]  }
 0x64a   : > { %3927 = vmatprep.subr.bf16.mxu1 %v9610_v57  ;;  %v1894_v57 = vmul.f32 %v10901_v12, %v1769_v49  ;;  %v9689_v41 = vld [vmem:[%s13117_s10 + $0x1f0] ss:$24 sps:$4 sm:$0xff]  }
 0x64b   : > { %v9695_v49 = vld [vmem:[%s13117_s10 + $0x250] ss:$24 sps:$4 sm:$0xff]  }
 0x64c   : > { %3769 = vmatpush1.bf16.msra.mxu0 %v9605_v58  ;;  %v1812_v58 = vld [vmem:[#allocation2 + $0x20] sm:$0xff] }
 0x64d   : > { %3928 = vmatpush1.bf16.msra.mxu1 %v9608_v59  ;;  %3770 = vmatprep.subr.bf16.mxu0 %v9613_v60  ;;  %v1818_v59 = vld [vmem:[#allocation2 + $0x50] sm:$0xff]  ;;  %v1841_v60 = vrot.slane %v10299_v38, %v11370_v50 }
 0x64e   : > { %3929 = vmatprep.subr.bf16.mxu1 %v9616_v62  ;;  %v1901_v62 = vmul.f32 %v10885_v2, %v1857_v54  ;;  %v9691_v38 = vld [vmem:[%s13117_s10 + $0x1f4] ss:$24 sps:$4 sm:$0xff]  }
 0x64f   : > { %v9703_v54 = vld [vmem:[%s13117_s10 + $0x2b4] ss:$24 sps:$4 sm:$0xff]  }
 0x650   : > { %3771 = vmatpush1.bf16.msra.mxu0 %v9611_v63  ;;  %v1907_v63 = vmul.f32 %v10905_v15, %v1863_v55  ;;  %v9701_v55 = vld [vmem:[%s13117_s10 + $0x2b0] ss:$24 sps:$4 sm:$0xff]  }
 0x651   : > { %3930 = vmatpush1.bf16.msra.mxu1 %v9614_v0  ;;  %3772 = vmatprep.subr.bf16.mxu0 %v9619_v3  ;;  %v1888_v0 = vmul.f32 %v10883_v1, %v1763_v53  ;;  %v9659_v3 = vld [vmem:[%s13117_s10 + $0x10] ss:$24 sps:$4 sm:$0xff]   ;;  %v9698_v53 = vld [vmem:[%s13117_s10 + $0x280] ss:$24 sps:$4 sm:$0xff]  }
 0x652   : > { %3931 = vmatprep.subr.bf16.mxu1 %v9622_v4  ;;  %v9664_v4 = vld [vmem:[%s13117_s10 + $0x44] ss:$24 sps:$4 sm:$0xff]  }
 0x654   : > { %3773 = vmatpush1.bf16.msra.mxu0 %v9617_v5  ;;  %v11395_v5 = vpack.c.bf16 %v1894_v57, %v1888_v0  ;;  %v9709_v57 = vld [vmem:[%s13117_s10 + $0x314] ss:$24 sps:$4 sm:$0xff]  }
 0x655   : > { %3932 = vmatpush1.bf16.msra.mxu1 %v9620_v6  ;;  %3774 = vmatprep.subr.bf16.mxu0 %v9625_v7  ;;  %v1856_v6 = vadd.f32 %v1841_v60, %v1812_v58  ;;  %v1862_v7 = vadd.f32 %v1841_v60, %v1818_v59  ;;  %v9707_v58 = vld [vmem:[%s13117_s10 + $0x310] ss:$24 sps:$4 sm:$0xff]   ;;  %v9712_v59 = vld [vmem:[%s13117_s10 + $0x344] ss:$24 sps:$4 sm:$0xff]   ;;  %v9710_v60 = vld [vmem:[%s13117_s10 + $0x340] ss:$24 sps:$4 sm:$0xff]  }
 0x656   : > { %3933 = vmatprep.subr.bf16.mxu1 %v9628_v61  ;;  %v11397_v61 = vpack.c.bf16 %v1907_v63, %v1901_v62  ;;  %v9715_v62 = vld [vmem:[%s13117_s10 + $0x374] ss:$24 sps:$4 sm:$0xff]   ;;  %v9713_v63 = vld [vmem:[%s13117_s10 + $0x370] ss:$24 sps:$4 sm:$0xff]  }
 0x657   : > { %v9721_v0 = vld [vmem:[%s13117_s10 + $0x3d4] ss:$24 sps:$4 sm:$0xff]  }
 0x658   : > { %3775 = vmatpush1.bf16.msra.mxu0 %v9623_v8  ;;  %v9662_v8 = vld [vmem:[%s13117_s10 + $0x40] ss:$24 sps:$4 sm:$0xff]  }
 0x659   : > { %3934 = vmatpush1.bf16.msra.mxu1 %v9626_v10  ;;  %3776 = vmatprep.subr.bf16.mxu0 %v9631_v11  ;;  %v1900_v10 = vmul.f32 %v10885_v2, %v1856_v6  ;;  %v1906_v11 = vmul.f32 %v10905_v15, %v1862_v7  ;;  %v9725_v6 = vld [vmem:[%s13117_s10 + $0x430] ss:$24 sps:$4 sm:$0xff]   ;;  %v9730_v7 = vld [vmem:[%s13117_s10 + $0x464] ss:$24 sps:$4 sm:$0xff]  }
 0x65a   : > { %3935 = vmatprep.subr.bf16.mxu1 %v9634_v13  ;;  %v9667_v13 = vld [vmem:[%s13117_s10 + $0x74] ss:$24 sps:$4 sm:$0xff]  }
 0x65c   : > { %3777 = vmatpush1.bf16.msra.mxu0 %v9629_v16  ;;  %v9665_v16 = vld [vmem:[%s13117_s10 + $0x70] ss:$24 sps:$4 sm:$0xff]  }
 0x65d   : > { %3936 = vmatpush1.bf16.msra.mxu1 %v9632_v17  ;;  %3778 = vmatprep.subr.bf16.mxu0 %v9637_v18  ;;  %v9670_v17 = vld [vmem:[%s13117_s10 + $0xa4] ss:$24 sps:$4 sm:$0xff]   ;;  %v11417_v18 = vpack.c.bf16 %v1906_v11, %v1900_v10  ;;  %v9733_v10 = vld [vmem:[%s13117_s10 + $0x494] ss:$24 sps:$4 sm:$0xff]   ;;  %v9731_v11 = vld [vmem:[%s13117_s10 + $0x490] ss:$24 sps:$4 sm:$0xff]  }
 0x65e   : > { %3937 = vmatprep.subr.bf16.mxu1 %v9640_v19  ;;  %v9668_v19 = vld [vmem:[%s13117_s10 + $0xa0] ss:$24 sps:$4 sm:$0xff]  }
 0x660   : > { %3779 = vmatpush1.bf16.msra.mxu0 %v9635_v20  ;;  %v9673_v20 = vld [vmem:[%s13117_s10 + $0xd4] ss:$24 sps:$4 sm:$0xff]  }
 0x661   : > { %3938 = vmatpush1.bf16.msra.mxu1 %v9638_v21  ;;  %3780 = vmatprep.subr.bf16.mxu0 %v9643_v22  ;;  %v9671_v21 = vld [vmem:[%s13117_s10 + $0xd0] ss:$24 sps:$4 sm:$0xff]   ;;  %v9674_v22 = vld [vmem:[%s13117_s10 + $0x100] ss:$24 sps:$4 sm:$0xff]  }
 0x662   : > { %3939 = vmatprep.subr.bf16.mxu1 %v9646_v24  ;;  %v9679_v24 = vld [vmem:[%s13117_s10 + $0x134] ss:$24 sps:$4 sm:$0xff]  }
 0x664   : > { %3781 = vmatpush1.bf16.msra.mxu0 %v9641_v26  ;;  %v9677_v26 = vld [vmem:[%s13117_s10 + $0x130] ss:$24 sps:$4 sm:$0xff]  }
 0x665   : > { %3940 = vmatpush1.bf16.msra.mxu1 %v9644_v29  ;;  %3782 = vmatprep.subr.bf16.mxu0 %v9649_v30  ;;  %v9682_v29 = vld [vmem:[%s13117_s10 + $0x164] ss:$24 sps:$4 sm:$0xff]   ;;  %v9680_v30 = vld [vmem:[%s13117_s10 + $0x160] ss:$24 sps:$4 sm:$0xff]  }
 0x666   : > { %3941 = vmatprep.subr.bf16.mxu1 %v9652_v31  ;;  %v9685_v31 = vld [vmem:[%s13117_s10 + $0x194] ss:$24 sps:$4 sm:$0xff]  }
 0x668   : > { %3783 = vmatpush1.bf16.msra.mxu0 %v9647_v37  ;;  %v9686_v37 = vld [vmem:[%s13117_s10 + $0x1c0] ss:$24 sps:$4 sm:$0xff]  }
 0x669   : > { %3942 = vmatpush1.bf16.msra.mxu1 %v9650_v42  ;;  %3784 = vmatprep.subr.bf16.mxu0 %v9655_v43  ;;  %v9694_v42 = vld [vmem:[%s13117_s10 + $0x224] ss:$24 sps:$4 sm:$0xff]   ;;  %v9692_v43 = vld [vmem:[%s13117_s10 + $0x220] ss:$24 sps:$4 sm:$0xff]  }
 0x66a   : > { %3943 = vmatprep.subr.bf16.mxu1 %v9658_v46  ;;  %v9697_v46 = vld [vmem:[%s13117_s10 + $0x254] ss:$24 sps:$4 sm:$0xff]  }
 0x66c   : > { %3785 = vmatpush1.bf16.msra.mxu0 %v9653_v51  ;;  %v9700_v51 = vld [vmem:[%s13117_s10 + $0x284] ss:$24 sps:$4 sm:$0xff]  }
 0x66d   : > { %3944 = vmatpush1.bf16.msra.mxu1 %v9656_v56  ;;  %3966 = vmatprep.subr.bf16.mxu0 %v9661_v44  ;;  %v9706_v56 = vld [vmem:[%s13117_s10 + $0x2e4] ss:$24 sps:$4 sm:$0xff]   ;;  %v9704_v44 = vld [vmem:[%s13117_s10 + $0x2e0] ss:$24 sps:$4 sm:$0xff]  }
 0x66f   : > { %3787 = vmatmul.mubr.bf16.vlgmr.msra.gmra.mrb[0].mxu0 %v11395_v5 }
 0x670   : > { %3946 = vmatmul.mubr.bf16.vlgmr.msra.gmra.mrb[0].mxu1 %v11395_v5  ;;  %3796 = vmatprep.mubr.bf16.mxu0 %v11397_v61 }
 0x671   : > { %3955 = vmatprep.mubr.bf16.mxu1 %v11397_v61  ;;  %3967 = vmatpush1.bf16.msra.mxu0 %v9659_v3  ;;  %v9719_v3 = vld [vmem:[%s13117_s10 + $0x3d0] ss:$24 sps:$4 sm:$0xff]  }
 0x672   : > { %3968 = vmatprep.subr.bf16.mxu0 %v9664_v4  ;;  %v9727_v4 = vld [vmem:[%s13117_s10 + $0x434] ss:$24 sps:$4 sm:$0xff]  }
 0x675   : > { %3969 = vmatpush1.bf16.msra.mxu0 %v9662_v8  ;;  %v9728_v8 = vld [vmem:[%s13117_s10 + $0x460] ss:$24 sps:$4 sm:$0xff]  }
 0x676   : > { %3970 = vmatprep.subr.bf16.mxu0 %v9667_v13  ;;  %v9736_v13 = vld [vmem:[%s13117_s10 + $0x4c4] ss:$24 sps:$4 sm:$0xff]  }
 0x677   : > { %3797 = vmatmul.mubr.bf16.gmra.mrb[4].mxu0 %v11417_v18 }
 0x678   : > { %3956 = vmatmul.mubr.bf16.gmra.mrb[4].mxu1 %v11417_v18  ;;  %3998 = vmatprep.mubr.bf16.mxu0 %v10914_v23  ;;  %v9676_v23 = vld [vmem:[%s13117_s10 + $0x104] ss:$24 sps:$4 sm:$0xff]  }
 0x679   : > { %3971 = vmatpush1.bf16.msra.mxu0 %v9665_v16  ;;  %4207 = vmatprep.mubr.bf16.mxu1 %v10359_v39  ;;  %v9734_v16 = vld [vmem:[%s13117_s10 + $0x4c0] ss:$24 sps:$4 sm:$0xff]  }
 0x67a   : > { %3972 = vmatprep.subr.bf16.mxu0 %v9670_v17  ;;  %v9739_v17 = vld [vmem:[%s13117_s10 + $0x4f4] ss:$24 sps:$4 sm:$0xff]  }
 0x67d   : > { %3973 = vmatpush1.bf16.msra.mxu0 %v9668_v19  ;;  %v9737_v19 = vld [vmem:[%s13117_s10 + $0x4f0] ss:$24 sps:$4 sm:$0xff]  }
 0x67e   : > { %3974 = vmatprep.subr.bf16.mxu0 %v9673_v20  ;;  %v9742_v20 = vld [vmem:[%s13117_s10 + $0x524] ss:$24 sps:$4 sm:$0xff]  }
 0x681   : > { %3975 = vmatpush1.bf16.msra.mxu0 %v9671_v21  ;;  %v9740_v21 = vld [vmem:[%s13117_s10 + $0x520] ss:$24 sps:$4 sm:$0xff]  }
 0x682   : > { %3976 = vmatprep.subr.bf16.mxu0 %v9676_v23  ;;  %v9745_v23 = vld [vmem:[%s13117_s10 + $0x554] ss:$24 sps:$4 sm:$0xff]  }
 0x685   : > { %3977 = vmatpush1.bf16.msra.mxu0 %v9674_v22  ;;  %v9743_v22 = vld [vmem:[%s13117_s10 + $0x550] ss:$24 sps:$4 sm:$0xff]  }
 0x686   : > { %3978 = vmatprep.subr.bf16.mxu0 %v9679_v24  ;;  %v9748_v24 = vld [vmem:[%s13117_s10 + $0x584] ss:$24 sps:$4 sm:$0xff]  }
 0x689   : > { %3979 = vmatpush1.bf16.msra.mxu0 %v9677_v26  ;;  %v9746_v26 = vld [vmem:[%s13117_s10 + $0x580] ss:$24 sps:$4 sm:$0xff]  }
 0x68a   : > { %3980 = vmatprep.subr.bf16.mxu0 %v9682_v29  ;;  %v9751_v29 = vld [vmem:[%s13117_s10 + $0x5b4] ss:$24 sps:$4 sm:$0xff]  }
 0x68d   : > { %3981 = vmatpush1.bf16.msra.mxu0 %v9680_v30  ;;  %v9749_v30 = vld [vmem:[%s13117_s10 + $0x5b0] ss:$24 sps:$4 sm:$0xff]  }
 0x68e   : > { %3982 = vmatprep.subr.bf16.mxu0 %v9685_v31  ;;  %v9754_v31 = vld [vmem:[%s13117_s10 + $0x5e4] ss:$24 sps:$4 sm:$0xff]  }
 0x691   : > { %3983 = vmatpush1.bf16.msra.mxu0 %v9683_v34  ;;  %v9752_v34 = vld [vmem:[%s13117_s10 + $0x5e0] ss:$24 sps:$4 sm:$0xff]  }
 0x692   : > { %3984 = vmatprep.subr.bf16.mxu0 %v9688_v36  ;;  %v9757_v36 = vld [vmem:[%s13117_s10 + $0x614] ss:$24 sps:$4 sm:$0xff]  }
 0x695   : > { %3985 = vmatpush1.bf16.msra.mxu0 %v9686_v37  ;;  %v9755_v37 = vld [vmem:[%s13117_s10 + $0x610] ss:$24 sps:$4 sm:$0xff]  }
 0x696   : > { %3986 = vmatprep.subr.bf16.mxu0 %v9691_v38  ;;  %v9760_v38 = vld [vmem:[%s13117_s10 + $0x644] ss:$24 sps:$4 sm:$0xff]  }
 0x699   : > { %3987 = vmatpush1.bf16.msra.mxu0 %v9689_v41  ;;  %v9758_v41 = vld [vmem:[%s13117_s10 + $0x640] ss:$24 sps:$4 sm:$0xff]  }
 0x69a   : > { %3988 = vmatprep.subr.bf16.mxu0 %v9694_v42  ;;  %v9763_v42 = vld [vmem:[%s13117_s10 + $0x674] ss:$24 sps:$4 sm:$0xff]  }
 0x69d   : > { %3989 = vmatpush1.bf16.msra.mxu0 %v9692_v43  ;;  %v9761_v43 = vld [vmem:[%s13117_s10 + $0x670] ss:$24 sps:$4 sm:$0xff]  }
 0x69e   : > { %3990 = vmatprep.subr.bf16.mxu0 %v9697_v46  ;;  %v9769_v46 = vld [vmem:[%s13117_s10 + $0x6d4] ss:$24 sps:$4 sm:$0xff]  }
 0x6a1   : > { %3991 = vmatpush1.bf16.msra.mxu0 %v9695_v49  ;;  %v9767_v49 = vld [vmem:[%s13117_s10 + $0x6d0] ss:$24 sps:$4 sm:$0xff]  }
 0x6a2   : > { %3992 = vmatprep.subr.bf16.mxu0 %v9700_v51  ;;  %v9775_v51 = vld [vmem:[%s13117_s10 + $0x734] ss:$24 sps:$4 sm:$0xff]  }
 0x6a5   : > { %3993 = vmatpush1.bf16.msra.mxu0 %v9698_v53  ;;  %v9773_v53 = vld [vmem:[%s13117_s10 + $0x730] ss:$24 sps:$4 sm:$0xff]  }
 0x6a6   : > { %3994 = vmatprep.subr.bf16.mxu0 %v9703_v54  ;;  %v9778_v54 = vld [vmem:[%s13117_s10 + $0x764] ss:$24 sps:$4 sm:$0xff]  }
 0x6a9   : > { %3995 = vmatpush1.bf16.msra.mxu0 %v9701_v55  ;;  %v9776_v55 = vld [vmem:[%s13117_s10 + $0x760] ss:$24 sps:$4 sm:$0xff]  }
 0x6aa   : > { %3996 = vmatprep.subr.bf16.mxu0 %v9706_v56  ;;  %v9781_v56 = vld [vmem:[%s13117_s10 + $0x794] ss:$24 sps:$4 sm:$0xff]  }
 0x6ad   : > { %3997 = vmatpush1.bf16.msra.mxu0 %v9704_v44  ;;  %v9779_v44 = vld [vmem:[%s13117_s10 + $0x790] ss:$24 sps:$4 sm:$0xff]  }
 0x6ae   : > { %4019 = vmatprep.subr.bf16.mxu0 %v9709_v57  ;;  %v9784_v57 = vld [vmem:[%s13117_s10 + $0x7c4] ss:$24 sps:$4 sm:$0xff]  }
 0x6b0   : > { %3999 = vmatmul.mubr.bf16.vlgmr.msra.gmra.mrb[8].mxu0 %v10919_v25  ;;  %v9718_v25 = vld [vmem:[%s13117_s10 + $0x3a4] ss:$24 sps:$4 sm:$0xff]  }
 0x6b1   : > { %4008 = vmatprep.mubr.bf16.mxu0 %v10929_v28  ;;  %4020 = vmatpush1.bf16.msra.mxu0 %v9707_v58  ;;  %v9716_v28 = vld [vmem:[%s13117_s10 + $0x3a0] ss:$24 sps:$4 sm:$0xff]  }
 0x6b2   : > { %4021 = vmatprep.subr.bf16.mxu0 %v9712_v59  ;;  %v9782_v58 = vld [vmem:[%s13117_s10 + $0x7c0] ss:$24 sps:$4 sm:$0xff]   ;;  %v9787_v59 = vld [vmem:[%s13117_s10 + $0x7f4] ss:$24 sps:$4 sm:$0xff]  }
 0x6b5   : > { %4022 = vmatpush1.bf16.msra.mxu0 %v9710_v60  ;;  %v9785_v60 = vld [vmem:[%s13117_s10 + $0x7f0] ss:$24 sps:$4 sm:$0xff]  }
 0x6b6   : > { %4023 = vmatprep.subr.bf16.mxu0 %v9715_v62  ;;  %v9790_v62 = vld [vmem:[%s13117_s10 + $0x824] ss:$24 sps:$4 sm:$0xff]  }
 0x6b8   : > { %4009 = vmatmul.mubr.bf16.gmra.mrb[12].mxu0 %v10961_v40  ;;  %v9724_v40 = vld [vmem:[%s13117_s10 + $0x404] ss:$24 sps:$4 sm:$0xff]  }
 0x6b9   : > { %4024 = vmatpush1.bf16.msra.mxu0 %v9713_v63  ;;  %4051 = vmatprep.mubr.bf16.mxu0 %v10973_v48  ;;  %v9722_v48 = vld [vmem:[%s13117_s10 + $0x400] ss:$24 sps:$4 sm:$0xff]  }
 0x6ba   : > { %4025 = vmatprep.subr.bf16.mxu0 %v9718_v25  ;;  %v9788_v63 = vld [vmem:[%s13117_s10 + $0x820] ss:$24 sps:$4 sm:$0xff]   ;;  %v9793_v25 = vld [vmem:[%s13117_s10 + $0x854] ss:$24 sps:$4 sm:$0xff]  }
 0x6bd   : > { %4026 = vmatpush1.bf16.msra.mxu0 %v9716_v28  ;;  %v9791_v28 = vld [vmem:[%s13117_s10 + $0x850] ss:$24 sps:$4 sm:$0xff]  }
 0x6be   : > { %4027 = vmatprep.subr.bf16.mxu0 %v9721_v0  ;;  %v9796_v0 = vld [vmem:[%s13117_s10 + $0x884] ss:$24 sps:$4 sm:$0xff]  }
 0x6c1   : > { %4028 = vmatpush1.bf16.msra.mxu0 %v9719_v3  ;;  %v9794_v3 = vld [vmem:[%s13117_s10 + $0x880] ss:$24 sps:$4 sm:$0xff]  }
 0x6c2   : > { %4029 = vmatprep.subr.bf16.mxu0 %v9724_v40  ;;  %v9799_v40 = vld [vmem:[%s13117_s10 + $0x8b4] ss:$24 sps:$4 sm:$0xff]  }
 0x6c5   : > { %4030 = vmatpush1.bf16.msra.mxu0 %v9722_v48  ;;  %v9797_v48 = vld [vmem:[%s13117_s10 + $0x8b0] ss:$24 sps:$4 sm:$0xff]  }
 0x6c6   : > { %4031 = vmatprep.subr.bf16.mxu0 %v9727_v4  ;;  %v9802_v4 = vld [vmem:[%s13117_s10 + $0x8e4] ss:$24 sps:$4 sm:$0xff]  }
 0x6c9   : > { %4032 = vmatpush1.bf16.msra.mxu0 %v9725_v6  ;;  %v9800_v6 = vld [vmem:[%s13117_s10 + $0x8e0] ss:$24 sps:$4 sm:$0xff]  }
 0x6ca   : > { %4033 = vmatprep.subr.bf16.mxu0 %v9730_v7  ;;  %v9805_v7 = vld [vmem:[%s13119_s12 + $0xc] ss:$24 sps:$4 sm:$0xff]  }
 0x6cd   : > { %4034 = vmatpush1.bf16.msra.mxu0 %v9728_v8  ;;  %v9803_v8 = vld [vmem:[%s13119_s12 + $0x8] ss:$24 sps:$4 sm:$0xff]  }
 0x6ce   : > { %4035 = vmatprep.subr.bf16.mxu0 %v9733_v10  ;;  %v9808_v10 = vld [vmem:[%s13119_s12 + $0x3c] ss:$24 sps:$4 sm:$0xff]  }
 0x6d1   : > { %4036 = vmatpush1.bf16.msra.mxu0 %v9731_v11  ;;  %v9806_v11 = vld [vmem:[%s13119_s12 + $0x38] ss:$24 sps:$4 sm:$0xff]  }
 0x6d2   : > { %4037 = vmatprep.subr.bf16.mxu0 %v9736_v13  ;;  %v9811_v13 = vld [vmem:[%s13119_s12 + $0x6c] ss:$24 sps:$4 sm:$0xff]  }
 0x6d5   : > { %4038 = vmatpush1.bf16.msra.mxu0 %v9734_v16  ;;  %v9809_v16 = vld [vmem:[%s13119_s12 + $0x68] ss:$24 sps:$4 sm:$0xff]  }
 0x6d6   : > { %4039 = vmatprep.subr.bf16.mxu0 %v9739_v17  ;;  %v1784_v17 = vpop.xlane.xlu0 %1783 }
 0x6d9   : > { %4040 = vmatpush1.bf16.msra.mxu0 %v9737_v19  ;;  %v1794_v19 = vadd.f32 1.0, %v1784_v17  ;;  %v9823_v17 = vld [vmem:[%s13119_s12 + $0x12c] ss:$24 sps:$4 sm:$0xff]  }
 0x6da   : > { %4041 = vmatprep.subr.bf16.mxu0 %v9742_v20  ;;  %v1787_v20 = vpop.xlane.xlu1 %1786 }
 0x6db   : > { %10283 = vrcp.f32 %v1794_v19  ;;  %v9829_v19 = vld [vmem:[%s13119_s12 + $0x18c] ss:$24 sps:$4 sm:$0xff]  }
 0x6dd   : > { %4042 = vmatpush1.bf16.msra.mxu0 %v9740_v21  ;;  %v1795_v21 = vadd.f32 1.0, %v1787_v20  ;;  %v9827_v20 = vld [vmem:[%s13119_s12 + $0x188] ss:$24 sps:$4 sm:$0xff]  }
 0x6de   : > { %4043 = vmatprep.subr.bf16.mxu0 %v9745_v23  ;;  %v1790_v23 = vpop.xlane.xlu0 %1789 }
 0x6df   : > { %10285 = vrcp.f32 %v1795_v21  ;;  %v9835_v21 = vld [vmem:[%s13119_s12 + $0x1bc] ss:$24 sps:$4 sm:$0xff]  }
 0x6e1   : > { %4044 = vmatpush1.bf16.msra.mxu0 %v9743_v22  ;;  %v1796_v22 = vadd.f32 1.0, %v1790_v23  ;;  %v9833_v23 = vld [vmem:[%s13119_s12 + $0x1b8] ss:$24 sps:$4 sm:$0xff]  }
 0x6e2   : > { %4045 = vmatprep.subr.bf16.mxu0 %v9748_v24  ;;  %v1793_v24 = vpop.xlane.xlu0 %1792 }
 0x6e3   : > { %10287 = vrcp.f32 %v1796_v22  ;;  %v9841_v22 = vld [vmem:[%s13119_s12 + $0x1ec] ss:$24 sps:$4 sm:$0xff]  }
 0x6e5   : > { %4046 = vmatpush1.bf16.msra.mxu0 %v9746_v26 }
 0x6e6   : > { %4047 = vmatprep.subr.bf16.mxu0 %v9751_v29  ;;  %v1797_v29 = vadd.f32 1.0, %v1793_v24  ;;  %v9839_v24 = vld [vmem:[%s13119_s12 + $0x1e8] ss:$24 sps:$4 sm:$0xff]  }
 0x6e8   : > { %10289 = vrcp.f32 %v1797_v29  ;;  %v9845_v29 = vld [vmem:[%s13119_s12 + $0x218] ss:$24 sps:$4 sm:$0xff]  }
 0x6e9   : > { %4048 = vmatpush1.bf16.msra.mxu0 %v9749_v30 }
 0x6ea   : > { %4049 = vmatprep.subr.bf16.mxu0 %v9754_v31 }
 0x6ed   : > { %4050 = vmatpush1.bf16.msra.mxu0 %v9752_v34 }
 0x6ee   : > { %4072 = vmatprep.subr.bf16.mxu0 %v9757_v36 }
 0x6f0   : > { %4052 = vmatmul.mubr.bf16.vlgmr.msra.gmra.mrb[8].mxu0 %v11165_v9  ;;  %v9766_v9 = vld [vmem:[%s13117_s10 + $0x6a4] ss:$24 sps:$4 sm:$0xff]  }
 0x6f1   : > { %4061 = vmatprep.mubr.bf16.mxu0 %v11170_v14  ;;  %4073 = vmatpush1.bf16.msra.mxu0 %v9755_v37  ;;  %v9764_v14 = vld [vmem:[%s13117_s10 + $0x6a0] ss:$24 sps:$4 sm:$0xff]  }
 0x6f2   : > { %4074 = vmatprep.subr.bf16.mxu0 %v9760_v38 }
 0x6f5   : > { %4075 = vmatpush1.bf16.msra.mxu0 %v9758_v41 }
 0x6f6   : > { %4076 = vmatprep.subr.bf16.mxu0 %v9763_v42 }
 0x6f8   : > { %4062 = vmatmul.mubr.bf16.gmra.mrb[12].mxu0 %v11207_v32  ;;  %v9772_v32 = vld [vmem:[%s13117_s10 + $0x704] ss:$24 sps:$4 sm:$0xff]  }
 0x6f9   : > { %4077 = vmatpush1.bf16.msra.mxu0 %v9761_v43  ;;  %4104 = vmatprep.mubr.bf16.mxu0 %v11209_v33  ;;  %v9770_v33 = vld [vmem:[%s13117_s10 + $0x700] ss:$24 sps:$4 sm:$0xff]  }
 0x6fa   : > { %4078 = vmatprep.subr.bf16.mxu0 %v9766_v9 }
 0x6fd   : > { %4079 = vmatpush1.bf16.msra.mxu0 %v9764_v14  ;;  %v10284_v14 = vpop.eup %10283 }
 0x6fe   : > { %4080 = vmatprep.subr.bf16.mxu0 %v9769_v46  ;;  %v10286_v46 = vpop.eup %10285 }
 0x701   : > { %4081 = vmatpush1.bf16.msra.mxu0 %v9767_v49 }
 0x702   : > { %4082 = vmatprep.subr.bf16.mxu0 %v9772_v32 }
 0x705   : > { %4083 = vmatpush1.bf16.msra.mxu0 %v9770_v33 }
 0x706   : > { %4084 = vmatprep.subr.bf16.mxu0 %v9775_v51  ;;  %v10300_v51 = vld [vmem:[%s13109_s2] sm:$0xff] }
 0x709   : > { %4085 = vmatpush1.bf16.msra.mxu0 %v9773_v53  ;;  %v1802_v53 = vmul.f32 %v10300_v51, %v10284_v14 }
 0x70a   : > { %4086 = vmatprep.subr.bf16.mxu0 %v9778_v54  ;;  %v10301_v54 = vld [vmem:[%s13109_s2 + $0x8] sm:$0xff] }
 0x70d   : > { %4087 = vmatpush1.bf16.msra.mxu0 %v9776_v55  ;;  %v1803_v55 = vmul.f32 %v10301_v54, %v10286_v46 }
 0x70e   : > { %4088 = vmatprep.subr.bf16.mxu0 %v9781_v56 }
 0x711   : > { %4089 = vmatpush1.bf16.msra.mxu0 %v9779_v44 }
 0x712   : > { %4090 = vmatprep.subr.bf16.mxu0 %v9784_v57 }
 0x715   : > { %4091 = vmatpush1.bf16.msra.mxu0 %v9782_v58 }
 0x716   : > { %4092 = vmatprep.subr.bf16.mxu0 %v9787_v59 }
 0x719   : > { %4093 = vmatpush1.bf16.msra.mxu0 %v9785_v60 }
 0x71a   : > { %4094 = vmatprep.subr.bf16.mxu0 %v9790_v62 }
 0x71d   : > { %4095 = vmatpush1.bf16.msra.mxu0 %v9788_v63 }
 0x71e   : > { %4096 = vmatprep.subr.bf16.mxu0 %v9793_v25 }
 0x721   : > { %4097 = vmatpush1.bf16.msra.mxu0 %v9791_v28  ;;  %v10288_v28 = vpop.eup %10287 }
 0x722   : > { %4098 = vmatprep.subr.bf16.mxu0 %v9796_v0  ;;  %v11731_v0 = vpack.c.bf16 %v1803_v55, %v1802_v53 }
 0x725   : > { %4099 = vmatpush1.bf16.msra.mxu0 %v9794_v3  ;;  %v10290_v3 = vpop.eup %10289 }
 0x726   : > { %4100 = vmatprep.subr.bf16.mxu0 %v9799_v40  ;;  %v10302_v40 = vld [vmem:[%s13109_s2 + $0x10] sm:$0xff] }
 0x729   : > { %4101 = vmatpush1.bf16.msra.mxu0 %v9797_v48  ;;  %v1804_v48 = vmul.f32 %v10302_v40, %v10288_v28  ;;  %v9856_v28 = vld [vmem:[%s13119_s12 + $0xc4] ss:$24 sps:$4 sm:$0xff]   ;;  %v9854_v40 = vld [vmem:[%s13119_s12 + $0xc0] ss:$24 sps:$4 sm:$0xff]  }
 0x72a   : > { %4102 = vmatprep.subr.bf16.mxu0 %v9802_v4  ;;  %v10303_v4 = vld [vmem:[%s13109_s2 + $0x18] sm:$0xff] }
 0x72d   : > { %4103 = vmatpush1.bf16.msra.mxu0 %v9800_v6  ;;  %v1805_v6 = vmul.f32 %v10303_v4, %v10290_v3  ;;  %v11863_v3 = vld [vmem:[%s13118_s11] sm:$0x3f] }
 0x72e   : > { %6281 = vmatprep.subr.bf16.mxu0 %v9805_v7  ;;  %v4142_v4 = vrot.slane %v11863_v3, %v10591_v45 }
 0x72f   : > { %v11742_v7 = vpack.c.bf16 %v1805_v6, %v1804_v48  ;;  %v9862_v48 = vld [vmem:[%s13119_s12 + $0xf4] ss:$24 sps:$4 sm:$0xff]   ;;  %v4146_v6 = vrot.slane %v11863_v3, %v10595_v47 }
 0x730   : > { %4105 = vmatmul.mubr.bf16.vlgmr.msra.gmra.mrb[8].mxu0 %v11395_v5  ;;  %v9814_v5 = vld [vmem:[%s13119_s12 + $0x9c] ss:$24 sps:$4 sm:$0xff]  }
 0x731   : > { %4114 = vmatprep.mubr.bf16.mxu0 %v11397_v61  ;;  %6282 = vmatpush1.bf16.msra.mxu0 %v9803_v8  ;;  %v9812_v61 = vld [vmem:[%s13119_s12 + $0x98] ss:$24 sps:$4 sm:$0xff]   ;;  %v9815_v8 = vld [vmem:[%s13119_s12 + $0xc8] ss:$24 sps:$4 sm:$0xff]  }
 0x732   : > { %6283 = vmatprep.subr.bf16.mxu0 %v9808_v10  ;;  %v9817_v10 = vld [vmem:[%s13119_s12 + $0xcc] ss:$24 sps:$4 sm:$0xff]  }
 0x735   : > { %6284 = vmatpush1.bf16.msra.mxu0 %v9806_v11  ;;  %v9818_v11 = vld [vmem:[%s13119_s12 + $0xf8] ss:$24 sps:$4 sm:$0xff]  }
 0x736   : > { %6285 = vmatprep.subr.bf16.mxu0 %v9811_v13  ;;  %v9820_v13 = vld [vmem:[%s13119_s12 + $0xfc] ss:$24 sps:$4 sm:$0xff]  }
 0x738   : > { %4115 = vmatmul.mubr.bf16.gmra.mrb[12].mxu0 %v11417_v18 }
 0x739   : > { %6286 = vmatpush1.bf16.msra.mxu0 %v9809_v16  ;;  %v9821_v16 = vld [vmem:[%s13119_s12 + $0x128] ss:$24 sps:$4 sm:$0xff]  }
 0x73a   : > { %6287 = vmatprep.subr.bf16.mxu0 %v9814_v5  ;;  %v9824_v5 = vld [vmem:[%s13119_s12 + $0x158] ss:$24 sps:$4 sm:$0xff]  }
 0x73d   : > { %6288 = vmatpush1.bf16.msra.mxu0 %v9812_v61  ;;  %v9826_v61 = vld [vmem:[%s13119_s12 + $0x15c] ss:$24 sps:$4 sm:$0xff]  }
 0x73e   : > { %6289 = vmatprep.subr.bf16.mxu0 %v9817_v10 }
 0x741   : > { %6290 = vmatpush1.bf16.msra.mxu0 %v9815_v8  ;;  %v9860_v8 = vld [vmem:[%s13119_s12 + $0xf0] ss:$24 sps:$4 sm:$0xff]  }
 0x742   : > { %v3788_v26 = vpop.f32.mrb[0].mxu0  ;;  %6291 = vmatprep.subr.bf16.mxu0 %v9820_v13 }
 0x743   : > { %v3947_v30 = vpop.f32.mrb[0].mxu1  ;;  %v3790_v31 = vpop.f32.mrb[1].mxu0 }
 0x744   : > { %v3949_v18 = vpop.f32.mrb[1].mxu1  ;;  %v3792_v34 = vpop.f32.mrb[2].mxu0 }
 0x745   : > { %v4125_v36 = vpack.c.bf16 %v3792_v34, %v3788_v26  ;;  %v3951_v37 = vpop.f32.mrb[2].mxu1  ;;  %v3794_v38 = vpop.f32.mrb[3].mxu0  ;;  %6292 = vmatpush1.bf16.msra.mxu0 %v9818_v11  ;;  %v9847_v26 = vld [vmem:[%s13119_s12 + $0x21c] ss:$24 sps:$4 sm:$0xff]  }
 0x746   : > { %v4127_v41 = vpack.c.bf16 %v3951_v37, %v3947_v30  ;;  %v4126_v42 = vpack.c.bf16 %v3794_v38, %v3790_v31  ;;  %v3953_v43 = vpop.f32.mrb[3].mxu1  ;;  %6293 = vmatprep.subr.bf16.mxu0 %v9823_v17  ;;  %v9853_v30 = vld [vmem:[%s13119_s12 + $0x24c] ss:$24 sps:$4 sm:$0xff]   ;;  %v9851_v31 = vld [vmem:[%s13119_s12 + $0x248] ss:$24 sps:$4 sm:$0xff]  }
 0x747   : > { %v4128_v9 = vpack.c.bf16 %v3953_v43, %v3949_v18  ;;  %v9857_v18 = vld [vmem:[%s13119_s12 + $0x278] ss:$24 sps:$4 sm:$0xff]   ;;  %v9859_v34 = vld [vmem:[%s13119_s12 + $0x27c] ss:$24 sps:$4 sm:$0xff]   ;;  %v9865_v37 = vld [vmem:[%s13119_s12 + $0x2ac] ss:$24 sps:$4 sm:$0xff]  }
 0x748   : > { %4175 = vmatprep.subr.bf16.mxu1 %v4126_v42  ;;  %v9869_v38 = vld [vmem:[%s13119_s12 + $0x2d8] ss:$24 sps:$4 sm:$0xff]   ;;  %v9877_v42 = vld [vmem:[%s13119_s12 + $0x30c] ss:$24 sps:$4 sm:$0xff]  }
 0x749   : > { %4176 = vmatpush1.bf16.msra.mxu1 %v4125_v36  ;;  %6294 = vmatpush1.bf16.msra.mxu0 %v9821_v16  ;;  %v9863_v36 = vld [vmem:[%s13119_s12 + $0x2a8] ss:$24 sps:$4 sm:$0xff]   ;;  %v9868_v11 = vld [vmem:[%s13119_s12 + $0x124] ss:$24 sps:$4 sm:$0xff]  }
 0x74a   : > { %v3798_v49 = vpop.f32.mrb[4].mxu0  ;;  %6295 = vmatprep.subr.bf16.mxu0 %v9826_v61 }
 0x74b   : > { %v3957_v32 = vpop.f32.mrb[4].mxu1  ;;  %v3800_v33 = vpop.f32.mrb[5].mxu0 }
 0x74c   : > { %v3959_v56 = vpop.f32.mrb[5].mxu1  ;;  %v3802_v44 = vpop.f32.mrb[6].mxu0 }
 0x74d   : > { %v4131_v57 = vpack.c.bf16 %v3802_v44, %v3798_v49  ;;  %v3961_v58 = vpop.f32.mrb[6].mxu1  ;;  %v3804_v59 = vpop.f32.mrb[7].mxu0  ;;  %6296 = vmatpush1.bf16.msra.mxu0 %v9824_v5  ;;  %v9832_v44 = vld [vmem:[%s13119_s12 + $0x4] ss:$24 sps:$4 sm:$0xff]  }
 0x74e   : > { %v4133_v60 = vpack.c.bf16 %v3961_v58, %v3957_v32  ;;  %v4132_v62 = vpack.c.bf16 %v3804_v59, %v3800_v33  ;;  %v3963_v63 = vpop.f32.mrb[7].mxu1  ;;  %6297 = vmatprep.subr.bf16.mxu0 %v9829_v19  ;;  %v9838_v58 = vld [vmem:[%s13119_s12 + $0x34] ss:$24 sps:$4 sm:$0xff]   ;;  %v9836_v59 = vld [vmem:[%s13119_s12 + $0x30] ss:$24 sps:$4 sm:$0xff]  }
 0x74f   : > { %v4134_v25 = vpack.c.bf16 %v3963_v63, %v3959_v56  ;;  %v9850_v63 = vld [vmem:[%s13119_s12 + $0x94] ss:$24 sps:$4 sm:$0xff]  }
 0x750   : > { %4177 = vmatprep.subr.bf16.mxu1 %v4132_v62  ;;  %v9842_v62 = vld [vmem:[%s13119_s12 + $0x60] ss:$24 sps:$4 sm:$0xff]  }
 0x751   : > { %4178 = vmatpush1.bf16.msra.mxu1 %v4131_v57  ;;  %6298 = vmatpush1.bf16.msra.mxu0 %v9827_v20  ;;  %v9830_v57 = vld [vmem:[%s13119_s12] ss:$24 sps:$4 sm:$0xff]  }
 0x752   : > { %4228 = vmatprep.subr.bf16.mxu1 %v4128_v9  ;;  %6299 = vmatprep.subr.bf16.mxu0 %v9835_v21  ;;  %v9866_v21 = vld [vmem:[%s13119_s12 + $0x120] ss:$24 sps:$4 sm:$0xff]  }
 0x754   : > { %8578 = vmatmul.mubr.msk.bf16.vlgmr.msra.gmra.mrb[8].mxu1 %vm1781_vm3, %v11731_v0 }
 0x755   : > { %4229 = vmatpush1.bf16.msra.mxu1 %v4127_v41  ;;  %4217 = vmatprep.mubr.bf16.mxu1 %v10359_v39  ;;  %v9871_v41 = vld [vmem:[%s13119_s12 + $0x2dc] ss:$24 sps:$4 sm:$0xff]  }
 0x756   : > { %4230 = vmatprep.subr.bf16.mxu1 %v4134_v25  ;;  %6300 = vmatpush1.bf16.msra.mxu0 %v9833_v23  ;;  %v9848_v25 = vld [vmem:[%s13119_s12 + $0x90] ss:$24 sps:$4 sm:$0xff]  }
 0x757   : > { %6301 = vmatprep.subr.bf16.mxu0 %v9841_v22 }
 0x759   : > { %4231 = vmatpush1.bf16.msra.mxu1 %v4133_v60  ;;  %v9844_v60 = vld [vmem:[%s13119_s12 + $0x64] ss:$24 sps:$4 sm:$0xff]  }
 0x75a   : > { %6302 = vmatpush1.bf16.msra.mxu0 %v9839_v24  ;;  %v9874_v24 = vld [vmem:[%s13119_s12 + $0x154] ss:$24 sps:$4 sm:$0xff]  }
 0x75b   : > { %6303 = vmatprep.subr.bf16.mxu0 %v9847_v26 }
 0x75c   : > { %8579 = vmatmul.mubr.msk.bf16.gmra.mrb[12].mxu1 %vm1781_vm3, %v11742_v7 }
 0x75d   : > { %4260 = vmatprep.mubr.bf16.mxu1 %v10359_v39 }
 0x75e   : > { %6304 = vmatpush1.bf16.msra.mxu0 %v9845_v29 }
 0x75f   : > { %6305 = vmatprep.subr.bf16.mxu0 %v9853_v30 }
 0x762   : > { %6306 = vmatpush1.bf16.msra.mxu0 %v9851_v31 }
 0x763   : > { %6307 = vmatprep.subr.bf16.mxu0 %v9859_v34 }
 0x764   : > { %8580 = vmatmul.mubr.msk.bf16.vlgmr.msra.gmra.mrb[16].mxu1 %vm1781_vm3, %v11731_v0 }
 0x765   : > { %4270 = vmatprep.mubr.bf16.mxu1 %v10359_v39 }
 0x766   : > { %6308 = vmatpush1.bf16.msra.mxu0 %v9857_v18  ;;  %v9872_v18 = vld [vmem:[%s13119_s12 + $0x150] ss:$24 sps:$4 sm:$0xff]  }
 0x767   : > { %6309 = vmatprep.subr.bf16.mxu0 %v9865_v37 }
 0x76a   : > { %6310 = vmatpush1.bf16.msra.mxu0 %v9863_v36 }
 0x76b   : > { %6311 = vmatprep.subr.bf16.mxu0 %v9871_v41 }
 0x76c   : > { %8581 = vmatmul.mubr.msk.bf16.gmra.mrb[20].mxu1 %vm1781_vm3, %v11742_v7 }
 0x76d   : > { %4313 = vmatprep.mubr.bf16.mxu1 %v10359_v39 }
 0x76e   : > { %6312 = vmatpush1.bf16.msra.mxu0 %v9869_v38 }
 0x76f   : > { %6334 = vmatprep.subr.bf16.mxu0 %v9877_v42 }
 0x803   : > { %v4106_v43 = vpop.f32.mrb[8].mxu0 }
 0x804   : > { %v4108_v9 = vpop.f32.mrb[9].mxu0 }
 0x805   : > { %v4110_v14 = vpop.f32.mrb[10].mxu0 }
 0x806   : > { %v4129_v46 = vpack.c.bf16 %v4110_v14, %v4106_v43  ;;  %v4112_v49 = vpop.f32.mrb[11].mxu0  ;;  %v9880_v43 = vld [vmem:[%s13119_s12 + $0x184] ss:$24 sps:$4 sm:$0xff]  }
 0x807   : > { %v4130_v32 = vpack.c.bf16 %v4112_v49, %v4108_v9  ;;  %v9875_v49 = vld [vmem:[%s13119_s12 + $0x308] ss:$24 sps:$4 sm:$0xff]  }
 0x809   : > { %4281 = vmatprep.subr.bf16.mxu1 %v4130_v32 }
 0x80a   : > { %4282 = vmatpush1.bf16.msra.mxu1 %v4129_v46 }
 0x80b   : > { %v4116_v33 = vpop.f32.mrb[12].mxu0 }
 0x80c   : > { %v4118_v51 = vpop.f32.mrb[13].mxu0 }
 0x80d   : > { %v4120_v53 = vpop.f32.mrb[14].mxu0 }
 0x80e   : > { %v4135_v54 = vpack.c.bf16 %v4120_v53, %v4116_v33  ;;  %v4122_v55 = vpop.f32.mrb[15].mxu0  ;;  %v9878_v53 = vld [vmem:[%s13119_s12 + $0x180] ss:$24 sps:$4 sm:$0xff]  }
 0x80f   : > { %v4136_v56 = vpack.c.bf16 %v4122_v55, %v4118_v51 }
 0x811   : > { %4283 = vmatprep.subr.bf16.mxu1 %v4136_v56 }
 0x812   : > { %4284 = vmatpush1.bf16.msra.mxu1 %v4135_v54  ;;  %v9883_v54 = vld [vmem:[%s13119_s12 + $0x33c] ss:$24 sps:$4 sm:$0xff]  }
 0x813   : > { %6122 = vmatprep.subr.bf16.mxu1 %v9832_v44  ;;  %v9886_v44 = vld [vmem:[%s13119_s12 + $0x1b4] ss:$24 sps:$4 sm:$0xff]  }
 0x815   : > { %8582 = vmatmul.mubr.msk.bf16.vlgmr.msra.gmra.mrb[24].mxu1 %vm1781_vm3, %v11731_v0 }
 0x816   : > { %6123 = vmatpush1.bf16.msra.mxu1 %v9830_v57  ;;  %4323 = vmatprep.mubr.bf16.mxu1 %v10359_v39 }
 0x817   : > { %6124 = vmatprep.subr.bf16.mxu1 %v9838_v58  ;;  %v4150_v58 = vrot.slane %v11863_v3, %v11130_v52 }
 0x81a   : > { %6125 = vmatpush1.bf16.msra.mxu1 %v9836_v59 }
 0x81b   : > { %6126 = vmatprep.subr.bf16.mxu1 %v9844_v60  ;;  %v9881_v60 = vld [vmem:[%s13119_s12 + $0x338] ss:$24 sps:$4 sm:$0xff]  }
 0x81d   : > { %8583 = vmatmul.mubr.msk.bf16.gmra.mrb[28].mxu1 %vm1781_vm3, %v11742_v7 }
 0x81e   : > { %6127 = vmatpush1.bf16.msra.mxu1 %v9842_v62  ;;  %v11923_v62 = vrot.slane %v11863_v3, %v11104_v35 }
 0x81f   : > { %6128 = vmatprep.subr.bf16.mxu1 %v9850_v63 }
 0x822   : > { %6129 = vmatpush1.bf16.msra.mxu1 %v9848_v25 }
 0x823   : > { %6130 = vmatprep.subr.bf16.mxu1 %v9856_v28  ;;  %v9884_v28 = vld [vmem:[%s13119_s12 + $0x1b0] ss:$24 sps:$4 sm:$0xff]  }
 0x826   : > { %6131 = vmatpush1.bf16.msra.mxu1 %v9854_v40  ;;  %v9889_v40 = vld [vmem:[%s13119_s12 + $0x36c] ss:$24 sps:$4 sm:$0xff]  }
 0x827   : > { %v4209_v10 = vpop.f32.mrb[8].mxu1  ;;  %6132 = vmatprep.subr.bf16.mxu1 %v9862_v48 }
 0x828   : > { %v4210_v13 = vadd.f32 %v4209_v10, %v4142_v4  ;;  %v4211_v16 = vpop.f32.mrb[9].mxu1 }
 0x829   : > { %v4212_v17 = vadd.f32 %v4211_v16, %v4146_v6  ;;  %v4213_v5 = vpop.f32.mrb[10].mxu1 }
 0x82a   : > { %v4334_v61 = vmax.f32 %v4210_v13, 0.0  ;;  %v4214_v19 = vadd.f32 %v4213_v5, %v4142_v4  ;;  %6133 = vmatpush1.bf16.msra.mxu1 %v9860_v8  ;;  %v4215_v20 = vpop.f32.mrb[11].mxu1  ;;  %v9892_v8 = vld [vmem:[%s13119_s12 + $0x1e4] ss:$24 sps:$4 sm:$0xff]  }
 0x82b   : > { %v4335_v23 = vmax.f32 %v4212_v17, 0.0  ;;  %v4216_v22 = vadd.f32 %v4215_v20, %v4146_v6  ;;  %6134 = vmatprep.subr.bf16.mxu1 %v9868_v11 }
 0x82c   : > { %v4340_v26 = vmax.f32 %v4214_v19, 0.0  ;;  %v4358_v30 = vmul.f32 %v4334_v61, %v10883_v1  ;;  %v9887_v61 = vld [vmem:[%s13119_s12 + $0x368] ss:$24 sps:$4 sm:$0xff]  }
 0x82d   : > { %v4341_v29 = vmax.f32 %v4216_v22, 0.0  ;;  %v4359_v34 = vmul.f32 %v4335_v23, %v10883_v1  ;;  %v9890_v23 = vld [vmem:[%s13119_s12 + $0x1e0] ss:$24 sps:$4 sm:$0xff]   ;;  %v9895_v22 = vld [vmem:[%s13119_s12 + $0x39c] ss:$24 sps:$4 sm:$0xff]  }
 0x82e   : > { %v4364_v31 = vmul.f32 %v4340_v26, %v10901_v12  ;;  %6135 = vmatpush1.bf16.msra.mxu1 %v9866_v21 }
 0x82f   : > { %v4365_v36 = vmul.f32 %v4341_v29, %v10901_v12  ;;  %v4219_v37 = vpop.f32.mrb[12].mxu1  ;;  %6136 = vmatprep.subr.bf16.mxu1 %v9874_v24  ;;  %v9898_v29 = vld [vmem:[%s13119_s12 + $0x214] ss:$24 sps:$4 sm:$0xff]  }
 0x830   : > { %v11894_v38 = vpack.c.bf16 %v4364_v31, %v4358_v30  ;;  %v4220_v41 = vadd.f32 %v4219_v37, %v4142_v4  ;;  %v4221_v42 = vpop.f32.mrb[13].mxu1  ;;  %v9896_v37 = vld [vmem:[%s13119_s12 + $0x210] ss:$24 sps:$4 sm:$0xff]  }
 0x831   : > { %v4222_v9 = vadd.f32 %v4221_v42, %v4146_v6  ;;  %v4223_v14 = vpop.f32.mrb[14].mxu1  ;;  %v11899_v46 = vpack.c.bf16 %v4365_v36, %v4359_v34 }
 0x832   : > { %v4346_v32 = vmax.f32 %v4220_v41, 0.0  ;;  %v4224_v33 = vadd.f32 %v4223_v14, %v4142_v4  ;;  %6137 = vmatpush1.bf16.msra.mxu1 %v9872_v18  ;;  %v4225_v51 = vpop.f32.mrb[15].mxu1  ;;  %v9893_v18 = vld [vmem:[%s13119_s12 + $0x398] ss:$24 sps:$4 sm:$0xff]   ;;  %v9901_v41 = vld [vmem:[%s13119_s12 + $0x3cc] ss:$24 sps:$4 sm:$0xff]  }
 0x833   : > { %v4347_v55 = vmax.f32 %v4222_v9, 0.0  ;;  %v4226_v56 = vadd.f32 %v4225_v51, %v4146_v6  ;;  %6154 = vmatprep.mubr.bf16.mxu1 %v11899_v46  ;;  %6313 = vmatprep.mubr.bf16.mxu0 %v11899_v46  ;;  %v9904_v14 = vld [vmem:[%s13119_s12 + $0x244] ss:$24 sps:$4 sm:$0xff]  }
 0x834   : > { %v4352_v57 = vmax.f32 %v4224_v33, 0.0  ;;  %6138 = vmatprep.subr.bf16.mxu1 %v9880_v43  ;;  %6314 = vmatmul.mubr.bf16.vlgmr.msra.gmra.mrb[16].mxu0 %v11894_v38  ;;  %v4370_v63 = vmul.f32 %v4346_v32, %v10885_v2 }
 0x835   : > { %v4353_v59 = vmax.f32 %v4226_v56, 0.0  ;;  %6335 = vmatpush1.bf16.msra.mxu0 %v9875_v49  ;;  %v4371_v48 = vmul.f32 %v4347_v55, %v10885_v2 }
 0x836   : > { %v4376_v25 = vmul.f32 %v4352_v57, %v10905_v15  ;;  %6139 = vmatpush1.bf16.msra.mxu1 %v9878_v53  ;;  %6336 = vmatprep.subr.bf16.mxu0 %v9883_v54  ;;  %v9899_v54 = vld [vmem:[%s13119_s12 + $0x3c8] ss:$24 sps:$4 sm:$0xff]  }
 0x837   : > { %v4377_v4 = vmul.f32 %v4353_v59, %v10905_v15  ;;  %v4262_v6 = vpop.f32.mrb[16].mxu1  ;;  %6140 = vmatprep.subr.bf16.mxu1 %v9886_v44  ;;  %v9902_v59 = vld [vmem:[%s13119_s12 + $0x240] ss:$24 sps:$4 sm:$0xff]  }
 0x838   : > { %v4263_v10 = vadd.f32 %v4262_v6, %v4150_v58  ;;  %v4264_v11 = vpop.f32.mrb[17].mxu1  ;;  %v11938_v13 = vpack.c.bf16 %v4376_v25, %v4370_v63 }
 0x839   : > { %v4265_v16 = vadd.f32 %v4264_v11, %v11923_v62  ;;  %6337 = vmatpush1.bf16.msra.mxu0 %v9881_v60  ;;  %v4266_v17 = vpop.f32.mrb[18].mxu1  ;;  %v11941_v5 = vpack.c.bf16 %v4377_v4, %v4371_v48  ;;  %v9907_v60 = vld [vmem:[%s13119_s12 + $0x3fc] ss:$24 sps:$4 sm:$0xff]   ;;  %v9905_v48 = vld [vmem:[%s13119_s12 + $0x3f8] ss:$24 sps:$4 sm:$0xff]  }
 0x83a   : > { %v4336_v19 = vmax.f32 %v4263_v10, 0.0  ;;  %v4267_v20 = vadd.f32 %v4266_v17, %v4150_v58  ;;  %6141 = vmatpush1.bf16.msra.mxu1 %v9884_v28  ;;  %v4268_v21 = vpop.f32.mrb[19].mxu1  ;;  %6338 = vmatprep.subr.bf16.mxu0 %v9889_v40 }
 0x83b   : > { %v4337_v24 = vmax.f32 %v4265_v16, 0.0  ;;  %v4269_v26 = vadd.f32 %v4268_v21, %v11923_v62  ;;  %6323 = vmatprep.mubr.bf16.mxu0 %v11941_v5  ;;  %6142 = vmatprep.subr.bf16.mxu1 %v9892_v8  ;;  %v9913_v8 = vld [vmem:[%s13119_s12 + $0x42c] ss:$24 sps:$4 sm:$0xff]   ;;  %v9919_v21 = vld [vmem:[%s13119_s12 + $0x45c] ss:$24 sps:$4 sm:$0xff]  }
 0x83c   : > { %v4342_v30 = vmax.f32 %v4267_v20, 0.0  ;;  %6324 = vmatmul.mubr.bf16.gmra.mrb[20].mxu0 %v11938_v13  ;;  %v4360_v34 = vmul.f32 %v4336_v19, %v10883_v1  ;;  %v9916_v16 = vld [vmem:[%s13119_s12 + $0x2a4] ss:$24 sps:$4 sm:$0xff]   ;;  %v9914_v20 = vld [vmem:[%s13119_s12 + $0x2a0] ss:$24 sps:$4 sm:$0xff]  }
 0x83d   : > { %v4343_v31 = vmax.f32 %v4269_v26, 0.0  ;;  %6339 = vmatpush1.bf16.msra.mxu0 %v9887_v61  ;;  %v4361_v42 = vmul.f32 %v4337_v24, %v10883_v1  ;;  %v9911_v61 = vld [vmem:[%s13119_s12 + $0x428] ss:$24 sps:$4 sm:$0xff]   ;;  %v9925_v26 = vld [vmem:[%s13119_s12 + $0x48c] ss:$24 sps:$4 sm:$0xff]  }
 0x83e   : > { %v4366_v36 = vmul.f32 %v4342_v30, %v10901_v12  ;;  %6143 = vmatpush1.bf16.msra.mxu1 %v9890_v23  ;;  %6340 = vmatprep.subr.bf16.mxu0 %v9895_v22  ;;  %v9922_v23 = vld [vmem:[%s13119_s12 + $0x2d4] ss:$24 sps:$4 sm:$0xff]   ;;  %v9917_v22 = vld [vmem:[%s13119_s12 + $0x458] ss:$24 sps:$4 sm:$0xff]   ;;  %v9923_v30 = vld [vmem:[%s13119_s12 + $0x488] ss:$24 sps:$4 sm:$0xff]  }
 0x83f   : > { %v4367_v43 = vmul.f32 %v4343_v31, %v10901_v12  ;;  %v4272_v9 = vpop.f32.mrb[20].mxu1  ;;  %6144 = vmatprep.subr.bf16.mxu1 %v9898_v29  ;;  %v9920_v24 = vld [vmem:[%s13119_s12 + $0x2d0] ss:$24 sps:$4 sm:$0xff]   ;;  %v9928_v29 = vld [vmem:[%s13119_s12 + $0x304] ss:$24 sps:$4 sm:$0xff]  }
 0x840   : > { %v11974_v49 = vpack.c.bf16 %v4366_v36, %v4360_v34  ;;  %v4273_v32 = vadd.f32 %v4272_v9, %v4150_v58  ;;  %v4274_v33 = vpop.f32.mrb[21].mxu1  ;;  %v9926_v31 = vld [vmem:[%s13119_s12 + $0x300] ss:$24 sps:$4 sm:$0xff]   ;;  %v9934_v34 = vld [vmem:[%s13119_s12 + $0x334] ss:$24 sps:$4 sm:$0xff]  }
 0x841   : > { %v4275_v51 = vadd.f32 %v4274_v33, %v11923_v62  ;;  %6341 = vmatpush1.bf16.msra.mxu0 %v9893_v18  ;;  %v4276_v53 = vpop.f32.mrb[22].mxu1  ;;  %v11980_v55 = vpack.c.bf16 %v4367_v43, %v4361_v42  ;;  %v9931_v18 = vld [vmem:[%s13119_s12 + $0x4bc] ss:$24 sps:$4 sm:$0xff]   ;;  %v9929_v36 = vld [vmem:[%s13119_s12 + $0x4b8] ss:$24 sps:$4 sm:$0xff]  }
 0x842   : > { %v4348_v56 = vmax.f32 %v4273_v32, 0.0  ;;  %v4277_v44 = vadd.f32 %v4276_v53, %v4150_v58  ;;  %6145 = vmatpush1.bf16.msra.mxu1 %v9896_v37  ;;  %v4278_v57 = vpop.f32.mrb[23].mxu1  ;;  %6342 = vmatprep.subr.bf16.mxu0 %v9901_v41  ;;  %v9910_v58 = vld [vmem:[%s13119_s12 + $0x274] ss:$24 sps:$4 sm:$0xff]   ;;  %v9932_v37 = vld [vmem:[%s13119_s12 + $0x330] ss:$24 sps:$4 sm:$0xff]  }
 0x843   : > { %v4349_v63 = vmax.f32 %v4275_v51, 0.0  ;;  %v4279_v25 = vadd.f32 %v4278_v57, %v11923_v62  ;;  %6366 = vmatprep.mubr.bf16.mxu0 %v11980_v55  ;;  %6146 = vmatprep.subr.bf16.mxu1 %v9904_v14  ;;  %v9908_v62 = vld [vmem:[%s13119_s12 + $0x270] ss:$24 sps:$4 sm:$0xff]   ;;  %v9937_v41 = vld [vmem:[%s13119_s12 + $0x4ec] ss:$24 sps:$4 sm:$0xff]  }
 0x844   : > { %v4354_v28 = vmax.f32 %v4277_v44, 0.0  ;;  %v4372_v4 = vmul.f32 %v4348_v56, %v10885_v2  ;;  %v9940_v42 = vld [vmem:[%s13119_s12 + $0x364] ss:$24 sps:$4 sm:$0xff]   ;;  %v9935_v43 = vld [vmem:[%s13119_s12 + $0x4e8] ss:$24 sps:$4 sm:$0xff]  }
 0x845   : > { %v4355_v40 = vmax.f32 %v4279_v25, 0.0  ;;  %6343 = vmatpush1.bf16.msra.mxu0 %v9899_v54  ;;  %v4373_v10 = vmul.f32 %v4349_v63, %v10885_v2  ;;  %v9938_v9 = vld [vmem:[%s13119_s12 + $0x360] ss:$24 sps:$4 sm:$0xff]   ;;  %v9943_v14 = vld [vmem:[%s13119_s12 + $0x51c] ss:$24 sps:$4 sm:$0xff]  }
 0x846   : > { %v4378_v6 = vmul.f32 %v4354_v28, %v10905_v15  ;;  %6147 = vmatpush1.bf16.msra.mxu1 %v9902_v59  ;;  %6344 = vmatprep.subr.bf16.mxu0 %v9907_v60  ;;  %v9946_v32 = vld [vmem:[%s13119_s12 + $0x394] ss:$24 sps:$4 sm:$0xff]   ;;  %v9941_v33 = vld [vmem:[%s13119_s12 + $0x518] ss:$24 sps:$4 sm:$0xff]   ;;  %v9952_v54 = vld [vmem:[%s13119_s12 + $0x3c4] ss:$24 sps:$4 sm:$0xff]  }
 0x847   : > { %v4379_v11 = vmul.f32 %v4355_v40, %v10905_v15  ;;  %6148 = vmatprep.subr.bf16.mxu1 %v9910_v58  ;;  %v9944_v51 = vld [vmem:[%s13119_s12 + $0x390] ss:$24 sps:$4 sm:$0xff]   ;;  %v9949_v53 = vld [vmem:[%s13119_s12 + $0x54c] ss:$24 sps:$4 sm:$0xff]   ;;  %v9950_v44 = vld [vmem:[%s13119_s12 + $0x3c0] ss:$24 sps:$4 sm:$0xff]  }
 0x848   : > { %v12009_v17 = vpack.c.bf16 %v4378_v6, %v4372_v4  ;;  %v9947_v56 = vld [vmem:[%s13119_s12 + $0x548] ss:$24 sps:$4 sm:$0xff]   ;;  %v9955_v57 = vld [vmem:[%s13119_s12 + $0x57c] ss:$24 sps:$4 sm:$0xff]   ;;  %v9953_v60 = vld [vmem:[%s13119_s12 + $0x578] ss:$24 sps:$4 sm:$0xff]  }
 0x849   : > { %6345 = vmatpush1.bf16.msra.mxu0 %v9905_v48  ;;  %v12014_v19 = vpack.c.bf16 %v4379_v11, %v4373_v10  ;;  %v9958_v59 = vld [vmem:[%s13119_s12 + $0x3f4] ss:$24 sps:$4 sm:$0xff]   ;;  %v9956_v63 = vld [vmem:[%s13119_s12 + $0x3f0] ss:$24 sps:$4 sm:$0xff]   ;;  %v9964_v58 = vld [vmem:[%s13119_s12 + $0x424] ss:$24 sps:$4 sm:$0xff]  }
 0x84a   : > { %6149 = vmatpush1.bf16.msra.mxu1 %v9908_v62  ;;  %6346 = vmatprep.subr.bf16.mxu0 %v9913_v8  ;;  %v9961_v25 = vld [vmem:[%s13119_s12 + $0x5ac] ss:$24 sps:$4 sm:$0xff]   ;;  %v9959_v28 = vld [vmem:[%s13119_s12 + $0x5a8] ss:$24 sps:$4 sm:$0xff]   ;;  %v9967_v48 = vld [vmem:[%s13119_s12 + $0x5dc] ss:$24 sps:$4 sm:$0xff]  }
 0x84b   : > { %6150 = vmatprep.subr.bf16.mxu1 %v9916_v16  ;;  %v9962_v40 = vld [vmem:[%s13119_s12 + $0x420] ss:$24 sps:$4 sm:$0xff]   ;;  %v9970_v4 = vld [vmem:[%s13119_s12 + $0x454] ss:$24 sps:$4 sm:$0xff]   ;;  %v9968_v62 = vld [vmem:[%s13119_s12 + $0x450] ss:$24 sps:$4 sm:$0xff]  }
 0x84c   : > { %v9965_v6 = vld [vmem:[%s13119_s12 + $0x5d8] ss:$24 sps:$4 sm:$0xff]   ;;  %v10000_v8 = vld [vmem:[%s13119_s12 + $0x60c] ss:$24 sps:$4 sm:$0xff]   ;;  %v9998_v11 = vld [vmem:[%s13119_s12 + $0x608] ss:$24 sps:$4 sm:$0xff]  }
 0x84d   : > { %6347 = vmatpush1.bf16.msra.mxu0 %v9911_v61  ;;  %v9973_v10 = vld [vmem:[%s13119_s12 + $0x484] ss:$24 sps:$4 sm:$0xff]   ;;  %v9971_v16 = vld [vmem:[%s13119_s12 + $0x480] ss:$24 sps:$4 sm:$0xff]  }
 0x84e   : > { %6151 = vmatpush1.bf16.msra.mxu1 %v9914_v20  ;;  %6348 = vmatprep.subr.bf16.mxu0 %v9919_v21  ;;  %v10006_v61 = vld [vmem:[%s13119_s12 + $0x63c] ss:$24 sps:$4 sm:$0xff]   ;;  %v10004_v21 = vld [vmem:[%s13119_s12 + $0x638] ss:$24 sps:$4 sm:$0xff]  }
 0x84f   : > { %6152 = vmatprep.subr.bf16.mxu1 %v9922_v23  ;;  %v9976_v20 = vld [vmem:[%s13119_s12 + $0x4b4] ss:$24 sps:$4 sm:$0xff]   ;;  %v9974_v23 = vld [vmem:[%s13119_s12 + $0x4b0] ss:$24 sps:$4 sm:$0xff]  }
 0x851   : > { %6349 = vmatpush1.bf16.msra.mxu0 %v9917_v22  ;;  %v10012_v22 = vld [vmem:[%s13119_s12 + $0x66c] ss:$24 sps:$4 sm:$0xff]  }
 0x852   : > { %6153 = vmatpush1.bf16.msra.mxu1 %v9920_v24  ;;  %6350 = vmatprep.subr.bf16.mxu0 %v9925_v26  ;;  %v9979_v24 = vld [vmem:[%s13119_s12 + $0x4e4] ss:$24 sps:$4 sm:$0xff]   ;;  %v10010_v26 = vld [vmem:[%s13119_s12 + $0x668] ss:$24 sps:$4 sm:$0xff]  }
 0x853   : > { %6175 = vmatprep.subr.bf16.mxu1 %v9928_v29  ;;  %v9977_v29 = vld [vmem:[%s13119_s12 + $0x4e0] ss:$24 sps:$4 sm:$0xff]  }
 0x855   : > { %6155 = vmatmul.mubr.bf16.vlgmr.msra.gmra.mrb[32].mxu1 %v11894_v38  ;;  %6351 = vmatpush1.bf16.msra.mxu0 %v9923_v30  ;;  %v10018_v30 = vld [vmem:[%s13119_s12 + $0x69c] ss:$24 sps:$4 sm:$0xff]  }
 0x856   : > { %6164 = vmatprep.mubr.bf16.mxu1 %v11941_v5  ;;  %6176 = vmatpush1.bf16.msra.mxu1 %v9926_v31  ;;  %v9982_v31 = vld [vmem:[%s13119_s12 + $0x514] ss:$24 sps:$4 sm:$0xff]  }
 0x857   : > { %6352 = vmatprep.subr.bf16.mxu0 %v9931_v18  ;;  %6177 = vmatprep.subr.bf16.mxu1 %v9934_v34  ;;  %v10016_v18 = vld [vmem:[%s13119_s12 + $0x698] ss:$24 sps:$4 sm:$0xff]  }
 0x858   : > { %v9980_v34 = vld [vmem:[%s13119_s12 + $0x510] ss:$24 sps:$4 sm:$0xff]  }
 0x859   : > { %6353 = vmatpush1.bf16.msra.mxu0 %v9929_v36  ;;  %v10024_v36 = vld [vmem:[%s13119_s12 + $0x6cc] ss:$24 sps:$4 sm:$0xff]  }
 0x85a   : > { %6178 = vmatpush1.bf16.msra.mxu1 %v9932_v37  ;;  %6354 = vmatprep.subr.bf16.mxu0 %v9937_v41  ;;  %v9985_v37 = vld [vmem:[%s13119_s12 + $0x544] ss:$24 sps:$4 sm:$0xff]   ;;  %v10022_v41 = vld [vmem:[%s13119_s12 + $0x6c8] ss:$24 sps:$4 sm:$0xff]  }
 0x85b   : > { %6179 = vmatprep.subr.bf16.mxu1 %v9940_v42  ;;  %v9983_v42 = vld [vmem:[%s13119_s12 + $0x540] ss:$24 sps:$4 sm:$0xff]  }
 0x85d   : > { %6165 = vmatmul.mubr.bf16.gmra.mrb[36].mxu1 %v11938_v13  ;;  %6355 = vmatpush1.bf16.msra.mxu0 %v9935_v43  ;;  %v10030_v43 = vld [vmem:[%s13119_s12 + $0x6fc] ss:$24 sps:$4 sm:$0xff]  }
 0x85e   : > { %6180 = vmatpush1.bf16.msra.mxu1 %v9938_v9  ;;  %6207 = vmatprep.mubr.bf16.mxu1 %v11980_v55  ;;  %v9988_v9 = vld [vmem:[%s13119_s12 + $0x574] ss:$24 sps:$4 sm:$0xff]  }
 0x85f   : > { %6356 = vmatprep.subr.bf16.mxu0 %v9943_v14  ;;  %6181 = vmatprep.subr.bf16.mxu1 %v9946_v32  ;;  %v10028_v14 = vld [vmem:[%s13119_s12 + $0x6f8] ss:$24 sps:$4 sm:$0xff]  }
 0x860   : > { %v9986_v32 = vld [vmem:[%s13119_s12 + $0x570] ss:$24 sps:$4 sm:$0xff]  }
 0x861   : > { %6357 = vmatpush1.bf16.msra.mxu0 %v9941_v33  ;;  %v10036_v33 = vld [vmem:[%s13119_s12 + $0x72c] ss:$24 sps:$4 sm:$0xff]  }
 0x862   : > { %6182 = vmatpush1.bf16.msra.mxu1 %v9944_v51  ;;  %6358 = vmatprep.subr.bf16.mxu0 %v9949_v53  ;;  %v9991_v51 = vld [vmem:[%s13119_s12 + $0x5a4] ss:$24 sps:$4 sm:$0xff]   ;;  %v10034_v53 = vld [vmem:[%s13119_s12 + $0x728] ss:$24 sps:$4 sm:$0xff]  }
 0x863   : > { %6183 = vmatprep.subr.bf16.mxu1 %v9952_v54  ;;  %v9989_v54 = vld [vmem:[%s13119_s12 + $0x5a0] ss:$24 sps:$4 sm:$0xff]  }
 0x865   : > { %6359 = vmatpush1.bf16.msra.mxu0 %v9947_v56  ;;  %v10042_v56 = vld [vmem:[%s13119_s12 + $0x75c] ss:$24 sps:$4 sm:$0xff]  }
 0x866   : > { %6184 = vmatpush1.bf16.msra.mxu1 %v9950_v44  ;;  %6360 = vmatprep.subr.bf16.mxu0 %v9955_v57  ;;  %v9994_v44 = vld [vmem:[%s13119_s12 + $0x5d4] ss:$24 sps:$4 sm:$0xff]   ;;  %v10040_v57 = vld [vmem:[%s13119_s12 + $0x758] ss:$24 sps:$4 sm:$0xff]  }
 0x867   : > { %6185 = vmatprep.subr.bf16.mxu1 %v9958_v59  ;;  %v9992_v59 = vld [vmem:[%s13119_s12 + $0x5d0] ss:$24 sps:$4 sm:$0xff]  }
 0x869   : > { %6361 = vmatpush1.bf16.msra.mxu0 %v9953_v60  ;;  %v10048_v60 = vld [vmem:[%s13119_s12 + $0x78c] ss:$24 sps:$4 sm:$0xff]  }
 0x86a   : > { %6186 = vmatpush1.bf16.msra.mxu1 %v9956_v63  ;;  %6362 = vmatprep.subr.bf16.mxu0 %v9961_v25  ;;  %v9997_v63 = vld [vmem:[%s13119_s12 + $0x604] ss:$24 sps:$4 sm:$0xff]   ;;  %v10046_v25 = vld [vmem:[%s13119_s12 + $0x788] ss:$24 sps:$4 sm:$0xff]  }
 0x86b   : > { %6187 = vmatprep.subr.bf16.mxu1 %v9964_v58  ;;  %v9995_v58 = vld [vmem:[%s13119_s12 + $0x600] ss:$24 sps:$4 sm:$0xff]  }
 0x86d   : > { %6363 = vmatpush1.bf16.msra.mxu0 %v9959_v28  ;;  %v10003_v28 = vld [vmem:[%s13119_s12 + $0x634] ss:$24 sps:$4 sm:$0xff]  }
 0x86e   : > { %6188 = vmatpush1.bf16.msra.mxu1 %v9962_v40  ;;  %6364 = vmatprep.subr.bf16.mxu0 %v9967_v48  ;;  %v10054_v40 = vld [vmem:[%s13119_s12 + $0x7bc] ss:$24 sps:$4 sm:$0xff]   ;;  %v10052_v48 = vld [vmem:[%s13119_s12 + $0x7b8] ss:$24 sps:$4 sm:$0xff]  }
 0x86f   : > { %6189 = vmatprep.subr.bf16.mxu1 %v9970_v4  ;;  %v10001_v4 = vld [vmem:[%s13119_s12 + $0x630] ss:$24 sps:$4 sm:$0xff]  }
 0x871   : > { %6365 = vmatpush1.bf16.msra.mxu0 %v9965_v6  ;;  %v10060_v6 = vld [vmem:[%s13119_s12 + $0x7ec] ss:$24 sps:$4 sm:$0xff]  }
 0x872   : > { %6190 = vmatpush1.bf16.msra.mxu1 %v9968_v62  ;;  %6387 = vmatprep.subr.bf16.mxu0 %v10000_v8  ;;  %v10009_v62 = vld [vmem:[%s13119_s12 + $0x664] ss:$24 sps:$4 sm:$0xff]   ;;  %v10058_v8 = vld [vmem:[%s13119_s12 + $0x7e8] ss:$24 sps:$4 sm:$0xff]  }
 0x873   : > { %6191 = vmatprep.subr.bf16.mxu1 %v9973_v10  ;;  %v10007_v10 = vld [vmem:[%s13119_s12 + $0x660] ss:$24 sps:$4 sm:$0xff]  }
 0x874   : > { %6367 = vmatmul.mubr.bf16.vlgmr.msra.gmra.mrb[16].mxu0 %v11974_v49 }
 0x875   : > { %6376 = vmatprep.mubr.bf16.mxu0 %v12014_v19  ;;  %6388 = vmatpush1.bf16.msra.mxu0 %v9998_v11  ;;  %v10066_v11 = vld [vmem:[%s13119_s12 + $0x81c] ss:$24 sps:$4 sm:$0xff]  }
 0x876   : > { %6192 = vmatpush1.bf16.msra.mxu1 %v9971_v16  ;;  %6389 = vmatprep.subr.bf16.mxu0 %v10006_v61  ;;  %v10015_v16 = vld [vmem:[%s13119_s12 + $0x694] ss:$24 sps:$4 sm:$0xff]   ;;  %v10064_v61 = vld [vmem:[%s13119_s12 + $0x818] ss:$24 sps:$4 sm:$0xff]  }
 0x877   : > { %6193 = vmatprep.subr.bf16.mxu1 %v9976_v20  ;;  %v10013_v20 = vld [vmem:[%s13119_s12 + $0x690] ss:$24 sps:$4 sm:$0xff]  }
 0x879   : > { %6390 = vmatpush1.bf16.msra.mxu0 %v10004_v21  ;;  %v10072_v21 = vld [vmem:[%s13119_s12 + $0x84c] ss:$24 sps:$4 sm:$0xff]  }
 0x87a   : > { %6194 = vmatpush1.bf16.msra.mxu1 %v9974_v23  ;;  %6391 = vmatprep.subr.bf16.mxu0 %v10012_v22  ;;  %v10021_v23 = vld [vmem:[%s13119_s12 + $0x6c4] ss:$24 sps:$4 sm:$0xff]   ;;  %v10070_v22 = vld [vmem:[%s13119_s12 + $0x848] ss:$24 sps:$4 sm:$0xff]  }
 0x87b   : > { %6195 = vmatprep.subr.bf16.mxu1 %v9979_v24  ;;  %v10019_v24 = vld [vmem:[%s13119_s12 + $0x6c0] ss:$24 sps:$4 sm:$0xff]  }
 0x87c   : > { %6377 = vmatmul.mubr.bf16.gmra.mrb[20].mxu0 %v12009_v17 }
 0x87d   : > { %6392 = vmatpush1.bf16.msra.mxu0 %v10010_v26  ;;  %v10078_v26 = vld [vmem:[%s13119_s12 + $0x87c] ss:$24 sps:$4 sm:$0xff]  }
 0x87e   : > { %6196 = vmatpush1.bf16.msra.mxu1 %v9977_v29  ;;  %6393 = vmatprep.subr.bf16.mxu0 %v10018_v30  ;;  %v10027_v29 = vld [vmem:[%s13119_s12 + $0x6f4] ss:$24 sps:$4 sm:$0xff]   ;;  %v10076_v30 = vld [vmem:[%s13119_s12 + $0x878] ss:$24 sps:$4 sm:$0xff]  }
 0x87f   : > { %6197 = vmatprep.subr.bf16.mxu1 %v9982_v31  ;;  %v10025_v31 = vld [vmem:[%s13119_s12 + $0x6f0] ss:$24 sps:$4 sm:$0xff]  }
 0x881   : > { %6394 = vmatpush1.bf16.msra.mxu0 %v10016_v18  ;;  %v10084_v18 = vld [vmem:[%s13119_s12 + $0x8ac] ss:$24 sps:$4 sm:$0xff]  }
 0x882   : > { %6198 = vmatpush1.bf16.msra.mxu1 %v9980_v34  ;;  %6395 = vmatprep.subr.bf16.mxu0 %v10024_v36  ;;  %v10033_v34 = vld [vmem:[%s13119_s12 + $0x724] ss:$24 sps:$4 sm:$0xff]   ;;  %v10082_v36 = vld [vmem:[%s13119_s12 + $0x8a8] ss:$24 sps:$4 sm:$0xff]  }
 0x883   : > { %6199 = vmatprep.subr.bf16.mxu1 %v9985_v37  ;;  %v10031_v37 = vld [vmem:[%s13119_s12 + $0x720] ss:$24 sps:$4 sm:$0xff]  }
 0x885   : > { %6396 = vmatpush1.bf16.msra.mxu0 %v10022_v41  ;;  %v10090_v41 = vld [vmem:[%s13119_s12 + $0x8dc] ss:$24 sps:$4 sm:$0xff]  }
 0x886   : > { %6200 = vmatpush1.bf16.msra.mxu1 %v9983_v42  ;;  %6397 = vmatprep.subr.bf16.mxu0 %v10030_v43  ;;  %v10039_v42 = vld [vmem:[%s13119_s12 + $0x754] ss:$24 sps:$4 sm:$0xff]   ;;  %v10088_v43 = vld [vmem:[%s13119_s12 + $0x8d8] ss:$24 sps:$4 sm:$0xff]  }
 0x887   : > { %6201 = vmatprep.subr.bf16.mxu1 %v9988_v9  ;;  %v10037_v9 = vld [vmem:[%s13119_s12 + $0x750] ss:$24 sps:$4 sm:$0xff]  }
 0x889   : > { %6398 = vmatpush1.bf16.msra.mxu0 %v10028_v14  ;;  %v10045_v14 = vld [vmem:[%s13119_s12 + $0x784] ss:$24 sps:$4 sm:$0xff]  }
 0x88a   : > { %6202 = vmatpush1.bf16.msra.mxu1 %v9986_v32  ;;  %6399 = vmatprep.subr.bf16.mxu0 %v10036_v33  ;;  %v10043_v32 = vld [vmem:[%s13119_s12 + $0x780] ss:$24 sps:$4 sm:$0xff]   ;;  %v10051_v33 = vld [vmem:[%s13119_s12 + $0x7b4] ss:$24 sps:$4 sm:$0xff]  }
 0x88b   : > { %6203 = vmatprep.subr.bf16.mxu1 %v9991_v51  ;;  %v10049_v51 = vld [vmem:[%s13119_s12 + $0x7b0] ss:$24 sps:$4 sm:$0xff]  }
 0x88d   : > { %6400 = vmatpush1.bf16.msra.mxu0 %v10034_v53  ;;  %v10057_v53 = vld [vmem:[%s13119_s12 + $0x7e4] ss:$24 sps:$4 sm:$0xff]  }
 0x88e   : > { %6204 = vmatpush1.bf16.msra.mxu1 %v9989_v54  ;;  %6401 = vmatprep.subr.bf16.mxu0 %v10042_v56  ;;  %v10055_v54 = vld [vmem:[%s13119_s12 + $0x7e0] ss:$24 sps:$4 sm:$0xff]   ;;  %v10063_v56 = vld [vmem:[%s13119_s12 + $0x814] ss:$24 sps:$4 sm:$0xff]  }
 0x88f   : > { %6205 = vmatprep.subr.bf16.mxu1 %v9994_v44  ;;  %v10061_v44 = vld [vmem:[%s13119_s12 + $0x810] ss:$24 sps:$4 sm:$0xff]  }
 0x891   : > { %6402 = vmatpush1.bf16.msra.mxu0 %v10040_v57  ;;  %v10069_v57 = vld [vmem:[%s13119_s12 + $0x844] ss:$24 sps:$4 sm:$0xff]  }
 0x892   : > { %6206 = vmatpush1.bf16.msra.mxu1 %v9992_v59  ;;  %6403 = vmatprep.subr.bf16.mxu0 %v10048_v60  ;;  %v10067_v59 = vld [vmem:[%s13119_s12 + $0x840] ss:$24 sps:$4 sm:$0xff]   ;;  %v10075_v60 = vld [vmem:[%s13119_s12 + $0x874] ss:$24 sps:$4 sm:$0xff]  }
 0x893   : > { %6228 = vmatprep.subr.bf16.mxu1 %v9997_v63  ;;  %v10073_v63 = vld [vmem:[%s13119_s12 + $0x870] ss:$24 sps:$4 sm:$0xff]  }
 0x895   : > { %6208 = vmatmul.mubr.bf16.vlgmr.msra.gmra.mrb[32].mxu1 %v11974_v49  ;;  %6404 = vmatpush1.bf16.msra.mxu0 %v10046_v25  ;;  %v10081_v25 = vld [vmem:[%s13119_s12 + $0x8a4] ss:$24 sps:$4 sm:$0xff]  }
 0x896   : > { %6217 = vmatprep.mubr.bf16.mxu1 %v12014_v19  ;;  %6229 = vmatpush1.bf16.msra.mxu1 %v9995_v58  ;;  %v10079_v58 = vld [vmem:[%s13119_s12 + $0x8a0] ss:$24 sps:$4 sm:$0xff]  }
 0x897   : > { %6230 = vmatprep.subr.bf16.mxu1 %v10003_v28  ;;  %6405 = vmatprep.subr.bf16.mxu0 %v10054_v40  ;;  %v10087_v28 = vld [vmem:[%s13119_s12 + $0x8d4] ss:$24 sps:$4 sm:$0xff]   ;;  %v10085_v40 = vld [vmem:[%s13119_s12 + $0x8d0] ss:$24 sps:$4 sm:$0xff]  }
 0x899   : > { %6406 = vmatpush1.bf16.msra.mxu0 %v10052_v48  ;;  %v10093_v48 = vld [vmem:[%s13119_s12 + $0x14] ss:$24 sps:$4 sm:$0xff]  }
 0x89a   : > { %6231 = vmatpush1.bf16.msra.mxu1 %v10001_v4  ;;  %6407 = vmatprep.subr.bf16.mxu0 %v10060_v6  ;;  %v4158_v4 = vrot.slane %v11863_v3, %v11370_v50  ;;  %v4162_v6 = vrot.slane %v11863_v3, %v11339_v27 }
 0x89b   : > { %6232 = vmatprep.subr.bf16.mxu1 %v10009_v62 }
 0x89d   : > { %6218 = vmatmul.mubr.bf16.gmra.mrb[36].mxu1 %v12009_v17  ;;  %6408 = vmatpush1.bf16.msra.mxu0 %v10058_v8 }
 0x89e   : > { %6233 = vmatpush1.bf16.msra.mxu1 %v10007_v10  ;;  %6409 = vmatprep.subr.bf16.mxu0 %v10066_v11 }
 0x89f   : > { %6234 = vmatprep.subr.bf16.mxu1 %v10015_v16 }
 0x8a1   : > { %6410 = vmatpush1.bf16.msra.mxu0 %v10064_v61 }
 0x8a2   : > { %6235 = vmatpush1.bf16.msra.mxu1 %v10013_v20  ;;  %6411 = vmatprep.subr.bf16.mxu0 %v10072_v21 }
 0x8a3   : > { %6236 = vmatprep.subr.bf16.mxu1 %v10021_v23 }
 0x8a5   : > { %6412 = vmatpush1.bf16.msra.mxu0 %v10070_v22 }
 0x8a6   : > { %6237 = vmatpush1.bf16.msra.mxu1 %v10019_v24  ;;  %6413 = vmatprep.subr.bf16.mxu0 %v10078_v26 }
 0x8a7   : > { %6238 = vmatprep.subr.bf16.mxu1 %v10027_v29 }
 0x8a9   : > { %6414 = vmatpush1.bf16.msra.mxu0 %v10076_v30 }
 0x8aa   : > { %6239 = vmatpush1.bf16.msra.mxu1 %v10025_v31  ;;  %6415 = vmatprep.subr.bf16.mxu0 %v10084_v18 }
 0x8ab   : > { %6240 = vmatprep.subr.bf16.mxu1 %v10033_v34 }
 0x8ad   : > { %6416 = vmatpush1.bf16.msra.mxu0 %v10082_v36 }
 0x8ae   : > { %6241 = vmatpush1.bf16.msra.mxu1 %v10031_v37  ;;  %6417 = vmatprep.subr.bf16.mxu0 %v10090_v41 }
 0x8af   : > { %6242 = vmatprep.subr.bf16.mxu1 %v10039_v42 }
 0x8b1   : > { %6418 = vmatpush1.bf16.msra.mxu0 %v10088_v43 }
 0x8b2   : > { %6243 = vmatpush1.bf16.msra.mxu1 %v10037_v9  ;;  %v10091_v9 = vld [vmem:[%s13119_s12 + $0x10] ss:$24 sps:$4 sm:$0xff]  }
 0x8b3   : > { %6244 = vmatprep.subr.bf16.mxu1 %v10045_v14 }
 0x8b6   : > { %6245 = vmatpush1.bf16.msra.mxu1 %v10043_v32 }
 0x8b7   : > { %6246 = vmatprep.subr.bf16.mxu1 %v10051_v33 }
 0x8ba   : > { %6247 = vmatpush1.bf16.msra.mxu1 %v10049_v51 }
 0x8bb   : > { %6248 = vmatprep.subr.bf16.mxu1 %v10057_v53 }
 0x8be   : > { %6249 = vmatpush1.bf16.msra.mxu1 %v10055_v54 }
 0x8bf   : > { %6250 = vmatprep.subr.bf16.mxu1 %v10063_v56  ;;  %v10094_v56 = vld [vmem:[%s13119_s12 + $0x40] ss:$24 sps:$4 sm:$0xff]  }
 0x8c2   : > { %6251 = vmatpush1.bf16.msra.mxu1 %v10061_v44 }
 0x8c3   : > { %6252 = vmatprep.subr.bf16.mxu1 %v10069_v57 }
 0x8c6   : > { %6253 = vmatpush1.bf16.msra.mxu1 %v10067_v59  ;;  %v10099_v59 = vld [vmem:[%s13119_s12 + $0x74] ss:$24 sps:$4 sm:$0xff]  }
 0x8c7   : > { %6254 = vmatprep.subr.bf16.mxu1 %v10075_v60 }
 0x8ca   : > { %6255 = vmatpush1.bf16.msra.mxu1 %v10073_v63 }
 0x8cb   : > { %6256 = vmatprep.subr.bf16.mxu1 %v10081_v25 }
 0x8ce   : > { %6257 = vmatpush1.bf16.msra.mxu1 %v10079_v58 }
 0x8cf   : > { %6258 = vmatprep.subr.bf16.mxu1 %v10087_v28  ;;  %v10097_v28 = vld [vmem:[%s13119_s12 + $0x70] ss:$24 sps:$4 sm:$0xff]  }
 0x8d2   : > { %6259 = vmatpush1.bf16.msra.mxu1 %v10085_v40  ;;  %v10102_v40 = vld [vmem:[%s13119_s12 + $0xa4] ss:$24 sps:$4 sm:$0xff]  }
 0x8d3   : > { %6440 = vmatprep.subr.bf16.mxu1 %v10093_v48  ;;  %v10103_v48 = vld [vmem:[%s13119_s12 + $0xd0] ss:$24 sps:$4 sm:$0xff]  }
 0x8e8   : > { %v4315_v62 = vpop.f32.mrb[24].mxu1 }
 0x8e9   : > { %v4316_v8 = vadd.f32 %v4315_v62, %v4158_v4  ;;  %v4317_v10 = vpop.f32.mrb[25].mxu1  ;;  %v10109_v62 = vld [vmem:[%s13119_s12 + $0x130] ss:$24 sps:$4 sm:$0xff]  }
 0x8ea   : > { %v4318_v11 = vadd.f32 %v4317_v10, %v4162_v6  ;;  %v4319_v16 = vpop.f32.mrb[26].mxu1  ;;  %v10112_v10 = vld [vmem:[%s13119_s12 + $0x160] ss:$24 sps:$4 sm:$0xff]  }
 0x8eb   : > { %v4338_v61 = vmax.f32 %v4316_v8, 0.0  ;;  %v4320_v20 = vadd.f32 %v4319_v16, %v4158_v4  ;;  %v4321_v21 = vpop.f32.mrb[27].mxu1  ;;  %v10114_v8 = vld [vmem:[%s13119_s12 + $0x164] ss:$24 sps:$4 sm:$0xff]   ;;  %v10115_v16 = vld [vmem:[%s13119_s12 + $0x190] ss:$24 sps:$4 sm:$0xff]  }
 0x8ec   : > { %v4339_v23 = vmax.f32 %v4318_v11, 0.0  ;;  %v4322_v22 = vadd.f32 %v4321_v21, %v4162_v6  ;;  %v10117_v11 = vld [vmem:[%s13119_s12 + $0x194] ss:$24 sps:$4 sm:$0xff]  }
 0x8ed   : > { %v4344_v24 = vmax.f32 %v4320_v20, 0.0  ;;  %v4362_v29 = vmul.f32 %v4338_v61, %v10883_v1  ;;  %v10120_v61 = vld [vmem:[%s13119_s12 + $0x1c4] ss:$24 sps:$4 sm:$0xff]   ;;  %v10118_v20 = vld [vmem:[%s13119_s12 + $0x1c0] ss:$24 sps:$4 sm:$0xff]  }
 0x8ee   : > { %v4345_v26 = vmax.f32 %v4322_v22, 0.0  ;;  %v4363_v31 = vmul.f32 %v4339_v23, %v10883_v1  ;;  %v10096_v1 = vld [vmem:[%s13119_s12 + $0x44] ss:$24 sps:$4 sm:$0xff]   ;;  %v10123_v21 = vld [vmem:[%s13119_s12 + $0x1f4] ss:$24 sps:$4 sm:$0xff]  }
 0x8ef   : > { %v4368_v30 = vmul.f32 %v4344_v24, %v10901_v12  ;;  %v10121_v23 = vld [vmem:[%s13119_s12 + $0x1f0] ss:$24 sps:$4 sm:$0xff]   ;;  %v10126_v22 = vld [vmem:[%s13119_s12 + $0x224] ss:$24 sps:$4 sm:$0xff]   ;;  %v10124_v24 = vld [vmem:[%s13119_s12 + $0x220] ss:$24 sps:$4 sm:$0xff]  }
 0x8f0   : > { %v4369_v3 = vmul.f32 %v4345_v26, %v10901_v12  ;;  %v4325_v18 = vpop.f32.mrb[28].mxu1  ;;  %v10129_v26 = vld [vmem:[%s13119_s12 + $0x254] ss:$24 sps:$4 sm:$0xff]  }
 0x8f1   : > { %v12388_v34 = vpack.c.bf16 %v4368_v30, %v4362_v29  ;;  %v4326_v36 = vadd.f32 %v4325_v18, %v4158_v4  ;;  %v4327_v37 = vpop.f32.mrb[29].mxu1  ;;  %v10127_v29 = vld [vmem:[%s13119_s12 + $0x250] ss:$24 sps:$4 sm:$0xff]   ;;  %v10132_v30 = vld [vmem:[%s13119_s12 + $0x284] ss:$24 sps:$4 sm:$0xff]  }
 0x8f2   : > { %v4328_v41 = vadd.f32 %v4327_v37, %v4162_v6  ;;  %v4329_v42 = vpop.f32.mrb[30].mxu1  ;;  %v12390_v43 = vpack.c.bf16 %v4369_v3, %v4363_v31  ;;  %v10130_v31 = vld [vmem:[%s13119_s12 + $0x280] ss:$24 sps:$4 sm:$0xff]   ;;  %v10135_v3 = vld [vmem:[%s13119_s12 + $0x2b4] ss:$24 sps:$4 sm:$0xff]  }
 0x8f3   : > { %v4350_v14 = vmax.f32 %v4326_v36, 0.0  ;;  %v4330_v32 = vadd.f32 %v4329_v42, %v4158_v4  ;;  %v4331_v33 = vpop.f32.mrb[31].mxu1  ;;  %v10106_v4 = vld [vmem:[%s13119_s12 + $0x100] ss:$24 sps:$4 sm:$0xff]   ;;  %v10133_v18 = vld [vmem:[%s13119_s12 + $0x2b0] ss:$24 sps:$4 sm:$0xff]  }
 0x8f4   : > { %v4351_v12 = vmax.f32 %v4328_v41, 0.0  ;;  %v4332_v51 = vadd.f32 %v4331_v33, %v4162_v6  ;;  %6260 = vmatprep.mubr.bf16.mxu1 %v12390_v43  ;;  %6419 = vmatprep.mubr.bf16.mxu0 %v12390_v43  ;;  %v10111_v6 = vld [vmem:[%s13119_s12 + $0x134] ss:$24 sps:$4 sm:$0xff]   ;;  %v10138_v36 = vld [vmem:[%s13119_s12 + $0x2e4] ss:$24 sps:$4 sm:$0xff]  }
 0x8f5   : > { %v4356_v53 = vmax.f32 %v4330_v32, 0.0  ;;  %6261 = vmatmul.mubr.bf16.vlgmr.msra.gmra.mrb[32].mxu1 %v12388_v34  ;;  %6420 = vmatmul.mubr.bf16.vlgmr.msra.gmra.mrb[16].mxu0 %v12388_v34  ;;  %v4374_v44 = vmul.f32 %v4350_v14, %v10885_v2  ;;  %v10136_v37 = vld [vmem:[%s13119_s12 + $0x2e0] ss:$24 sps:$4 sm:$0xff]   ;;  %v10141_v41 = vld [vmem:[%s13119_s12 + $0x314] ss:$24 sps:$4 sm:$0xff]  }
 0x8f6   : > { %v4357_v54 = vmax.f32 %v4332_v51, 0.0  ;;  %6441 = vmatpush1.bf16.msra.mxu1 %v10091_v9  ;;  %v4375_v60 = vmul.f32 %v4351_v12, %v10885_v2  ;;  %v10100_v2 = vld [vmem:[%s13119_s12 + $0xa0] ss:$24 sps:$4 sm:$0xff]   ;;  %v10139_v42 = vld [vmem:[%s13119_s12 + $0x310] ss:$24 sps:$4 sm:$0xff]  }
 0x8f7   : > { %v4380_v57 = vmul.f32 %v4356_v53, %v10905_v15  ;;  %6442 = vmatprep.subr.bf16.mxu1 %v10096_v1  ;;  %v10144_v9 = vld [vmem:[%s13119_s12 + $0x344] ss:$24 sps:$4 sm:$0xff]   ;;  %v10142_v14 = vld [vmem:[%s13119_s12 + $0x340] ss:$24 sps:$4 sm:$0xff]   ;;  %v10147_v32 = vld [vmem:[%s13119_s12 + $0x374] ss:$24 sps:$4 sm:$0xff]  }
 0x8f8   : > { %v4381_v63 = vmul.f32 %v4357_v54, %v10905_v15  ;;  %v10105_v15 = vld [vmem:[%s13119_s12 + $0xd4] ss:$24 sps:$4 sm:$0xff]   ;;  %v10145_v33 = vld [vmem:[%s13119_s12 + $0x370] ss:$24 sps:$4 sm:$0xff]   ;;  %v10162_v54 = vld [vmem:[%s13119_s12 + $0x464] ss:$24 sps:$4 sm:$0xff]  }
 0x8f9   : > { %v12412_v25 = vpack.c.bf16 %v4380_v57, %v4374_v44  ;;  %v10153_v1 = vld [vmem:[%s13119_s12 + $0x3d4] ss:$24 sps:$4 sm:$0xff]   ;;  %v10151_v12 = vld [vmem:[%s13119_s12 + $0x3d0] ss:$24 sps:$4 sm:$0xff]  }
 0x8fa   : > { %6443 = vmatpush1.bf16.msra.mxu1 %v10094_v56  ;;  %v12414_v58 = vpack.c.bf16 %v4381_v63, %v4375_v60  ;;  %v10159_v51 = vld [vmem:[%s13119_s12 + $0x434] ss:$24 sps:$4 sm:$0xff]   ;;  %v10157_v53 = vld [vmem:[%s13119_s12 + $0x430] ss:$24 sps:$4 sm:$0xff]   ;;  %v10160_v56 = vld [vmem:[%s13119_s12 + $0x460] ss:$24 sps:$4 sm:$0xff]  }
 0x8fb   : > { %6444 = vmatprep.subr.bf16.mxu1 %v10099_v59  ;;  %v10165_v44 = vld [vmem:[%s13119_s12 + $0x494] ss:$24 sps:$4 sm:$0xff]   ;;  %v10163_v57 = vld [vmem:[%s13119_s12 + $0x490] ss:$24 sps:$4 sm:$0xff]   ;;  %v10168_v59 = vld [vmem:[%s13119_s12 + $0x4c4] ss:$24 sps:$4 sm:$0xff]  }
 0x8fc   : > { %6270 = vmatprep.mubr.bf16.mxu1 %v12414_v58  ;;  %6429 = vmatprep.mubr.bf16.mxu0 %v12414_v58  ;;  %v10166_v60 = vld [vmem:[%s13119_s12 + $0x4c0] ss:$24 sps:$4 sm:$0xff]   ;;  %v10171_v63 = vld [vmem:[%s13119_s12 + $0x4f4] ss:$24 sps:$4 sm:$0xff]  }
 0x8fd   : > { %6271 = vmatmul.mubr.bf16.gmra.mrb[36].mxu1 %v12412_v25  ;;  %6430 = vmatmul.mubr.bf16.gmra.mrb[20].mxu0 %v12412_v25 }
 0x8fe   : > { %6445 = vmatpush1.bf16.msra.mxu1 %v10097_v28  ;;  %6472 = vmatprep.mubr.bf16.mxu1 %v11899_v46  ;;  %v10108_v46 = vld [vmem:[%s13119_s12 + $0x104] ss:$24 sps:$4 sm:$0xff]   ;;  %v10169_v28 = vld [vmem:[%s13119_s12 + $0x4f0] ss:$24 sps:$4 sm:$0xff]  }
 0x8ff   : > { %6446 = vmatprep.subr.bf16.mxu1 %v10102_v40  ;;  %6728 = vmatprep.mubr.bf16.mxu0 %v10359_v39  ;;  %v10174_v40 = vld [vmem:[%s13119_s12 + $0x524] ss:$24 sps:$4 sm:$0xff]  }
 0x902   : > { %6447 = vmatpush1.bf16.msra.mxu1 %v10100_v2  ;;  %v10172_v2 = vld [vmem:[%s13119_s12 + $0x520] ss:$24 sps:$4 sm:$0xff]  }
 0x903   : > { %6448 = vmatprep.subr.bf16.mxu1 %v10105_v15  ;;  %v10177_v15 = vld [vmem:[%s13119_s12 + $0x554] ss:$24 sps:$4 sm:$0xff]  }
 0x906   : > { %6449 = vmatpush1.bf16.msra.mxu1 %v10103_v48  ;;  %v10175_v48 = vld [vmem:[%s13119_s12 + $0x550] ss:$24 sps:$4 sm:$0xff]  }
 0x907   : > { %6450 = vmatprep.subr.bf16.mxu1 %v10108_v46  ;;  %v10180_v46 = vld [vmem:[%s13119_s12 + $0x584] ss:$24 sps:$4 sm:$0xff]  }
 0x90a   : > { %6451 = vmatpush1.bf16.msra.mxu1 %v10106_v4  ;;  %v10178_v4 = vld [vmem:[%s13119_s12 + $0x580] ss:$24 sps:$4 sm:$0xff]  }
 0x90b   : > { %6452 = vmatprep.subr.bf16.mxu1 %v10111_v6  ;;  %v10183_v6 = vld [vmem:[%s13119_s12 + $0x5b4] ss:$24 sps:$4 sm:$0xff]  }
 0x90e   : > { %6453 = vmatpush1.bf16.msra.mxu1 %v10109_v62  ;;  %v10181_v62 = vld [vmem:[%s13119_s12 + $0x5b0] ss:$24 sps:$4 sm:$0xff]  }
 0x90f   : > { %6454 = vmatprep.subr.bf16.mxu1 %v10114_v8  ;;  %v10186_v8 = vld [vmem:[%s13119_s12 + $0x5e4] ss:$24 sps:$4 sm:$0xff]  }
 0x912   : > { %6455 = vmatpush1.bf16.msra.mxu1 %v10112_v10  ;;  %v10184_v10 = vld [vmem:[%s13119_s12 + $0x5e0] ss:$24 sps:$4 sm:$0xff]  }
 0x913   : > { %6456 = vmatprep.subr.bf16.mxu1 %v10117_v11  ;;  %v10189_v11 = vld [vmem:[%s13119_s12 + $0x614] ss:$24 sps:$4 sm:$0xff]  }
 0x916   : > { %6457 = vmatpush1.bf16.msra.mxu1 %v10115_v16  ;;  %v10187_v16 = vld [vmem:[%s13119_s12 + $0x610] ss:$24 sps:$4 sm:$0xff]  }
 0x917   : > { %6458 = vmatprep.subr.bf16.mxu1 %v10120_v61  ;;  %v10192_v61 = vld [vmem:[%s13119_s12 + $0x644] ss:$24 sps:$4 sm:$0xff]  }
 0x91a   : > { %6459 = vmatpush1.bf16.msra.mxu1 %v10118_v20  ;;  %v10190_v20 = vld [vmem:[%s13119_s12 + $0x640] ss:$24 sps:$4 sm:$0xff]  }
 0x91b   : > { %6460 = vmatprep.subr.bf16.mxu1 %v10123_v21  ;;  %v10195_v21 = vld [vmem:[%s13119_s12 + $0x674] ss:$24 sps:$4 sm:$0xff]  }
 0x91e   : > { %6461 = vmatpush1.bf16.msra.mxu1 %v10121_v23  ;;  %v10193_v23 = vld [vmem:[%s13119_s12 + $0x670] ss:$24 sps:$4 sm:$0xff]  }
 0x91f   : > { %6462 = vmatprep.subr.bf16.mxu1 %v10126_v22  ;;  %v10201_v22 = vld [vmem:[%s13119_s12 + $0x6d4] ss:$24 sps:$4 sm:$0xff]  }
 0x922   : > { %6463 = vmatpush1.bf16.msra.mxu1 %v10124_v24  ;;  %v10199_v24 = vld [vmem:[%s13119_s12 + $0x6d0] ss:$24 sps:$4 sm:$0xff]  }
 0x923   : > { %6464 = vmatprep.subr.bf16.mxu1 %v10129_v26  ;;  %v10207_v26 = vld [vmem:[%s13119_s12 + $0x734] ss:$24 sps:$4 sm:$0xff]  }
 0x926   : > { %6465 = vmatpush1.bf16.msra.mxu1 %v10127_v29  ;;  %v10205_v29 = vld [vmem:[%s13119_s12 + $0x730] ss:$24 sps:$4 sm:$0xff]  }
 0x927   : > { %6466 = vmatprep.subr.bf16.mxu1 %v10132_v30  ;;  %v10210_v30 = vld [vmem:[%s13119_s12 + $0x764] ss:$24 sps:$4 sm:$0xff]  }
 0x92a   : > { %6467 = vmatpush1.bf16.msra.mxu1 %v10130_v31  ;;  %v10208_v31 = vld [vmem:[%s13119_s12 + $0x760] ss:$24 sps:$4 sm:$0xff]  }
 0x92b   : > { %6468 = vmatprep.subr.bf16.mxu1 %v10135_v3  ;;  %v10213_v3 = vld [vmem:[%s13119_s12 + $0x794] ss:$24 sps:$4 sm:$0xff]  }
 0x92e   : > { %6469 = vmatpush1.bf16.msra.mxu1 %v10133_v18  ;;  %v10211_v18 = vld [vmem:[%s13119_s12 + $0x790] ss:$24 sps:$4 sm:$0xff]  }
 0x92f   : > { %6470 = vmatprep.subr.bf16.mxu1 %v10138_v36  ;;  %v10216_v36 = vld [vmem:[%s13119_s12 + $0x7c4] ss:$24 sps:$4 sm:$0xff]  }
 0x932   : > { %6471 = vmatpush1.bf16.msra.mxu1 %v10136_v37  ;;  %v10214_v37 = vld [vmem:[%s13119_s12 + $0x7c0] ss:$24 sps:$4 sm:$0xff]  }
 0x933   : > { %6493 = vmatprep.subr.bf16.mxu1 %v10141_v41  ;;  %v10219_v41 = vld [vmem:[%s13119_s12 + $0x7f4] ss:$24 sps:$4 sm:$0xff]  }
 0x935   : > { %6473 = vmatmul.mubr.bf16.vlgmr.msra.gmra.mrb[40].mxu1 %v11894_v38  ;;  %v10150_v38 = vld [vmem:[%s13119_s12 + $0x3a4] ss:$24 sps:$4 sm:$0xff]  }
 0x936   : > { %6482 = vmatprep.mubr.bf16.mxu1 %v11941_v5  ;;  %6494 = vmatpush1.bf16.msra.mxu1 %v10139_v42  ;;  %v10148_v5 = vld [vmem:[%s13119_s12 + $0x3a0] ss:$24 sps:$4 sm:$0xff]   ;;  %v10217_v42 = vld [vmem:[%s13119_s12 + $0x7f0] ss:$24 sps:$4 sm:$0xff]  }
 0x937   : > { %6495 = vmatprep.subr.bf16.mxu1 %v10144_v9  ;;  %v10222_v9 = vld [vmem:[%s13119_s12 + $0x824] ss:$24 sps:$4 sm:$0xff]  }
 0x93a   : > { %6496 = vmatpush1.bf16.msra.mxu1 %v10142_v14  ;;  %v10220_v14 = vld [vmem:[%s13119_s12 + $0x820] ss:$24 sps:$4 sm:$0xff]  }
 0x93b   : > { %6497 = vmatprep.subr.bf16.mxu1 %v10147_v32  ;;  %v10225_v32 = vld [vmem:[%s13119_s12 + $0x854] ss:$24 sps:$4 sm:$0xff]  }
 0x93d   : > { %6483 = vmatmul.mubr.bf16.gmra.mrb[44].mxu1 %v11938_v13  ;;  %v10156_v13 = vld [vmem:[%s13119_s12 + $0x404] ss:$24 sps:$4 sm:$0xff]  }
 0x93e   : > { %6498 = vmatpush1.bf16.msra.mxu1 %v10145_v33  ;;  %6525 = vmatprep.mubr.bf16.mxu1 %v11980_v55  ;;  %v10154_v55 = vld [vmem:[%s13119_s12 + $0x400] ss:$24 sps:$4 sm:$0xff]   ;;  %v10223_v33 = vld [vmem:[%s13119_s12 + $0x850] ss:$24 sps:$4 sm:$0xff]  }
 0x93f   : > { %6499 = vmatprep.subr.bf16.mxu1 %v10150_v38  ;;  %v10228_v38 = vld [vmem:[%s13119_s12 + $0x884] ss:$24 sps:$4 sm:$0xff]  }
 0x942   : > { %6500 = vmatpush1.bf16.msra.mxu1 %v10148_v5  ;;  %v10226_v5 = vld [vmem:[%s13119_s12 + $0x880] ss:$24 sps:$4 sm:$0xff]  }
 0x943   : > { %6501 = vmatprep.subr.bf16.mxu1 %v10153_v1  ;;  %v10231_v1 = vld [vmem:[%s13119_s12 + $0x8b4] ss:$24 sps:$4 sm:$0xff]  }
 0x946   : > { %6502 = vmatpush1.bf16.msra.mxu1 %v10151_v12  ;;  %v10229_v12 = vld [vmem:[%s13119_s12 + $0x8b0] ss:$24 sps:$4 sm:$0xff]  }
 0x947   : > { %6503 = vmatprep.subr.bf16.mxu1 %v10156_v13  ;;  %v10234_v13 = vld [vmem:[%s13119_s12 + $0x8e4] ss:$24 sps:$4 sm:$0xff]  }
 0x94a   : > { %6504 = vmatpush1.bf16.msra.mxu1 %v10154_v55  ;;  %v10232_v55 = vld [vmem:[%s13119_s12 + $0x8e0] ss:$24 sps:$4 sm:$0xff]  }
 0x94b   : > { %6505 = vmatprep.subr.bf16.mxu1 %v10159_v51 }
 0x94e   : > { %6506 = vmatpush1.bf16.msra.mxu1 %v10157_v53 }
 0x94f   : > { %6507 = vmatprep.subr.bf16.mxu1 %v10162_v54 }
 0x952   : > { %6508 = vmatpush1.bf16.msra.mxu1 %v10160_v56 }
 0x953   : > { %6509 = vmatprep.subr.bf16.mxu1 %v10165_v44 }
 0x956   : > { %6510 = vmatpush1.bf16.msra.mxu1 %v10163_v57 }
 0x957   : > { %6511 = vmatprep.subr.bf16.mxu1 %v10168_v59 }
 0x95a   : > { %6512 = vmatpush1.bf16.msra.mxu1 %v10166_v60 }
 0x95b   : > { %6513 = vmatprep.subr.bf16.mxu1 %v10171_v63 }
 0x95e   : > { %6514 = vmatpush1.bf16.msra.mxu1 %v10169_v28 }
 0x95f   : > { %6515 = vmatprep.subr.bf16.mxu1 %v10174_v40 }
 0x962   : > { %6516 = vmatpush1.bf16.msra.mxu1 %v10172_v2 }
 0x963   : > { %6517 = vmatprep.subr.bf16.mxu1 %v10177_v15 }
 0x966   : > { %6518 = vmatpush1.bf16.msra.mxu1 %v10175_v48 }
 0x967   : > { %6519 = vmatprep.subr.bf16.mxu1 %v10180_v46 }
 0x96a   : > { %6520 = vmatpush1.bf16.msra.mxu1 %v10178_v4 }
 0x96b   : > { %6521 = vmatprep.subr.bf16.mxu1 %v10183_v6 }
 0x96e   : > { %6522 = vmatpush1.bf16.msra.mxu1 %v10181_v62 }
 0x96f   : > { %6523 = vmatprep.subr.bf16.mxu1 %v10186_v8 }
 0x972   : > { %6524 = vmatpush1.bf16.msra.mxu1 %v10184_v10 }
 0x973   : > { %6546 = vmatprep.subr.bf16.mxu1 %v10189_v11 }
 0x975   : > { %6526 = vmatmul.mubr.bf16.vlgmr.msra.gmra.mrb[40].mxu1 %v11974_v49  ;;  %v10198_v49 = vld [vmem:[%s13119_s12 + $0x6a4] ss:$24 sps:$4 sm:$0xff]  }
 0x976   : > { %6535 = vmatprep.mubr.bf16.mxu1 %v12014_v19  ;;  %6547 = vmatpush1.bf16.msra.mxu1 %v10187_v16  ;;  %v10196_v19 = vld [vmem:[%s13119_s12 + $0x6a0] ss:$24 sps:$4 sm:$0xff]  }
 0x977   : > { %6548 = vmatprep.subr.bf16.mxu1 %v10192_v61 }
 0x97a   : > { %6549 = vmatpush1.bf16.msra.mxu1 %v10190_v20 }
 0x97b   : > { %6550 = vmatprep.subr.bf16.mxu1 %v10195_v21 }
 0x97d   : > { %6536 = vmatmul.mubr.bf16.gmra.mrb[44].mxu1 %v12009_v17  ;;  %v10204_v17 = vld [vmem:[%s13119_s12 + $0x704] ss:$24 sps:$4 sm:$0xff]  }
 0x97e   : > { %6551 = vmatpush1.bf16.msra.mxu1 %v10193_v23  ;;  %6578 = vmatprep.mubr.bf16.mxu1 %v12390_v43  ;;  %v10202_v43 = vld [vmem:[%s13119_s12 + $0x700] ss:$24 sps:$4 sm:$0xff]  }
 0x97f   : > { %6552 = vmatprep.subr.bf16.mxu1 %v10198_v49 }
 0x982   : > { %6553 = vmatpush1.bf16.msra.mxu1 %v10196_v19 }
 0x983   : > { %6554 = vmatprep.subr.bf16.mxu1 %v10201_v22 }
 0x986   : > { %6555 = vmatpush1.bf16.msra.mxu1 %v10199_v24 }
 0x987   : > { %6556 = vmatprep.subr.bf16.mxu1 %v10204_v17 }
 0x98a   : > { %6557 = vmatpush1.bf16.msra.mxu1 %v10202_v43 }
 0x98b   : > { %6558 = vmatprep.subr.bf16.mxu1 %v10207_v26 }
 0x98e   : > { %6559 = vmatpush1.bf16.msra.mxu1 %v10205_v29  ;;  %v10304_v29 = vld [vmem:[%s13126_s20 + $0x8] sm:$0xff] }
 0x98f   : > { %6560 = vmatprep.subr.bf16.mxu1 %v10210_v30  ;;  %v12722_v30 = vpack.c.bf16 %v10304_v29, %v10304_v29 }
 0x992   : > { %6561 = vmatpush1.bf16.msra.mxu1 %v10208_v31  ;;  %v10305_v31 = vld [vmem:[%s13126_s20] sm:$0xff] }
 0x993   : > { %6562 = vmatprep.subr.bf16.mxu1 %v10213_v3  ;;  %v12731_v3 = vpack.c.bf16 %v10305_v31, %v10305_v31 }
 0x996   : > { %6563 = vmatpush1.bf16.msra.mxu1 %v10211_v18  ;;  %v10306_v18 = vld [vmem:[%s13126_s20 + $0x18] sm:$0xff] }
 0x997   : > { %6564 = vmatprep.subr.bf16.mxu1 %v10216_v36  ;;  %v12736_v36 = vpack.c.bf16 %v10306_v18, %v10306_v18 }
 0x99a   : > { %6565 = vmatpush1.bf16.msra.mxu1 %v10214_v37 }
 0x99b   : > { %6566 = vmatprep.subr.bf16.mxu1 %v10219_v41 }
 0x99e   : > { %6567 = vmatpush1.bf16.msra.mxu1 %v10217_v42 }
 0x99f   : > { %6568 = vmatprep.subr.bf16.mxu1 %v10222_v9 }
 0x9a2   : > { %6569 = vmatpush1.bf16.msra.mxu1 %v10220_v14 }
 0x9a3   : > { %6570 = vmatprep.subr.bf16.mxu1 %v10225_v32 }
 0x9a6   : > { %6571 = vmatpush1.bf16.msra.mxu1 %v10223_v33 }
 0x9a7   : > { %6572 = vmatprep.subr.bf16.mxu1 %v10228_v38 }
 0x9aa   : > { %6573 = vmatpush1.bf16.msra.mxu1 %v10226_v5 }
 0x9ab   : > { %6574 = vmatprep.subr.bf16.mxu1 %v10231_v1 }
 0x9ae   : > { %6575 = vmatpush1.bf16.msra.mxu1 %v10229_v12 }
 0x9af   : > { %6576 = vmatprep.subr.bf16.mxu1 %v10234_v13 }
 0x9b2   : > { %6577 = vmatpush1.bf16.msra.mxu1 %v10232_v55 }
 0x9b5   : > { %6579 = vmatmul.mubr.bf16.vlgmr.msra.gmra.mrb[40].mxu1 %v12388_v34 }
 0x9b6   : > { %6588 = vmatprep.mubr.bf16.mxu1 %v12414_v58 }
 0x9bd   : > { %6589 = vmatmul.mubr.bf16.gmra.mrb[44].mxu1 %v12412_v25 }
 0x9be   : > { %6675 = vmatprep.mubr.bf16.mxu1 %v10359_v39 }
 0x9c8   : > { %v6262_v51 = vpop.f32.mrb[32].mxu1  ;;  %v6421_v53 = vpop.f32.mrb[16].mxu0 }
 0x9c9   : > { %v6264_v54 = vpop.f32.mrb[33].mxu1  ;;  %v6423_v56 = vpop.f32.mrb[17].mxu0 }
 0x9ca   : > { %v6266_v44 = vpop.f32.mrb[34].mxu1  ;;  %v6425_v57 = vpop.f32.mrb[18].mxu0 }
 0x9cb   : > { %v6599_v59 = vpack.c.bf16 %v6266_v44, %v6262_v51  ;;  %v6601_v60 = vpack.c.bf16 %v6425_v57, %v6421_v53  ;;  %v6268_v63 = vpop.f32.mrb[35].mxu1  ;;  %v6427_v28 = vpop.f32.mrb[19].mxu0 }
 0x9cc   : > { %v6600_v40 = vpack.c.bf16 %v6268_v63, %v6264_v54  ;;  %v6602_v2 = vpack.c.bf16 %v6427_v28, %v6423_v56 }
 0x9ce   : > { %6643 = vmatprep.subr.bf16.mxu1 %v6600_v40  ;;  %6696 = vmatprep.subr.bf16.mxu0 %v6602_v2 }
 0x9cf   : > { %6644 = vmatpush1.bf16.msra.mxu1 %v6599_v59  ;;  %6697 = vmatpush1.bf16.msra.mxu0 %v6601_v60 }
 0x9d0   : > { %v6272_v34 = vpop.f32.mrb[36].mxu1  ;;  %v6431_v25 = vpop.f32.mrb[20].mxu0 }
 0x9d1   : > { %v6274_v58 = vpop.f32.mrb[37].mxu1  ;;  %v6433_v15 = vpop.f32.mrb[21].mxu0 }
 0x9d2   : > { %v6276_v48 = vpop.f32.mrb[38].mxu1  ;;  %v6435_v46 = vpop.f32.mrb[22].mxu0 }
 0x9d3   : > { %v6605_v4 = vpack.c.bf16 %v6276_v48, %v6272_v34  ;;  %v6607_v6 = vpack.c.bf16 %v6435_v46, %v6431_v25  ;;  %v6278_v62 = vpop.f32.mrb[39].mxu1  ;;  %v6437_v8 = vpop.f32.mrb[23].mxu0 }
 0x9d4   : > { %v6606_v10 = vpack.c.bf16 %v6278_v62, %v6274_v58  ;;  %v6608_v11 = vpack.c.bf16 %v6437_v8, %v6433_v15 }
 0x9d6   : > { %6645 = vmatprep.subr.bf16.mxu1 %v6606_v10  ;;  %6698 = vmatprep.subr.bf16.mxu0 %v6608_v11 }
 0x9d7   : > { %6646 = vmatpush1.bf16.msra.mxu1 %v6605_v4  ;;  %6699 = vmatpush1.bf16.msra.mxu0 %v6607_v6 }
 0x9d8   : > { %8878 = vmatprep.subr.msk.bf16.mxu1 %vm7099_vm1, %v12722_v30 }
 0x9da   : > { %8872 = vmatmul.mubr.msk.bf16.vlgmr.msra.gmra.mrb[48].mxu1 %vm1781_vm3, %v11731_v0  ;;  %8874 = vmatmul.mubr.msk.bf16.vlgmr.msra.gmra.mrb[24].mxu0 %vm1781_vm3, %v11731_v0 }
 0x9db   : > { %6685 = vmatprep.mubr.bf16.mxu1 %v10359_v39  ;;  %6738 = vmatprep.mubr.bf16.mxu0 %v10359_v39 }
 0x9e2   : > { %8873 = vmatmul.mubr.msk.bf16.gmra.mrb[52].mxu1 %vm1781_vm3, %v11742_v7  ;;  %8875 = vmatmul.mubr.msk.bf16.gmra.mrb[28].mxu0 %vm1781_vm3, %v11742_v7 }
 0x9e3   : > { %6781 = vmatprep.mubr.bf16.mxu0 %v10359_v39  ;;  %7150 = vmatprep.mubr.bf16.mxu1 %v10359_v39 }
 0xa88   : > { %v6580_v16 = vpop.f32.mrb[40].mxu1 }
 0xa89   : > { %v6582_v61 = vpop.f32.mrb[41].mxu1 }
 0xa8a   : > { %v6584_v20 = vpop.f32.mrb[42].mxu1 }
 0xa8b   : > { %v6603_v21 = vpack.c.bf16 %v6584_v20, %v6580_v16  ;;  %v6586_v23 = vpop.f32.mrb[43].mxu1 }
 0xa8c   : > { %v6604_v49 = vpack.c.bf16 %v6586_v23, %v6582_v61 }
 0xa8e   : > { %6749 = vmatprep.subr.bf16.mxu0 %v6604_v49 }
 0xa8f   : > { %6750 = vmatpush1.bf16.msra.mxu0 %v6603_v21 }
 0xa90   : > { %v6590_v19 = vpop.f32.mrb[44].mxu1 }
 0xa91   : > { %v6592_v22 = vpop.f32.mrb[45].mxu1 }
 0xa92   : > { %v6594_v24 = vpop.f32.mrb[46].mxu1 }
 0xa93   : > { %v6609_v17 = vpack.c.bf16 %v6594_v24, %v6590_v19  ;;  %v6596_v43 = vpop.f32.mrb[47].mxu1 }
 0xa94   : > { %v6610_v26 = vpack.c.bf16 %v6596_v43, %v6592_v22 }
 0xa96   : > { %6751 = vmatprep.subr.bf16.mxu0 %v6610_v26 }
 0xa97   : > { %6752 = vmatpush1.bf16.msra.mxu0 %v6609_v17 }
 0xa98   : > { %6956 = vmatprep.subr.bf16.mxu0 %v12722_v30 }
 0xa9a   : > { %8876 = vmatmul.mubr.msk.bf16.vlgmr.msra.gmra.mrb[32].mxu0 %vm1781_vm3, %v11731_v0  ;;  %v12745_v0 = vld [vmem:[%s13120_s13] sm:$0x3f] }
 0xa9b   : > { %6791 = vmatprep.mubr.bf16.mxu0 %v10359_v39  ;;  %v6616_v37 = vrot.slane %v12745_v0, %v10591_v45  ;;  %v6624_v41 = vrot.slane %v12745_v0, %v11130_v52  ;;  %v6620_v14 = vrot.slane %v12745_v0, %v10595_v47  ;;  %v6628_v32 = vrot.slane %v12745_v0, %v11104_v35 }
 0xaa0   : > { %6957 = vmatpush1.bf16.xpose.msra.mxu0 %v12731_v3 }
 0xaa1   : > { %6996 = vmatprep.subr.bf16.mxu0 %v12736_v36 }
 0xaa2   : > { %8877 = vmatmul.mubr.msk.bf16.gmra.mrb[36].mxu0 %vm1781_vm3, %v11742_v7  ;;  %vm8078_vm3 = vcmask 58368  }
 0xaad   : > { %v6677_v42 = vpop.f32.mrb[48].mxu1  ;;  %v6730_v9 = vpop.f32.mrb[24].mxu0 }
 0xaae   : > { %v6679_v7 = vpop.f32.mrb[49].mxu1  ;;  %v6732_v33 = vpop.f32.mrb[25].mxu0  ;;  %v12755_v1 = vadd.f32 %v6677_v42, %v6616_v37  ;;  %v12757_v12 = vadd.f32 %v6730_v9, %v6624_v41 }
 0xaaf   : > { %v6681_v38 = vpop.f32.mrb[50].mxu1  ;;  %v6734_v5 = vpop.f32.mrb[26].mxu0  ;;  %v12763_v51 = vadd.f32 %v6679_v7, %v6620_v14  ;;  %v12765_v47 = vadd.f32 %v6732_v33, %v6628_v32 }
 0xab0   : > { %v12759_v45 = vadd.f32 %v6681_v38, %v6616_v37  ;;  %v12761_v13 = vadd.f32 %v6734_v5, %v6624_v41  ;;  %v6683_v52 = vpop.f32.mrb[51].mxu1  ;;  %v6736_v55 = vpop.f32.mrb[27].mxu0  ;;  %v6802_v54 = vmax.f32 %v12755_v1, 0.0  ;;  %v6804_v56 = vmax.f32 %v12757_v12, 0.0 }
 0xab1   : > { %v12767_v53 = vadd.f32 %v6683_v52, %v6620_v14  ;;  %v12769_v35 = vadd.f32 %v6736_v55, %v6628_v32  ;;  %v6803_v44 = vmax.f32 %v12763_v51, 0.0  ;;  %v6805_v57 = vmax.f32 %v12765_v47, 0.0 }
 0xab2   : > { %v6808_v63 = vmax.f32 %v12759_v45, 0.0  ;;  %v6810_v28 = vmax.f32 %v12761_v13, 0.0 }
 0xab3   : > { %v6809_v58 = vmax.f32 %v12767_v53, 0.0  ;;  %v6811_v15 = vmax.f32 %v12769_v35, 0.0  ;;  %v10308_v53 = vld [vmem:[%s13126_s20 + $0x28] sm:$0xff] }
 0xab4   : > { %v12832_v35 = vpack.c.bf16 %v10308_v53, %v10308_v53 }
 0xab5   : > { %v6687_v59 = vpop.f32.mrb[52].mxu1  ;;  %v6740_v60 = vpop.f32.mrb[28].mxu0 }
 0xab6   : > { %v6688_v40 = vadd.f32 %v6687_v59, %v6616_v37  ;;  %v6741_v2 = vadd.f32 %v6740_v60, %v6624_v41  ;;  %v6689_v34 = vpop.f32.mrb[53].mxu1  ;;  %v6742_v25 = vpop.f32.mrb[29].mxu0 }
 0xab7   : > { %v6690_v48 = vadd.f32 %v6689_v34, %v6620_v14  ;;  %v6743_v46 = vadd.f32 %v6742_v25, %v6628_v32  ;;  %v6691_v4 = vpop.f32.mrb[54].mxu1  ;;  %v6744_v6 = vpop.f32.mrb[30].mxu0 }
 0xab8   : > { %v6814_v62 = vmax.f32 %v6688_v40, 0.0  ;;  %v6816_v8 = vmax.f32 %v6741_v2, 0.0  ;;  %v6692_v10 = vadd.f32 %v6691_v4, %v6616_v37  ;;  %v6745_v11 = vadd.f32 %v6744_v6, %v6624_v41  ;;  %v6693_v16 = vpop.f32.mrb[55].mxu1  ;;  %v6746_v61 = vpop.f32.mrb[31].mxu0 }
 0xab9   : > { %v6815_v20 = vmax.f32 %v6690_v48, 0.0  ;;  %v6817_v21 = vmax.f32 %v6743_v46, 0.0  ;;  %v12779_v23 = vadd.f32 %v6693_v16, %v6620_v14  ;;  %v12781_v49 = vadd.f32 %v6746_v61, %v6628_v32  ;;  %v12801_v61 = vpop.permute.xlu1 %6924 }
 0xaba   : > { %v6826_v19 = vadd.f32 %v6814_v62, %v6802_v54  ;;  %v6828_v22 = vadd.f32 %v6816_v8, %v6804_v56  ;;  %v6820_v24 = vmax.f32 %v6692_v10, 0.0  ;;  %v6822_v17 = vmax.f32 %v6745_v11, 0.0 }
 0xabb   : > { %v6827_v43 = vadd.f32 %v6815_v20, %v6803_v44  ;;  %v6829_v26 = vadd.f32 %v6817_v21, %v6805_v57  ;;  %v6821_v29 = vmax.f32 %v12779_v23, 0.0  ;;  %v6823_v31 = vmax.f32 %v12781_v49, 0.0 }
 0xabc   : > { %vm6838_vm4 = vcmp.ge.f32.partialorder %v6826_v19, 0.0  ;;  %v6850_v18 = vmul.f32 0.01, %v6826_v19  ;;  %vm6840_vm5 = vcmp.ge.f32.partialorder %v6828_v22, 0.0  ;;  %v6852_v37 = vmul.f32 0.01, %v6828_v22 }
 0xabd   : > { %vm6839_vm6 = vcmp.ge.f32.partialorder %v6827_v43, 0.0  ;;  %v6851_v41 = vmul.f32 0.01, %v6827_v43  ;;  %vm6841_vm7 = vcmp.ge.f32.partialorder %v6829_v26, 0.0  ;;  %v6853_v42 = vmul.f32 0.01, %v6829_v26 }
 0xabe   : > { %v6862_v9 = vsel %vm6838_vm4, %v6826_v19, %v6850_v18  ;;  %v6864_v14 = vsel %vm6840_vm5, %v6828_v22, %v6852_v37  ;;  %v6832_v32 = vadd.f32 %v6820_v24, %v6808_v63  ;;  %v6834_v7 = vadd.f32 %v6822_v17, %v6810_v28 }
 0xabf   : > { %v6874_v33 = vmul.f32 %v6862_v9, %v6814_v62  ;;  %v6886_v38 = vsub.f32 1.0, %v6862_v9  ;;  %v6876_v5 = vmul.f32 %v6864_v14, %v6816_v8  ;;  %v6888_v1 = vsub.f32 1.0, %v6864_v14 }
 0xac0   : > { %v6863_v12 = vsel %vm6839_vm6, %v6827_v43, %v6851_v41  ;;  %v6865_v52 = vsel %vm6841_vm7, %v6829_v26, %v6853_v42  ;;  %vm6844_vm8 = vcmp.ge.f32.partialorder %v6832_v32, 0.0  ;;  %v6856_v55 = vmul.f32 0.01, %v6832_v32 }
 0xac1   : > { %v6898_v59 = vmul.f32 %v6886_v38, %v6802_v54  ;;  %v6900_v60 = vmul.f32 %v6888_v1, %v6804_v56  ;;  %v6875_v40 = vmul.f32 %v6863_v12, %v6815_v20  ;;  %v6887_v2 = vsub.f32 1.0, %v6863_v12 }
 0xac2   : > { %v6877_v34 = vmul.f32 %v6865_v52, %v6817_v21  ;;  %v6889_v25 = vsub.f32 1.0, %v6865_v52  ;;  %v6868_v48 = vsel %vm6844_vm8, %v6832_v32, %v6856_v55  ;;  %vm6846_vm9 = vcmp.ge.f32.partialorder %v6834_v7, 0.0 }
 0xac3   : > { %v6910_v46 = vadd.f32 %v6898_v59, %v6874_v33  ;;  %v6912_v4 = vadd.f32 %v6900_v60, %v6876_v5  ;;  %v6899_v6 = vmul.f32 %v6887_v2, %v6803_v44  ;;  %v6880_v62 = vmul.f32 %v6868_v48, %v6820_v24  ;;  %v10310_v5 = vld [vmem:[%s13126_s20 + $0x38] sm:$0xff] }
 0xac4   : > { %v6901_v8 = vmul.f32 %v6889_v25, %v6805_v57  ;;  %v6892_v10 = vsub.f32 1.0, %v6868_v48  ;;  %v6858_v11 = vmul.f32 0.01, %v6834_v7  ;;  %v6833_v54 = vadd.f32 %v6821_v29, %v6809_v58 }
 0xac5   : > { %v6911_v56 = vadd.f32 %v6899_v6, %v6875_v40  ;;  %v6835_v16 = vadd.f32 %v6823_v31, %v6811_v15  ;;  %v6932_v47 = vmul.f32 %v12801_v61, %v6910_v46  ;;  %v12844_v1 = vpack.c.bf16 %v10310_v5, %v10310_v5 }
 0xac6   : > { %v6913_v20 = vadd.f32 %v6901_v8, %v6877_v34  ;;  %v6904_v51 = vmul.f32 %v6892_v10, %v6808_v63  ;;  %v6870_v44 = vsel %vm6846_vm9, %v6834_v7, %v6858_v11  ;;  %vm6845_vm10 = vcmp.ge.f32.partialorder %v6833_v54, 0.0 }
 0xac7   : > { %v6882_v57 = vmul.f32 %v6870_v44, %v6822_v17  ;;  %v6894_v21 = vsub.f32 1.0, %v6870_v44  ;;  %v6857_v23 = vmul.f32 0.01, %v6833_v54  ;;  %vm6847_vm11 = vcmp.ge.f32.partialorder %v6835_v16, 0.0  ;;  %v10307_v17 = vld [vmem:[%s13126_s20 + $0x10] sm:$0xff] }
 0xac8   : > { %v12806_v49 = vadd.f32 %v6904_v51, %v6880_v62  ;;  %v6859_v19 = vmul.f32 0.01, %v6835_v16  ;;  %v6933_v22 = vmul.f32 %v12801_v61, %v6911_v56  ;;  %v6935_v45 = vmul.f32 %v12801_v61, %v6913_v20 }
 0xac9   : > { %v6906_v24 = vmul.f32 %v6894_v21, %v6810_v28  ;;  %v6869_v43 = vsel %vm6845_vm10, %v6833_v54, %v6857_v23  ;;  %v12815_v37 = vpack.c.bf16 %v10307_v17, %v10307_v17  ;;  %v6944_v32 = vpack.c.bf16 %v6932_v47, %v6932_v47 }
 0xaca   : > { %v6881_v63 = vmul.f32 %v6869_v43, %v6821_v29  ;;  %v6893_v26 = vsub.f32 1.0, %v6869_v43  ;;  %v6871_v18 = vsel %vm6847_vm11, %v6835_v16, %v6859_v19  ;;  %v6945_v14 = vpack.c.bf16 %v6933_v22, %v6933_v22 }
 0xacb   : > { %v12817_v41 = vadd.f32 %v6906_v24, %v6882_v57  ;;  %v6883_v42 = vmul.f32 %v6871_v18, %v6823_v31  ;;  %v6895_v9 = vsub.f32 1.0, %v6871_v18  ;;  %v6947_v29 = vpack.c.bf16 %v6935_v45, %v6935_v45 }
 0xacc   : > { %v6905_v13 = vmul.f32 %v6893_v26, %v6809_v58  ;;  %6988 = vmatprep.mubr.bf16.mxu0 %v6945_v14  ;;  %v6934_v31 = vmul.f32 %v12801_v61, %v6912_v4  ;;  %v10309_v58 = vld [vmem:[%s13126_s20 + $0x20] sm:$0xff]  ;;  %v6632_v59 = vrot.slane %v12745_v0, %v11370_v50  ;;  %v6636_v40 = vrot.slane %v12745_v0, %v11339_v27 }
 0xacd   : > { %v6907_v28 = vmul.f32 %v6895_v9, %v6811_v15  ;;  %6989 = vmatmul.mubr.bf16.vlgmr.msra.gmra.mrb[40].mxu0 %v6944_v32  ;;  %v12837_v15 = vpack.c.bf16 %v10309_v58, %v10309_v58 }
 0xace   : > { %v12823_v7 = vadd.f32 %v6905_v13, %v6881_v63  ;;  %7028 = vmatprep.mubr.bf16.mxu0 %v6947_v29  ;;  %6997 = vmatpush1.bf16.xpose.msra.mxu0 %v12815_v37  ;;  %v6946_v38 = vpack.c.bf16 %v6934_v31, %v6934_v31 }
 0xacf   : > { %v12825_v33 = vadd.f32 %v6907_v28, %v6883_v42  ;;  %7036 = vmatprep.subr.bf16.mxu0 %v12832_v35  ;;  %v7113_v30 = vsel %vm7099_vm1, %v12837_v15, 0 }
 0xad9   : > { %7029 = vmatmul.mubr.bf16.vlgmr.msra.gmra.mrb[40].mxu0 %v6946_v38 }
 0xada   : > { %7037 = vmatpush1.bf16.xpose.msra.mxu0 %v12837_v15 }
 0xadb   : > { %7253 = vmatprep.subr.bf16.mxu0 %v12844_v1 }
 0xb6d   : > { %v6783_v12 = vpop.f32.mrb[32].mxu0 }
 0xb6e   : > { %v6785_v52 = vpop.f32.mrb[33].mxu0  ;;  %v6784_v2 = vadd.f32 %v6783_v12, %v6632_v59  ;;  %v6930_v12 = vpop.permute.xlu0 %6929 }
 0xb6f   : > { %v6787_v55 = vpop.f32.mrb[34].mxu0  ;;  %v6786_v34 = vadd.f32 %v6785_v52, %v6636_v40 }
 0xb70   : > { %v6789_v60 = vpop.f32.mrb[35].mxu0  ;;  %v6788_v48 = vadd.f32 %v6787_v55, %v6632_v59  ;;  %v6806_v10 = vmax.f32 %v6784_v2, 0.0 }
 0xb71   : > { %v6790_v6 = vadd.f32 %v6789_v60, %v6636_v40  ;;  %v6807_v16 = vmax.f32 %v6786_v34, 0.0 }
 0xb72   : > { %v6812_v51 = vmax.f32 %v6788_v48, 0.0 }
 0xb73   : > { %v6813_v27 = vmax.f32 %v6790_v6, 0.0 }
 0xb75   : > { %v6793_v25 = vpop.f32.mrb[36].mxu0 }
 0xb76   : > { %v6794_v46 = vadd.f32 %v6793_v25, %v6632_v59  ;;  %v6795_v4 = vpop.f32.mrb[37].mxu0  ;;  %v10311_v25 = vld [vmem:[%s13126_s20 + $0x30] sm:$0xff] }
 0xb77   : > { %v6796_v62 = vadd.f32 %v6795_v4, %v6636_v40  ;;  %v6797_v8 = vpop.f32.mrb[38].mxu0  ;;  %v12857_v48 = vpack.c.bf16 %v10311_v25, %v10311_v25  ;;  %v10312_v4 = vld [vmem:[%s13126_s20 + $0x48] sm:$0xff] }
 0xb78   : > { %v6818_v11 = vmax.f32 %v6794_v46, 0.0  ;;  %v6798_v54 = vadd.f32 %v6797_v8, %v6632_v59  ;;  %v6799_v56 = vpop.f32.mrb[39].mxu0  ;;  %v12862_v6 = vpack.c.bf16 %v10312_v4, %v10312_v4  ;;  %v10313_v8 = vld [vmem:[%s13126_s20 + $0x40] sm:$0xff] }
 0xb79   : > { %v6819_v20 = vmax.f32 %v6796_v62, 0.0  ;;  %v6800_v50 = vadd.f32 %v6799_v56, %v6636_v40  ;;  %v6939_v40 = vmul.f32 %v6930_v12, %v12823_v7  ;;  %v6941_v7 = vmul.f32 %v6930_v12, %v12825_v33 }
 0xb7a   : > { %v6830_v44 = vadd.f32 %v6818_v11, %v6806_v10  ;;  %v6824_v47 = vmax.f32 %v6798_v54, 0.0  ;;  %v10314_v54 = vld [vmem:[%s13126_s20 + $0x58] sm:$0xff] }
 0xb7b   : > { %v6831_v0 = vadd.f32 %v6819_v20, %v6807_v16  ;;  %v6825_v57 = vmax.f32 %v6800_v50, 0.0  ;;  %v7242_v62 = vpack.c.bf16 %v6939_v40, %v6939_v40  ;;  %v12876_v56 = vpack.c.bf16 %v10314_v54, %v10314_v54  ;;  %v10240_v54 = vld [vmem:[%s13121_s14 + $0x10] sm:$0xff]  }
 0xb7c   : > { %vm6842_vm12 = vcmp.ge.f32.partialorder %v6830_v44, 0.0  ;;  %v6854_v21 = vmul.f32 0.01, %v6830_v44  ;;  %v6836_v23 = vadd.f32 %v6824_v47, %v6812_v51 }
 0xb7d   : > { %vm6843_vm13 = vcmp.ge.f32.partialorder %v6831_v0, 0.0  ;;  %v6855_v19 = vmul.f32 0.01, %v6831_v0  ;;  %v6837_v22 = vadd.f32 %v6825_v57, %v6813_v27 }
 0xb7e   : > { %v6866_v24 = vsel %vm6842_vm12, %v6830_v44, %v6854_v21  ;;  %vm6848_vm14 = vcmp.ge.f32.partialorder %v6836_v23, 0.0  ;;  %v6860_v43 = vmul.f32 0.01, %v6836_v23 }
 0xb7f   : > { %v6878_v45 = vmul.f32 %v6866_v24, %v6818_v11  ;;  %v6890_v63 = vsub.f32 1.0, %v6866_v24  ;;  %v6867_v26 = vsel %vm6843_vm13, %v6831_v0, %v6855_v19  ;;  %vm6849_vm15 = vcmp.ge.f32.partialorder %v6837_v22, 0.0 }
 0xb80   : > { %v6879_v18 = vmul.f32 %v6867_v26, %v6819_v20  ;;  %v6891_v17 = vsub.f32 1.0, %v6867_v26  ;;  %v6872_v42 = vsel %vm6848_vm14, %v6836_v23, %v6860_v43  ;;  %v6861_v9 = vmul.f32 0.01, %v6837_v22  ;;  %v10315_v20 = vld [vmem:[%s13126_s20 + $0x50] sm:$0xff] }
 0xb81   : > { %v6902_v14 = vmul.f32 %v6890_v63, %v6806_v10  ;;  %v6884_v32 = vmul.f32 %v6872_v42, %v6824_v47  ;;  %v6896_v13 = vsub.f32 1.0, %v6872_v42  ;;  %v12871_v10 = vpack.c.bf16 %v10313_v8, %v10313_v8 }
 0xb82   : > { %v6903_v28 = vmul.f32 %v6891_v17, %v6807_v16  ;;  %v6873_v29 = vsel %vm6849_vm15, %v6837_v22, %v6861_v9  ;;  %v7244_v16 = vpack.c.bf16 %v6941_v7, %v6941_v7  ;;  %v12884_v50 = vpack.c.bf16 %v10315_v20, %v10315_v20  ;;  %v10245_v20 = vld [vmem:[%s13121_s14 + $0xc8] sm:$0xff]  }
 0xb83   : > { %v6914_v31 = vadd.f32 %v6902_v14, %v6878_v45  ;;  %v6908_v38 = vmul.f32 %v6896_v13, %v6812_v51  ;;  %v6885_v53 = vmul.f32 %v6873_v29, %v6825_v57  ;;  %v6897_v58 = vsub.f32 1.0, %v6873_v29 }
 0xb84   : > { %v6915_v5 = vadd.f32 %v6903_v28, %v6879_v18  ;;  %v7107_v7 = vsel %vm7099_vm1, %v12815_v37, 0  ;;  %v7402_v8 = vsel %vm7099_vm1, %v12871_v10, 0 }
 0xb85   : > { %v6936_v52 = vmul.f32 %v12801_v61, %v6914_v31  ;;  %v6920_v55 = vadd.f32 %v6908_v38, %v6884_v32  ;;  %v6909_v59 = vmul.f32 %v6897_v58, %v6813_v27 }
 0xb86   : > { %v6937_v60 = vmul.f32 %v12801_v61, %v6915_v5  ;;  %v6938_v61 = vmul.f32 %v6930_v12, %v12806_v49  ;;  %v6940_v49 = vmul.f32 %v6930_v12, %v12817_v41 }
 0xb87   : > { %v6921_v2 = vadd.f32 %v6909_v59, %v6885_v53  ;;  %v6948_v46 = vpack.c.bf16 %v6936_v52, %v6936_v52  ;;  %v6942_v47 = vmul.f32 %v6930_v12, %v6920_v55 }
 0xb88   : > { %v6949_v34 = vpack.c.bf16 %v6937_v60, %v6937_v60  ;;  %v7241_v11 = vpack.c.bf16 %v6938_v61, %v6938_v61  ;;  %v7243_v51 = vpack.c.bf16 %v6940_v49, %v6940_v49  ;;  %v10243_v49 = vld [vmem:[%s13121_s14 + $0x58] sm:$0xff]  }
 0xb89   : > { %v6943_v33 = vmul.f32 %v6930_v12, %v6921_v2  ;;  %v7245_v27 = vpack.c.bf16 %v6942_v47, %v6942_v47  ;;  %v7101_v2 = vsel %vm7099_vm1, %v12731_v3, 0  ;;  %v7396_v3 = vsel %vm7099_vm1, %v12857_v48, 0  ;;  %v10248_v47 = vld [vmem:[%s13121_s14 + $0x20] sm:$0xff]  }
 0xb8a   : > { %7068 = vmatprep.mubr.bf16.mxu0 %v6949_v34  ;;  %7119 = vmatpush1.bf16.msra.mxu1 %v7101_v2 }
 0xb8b   : > { %7069 = vmatmul.mubr.bf16.vlgmr.msra.gmra.mrb[40].mxu0 %v6948_v46  ;;  %v7246_v44 = vpack.c.bf16 %v6943_v33, %v6943_v33  ;;  %8880 = vmatprep.subr.msk.bf16.mxu1 %vm7099_vm1, %v12736_v36  ;;  %v10244_v33 = vld [vmem:[%s13121_s14 + $0x18] sm:$0xff]  }
 0xb8c   : > { %7254 = vmatpush1.bf16.xpose.msra.mxu0 %v12857_v48  ;;  %7285 = vmatprep.mubr.bf16.mxu0 %v7242_v62  ;;  %v10235_v48 = vld [vmem:[%s13121_s14 + $0x40] sm:$0xff]  }
 0xb8d   : > { %7293 = vmatprep.subr.bf16.mxu0 %v12862_v6 }
 0xb93   : > { %7286 = vmatmul.mubr.bf16.vlgmr.msra.gmra.mrb[44].mxu0 %v7241_v11  ;;  %v10239_v11 = vld [vmem:[%s13121_s14 + $0x50] sm:$0xff]  }
 0xb94   : > { %7325 = vmatprep.mubr.bf16.mxu0 %v7244_v16  ;;  %7294 = vmatpush1.bf16.xpose.msra.mxu0 %v12871_v10  ;;  %v10237_v10 = vld [vmem:[%s13121_s14 + $0x48] sm:$0xff]   ;;  %v10242_v16 = vld [vmem:[%s13121_s14 + $0x80] sm:$0xff]  }
 0xb95   : > { %7333 = vmatprep.subr.bf16.mxu0 %v12876_v56 }
 0xb9f   : > { %7326 = vmatmul.mubr.bf16.vlgmr.msra.gmra.mrb[44].mxu0 %v7243_v51  ;;  %v10247_v51 = vld [vmem:[%s13121_s14 + $0x60] sm:$0xff]  }
 0xba0   : > { %7365 = vmatprep.mubr.bf16.mxu0 %v7246_v44  ;;  %7334 = vmatpush1.bf16.xpose.msra.mxu0 %v12884_v50  ;;  %v10249_v44 = vld [vmem:[%s13121_s14 + $0xd0] sm:$0xff]  }
 0xba1   : > { %8947 = vmatprep.subr.bf16.mxu0 %v10235_v48 }
 0xbab   : > { %7366 = vmatmul.mubr.bf16.vlgmr.msra.gmra.mrb[44].mxu0 %v7245_v27  ;;  %v10250_v27 = vld [vmem:[%s13121_s14 + $0x90] sm:$0xff]  }
 0xc5e   : > { %v7070_v0 = vpop.f32.mrb[40].mxu0 }
 0xc5f   : > { %v7077_v41 = vsel %vm7076_vm0, %v7070_v0, 0.0  ;;  %v7072_v57 = vpop.f32.mrb[41].mxu0  ;;  %v10251_v0 = vld [vmem:[%s13121_s14 + $0x68] sm:$0xff]  }
 0xc60   : > { %v7078_v21 = vrot.slane %v7077_v41, 4  ;;  %v7073_v23 = vpop.f32.mrb[42].mxu0  ;;  %v10252_v57 = vld [vmem:[%s13121_s14 + $0x28] sm:$0xff]  }
 0xc61   : > { %v7074_v19 = vpop.f32.mrb[43].mxu0  ;;  %v10255_v23 = vld [vmem:[%s13121_s14 + $0x70] sm:$0xff]  }
 0xc62   : > { %v7079_v22 = vadd.f32 %v7078_v21, %v7077_v41  ;;  %v10253_v41 = vld [vmem:[%s13121_s14 + $0xd8] sm:$0xff]   ;;  %v10256_v19 = vld [vmem:[%s13121_s14 + $0x30] sm:$0xff]  }
 0xc63   : > { %v10254_v21 = vld [vmem:[%s13121_s14 + $0x98] sm:$0xff]  }
 0xc64   : > { %v7080_v24 = vrot.slane %v7079_v22, 2 }
 0xc66   : > { %v7081_v43 = vadd.f32 %v7080_v24, %v7079_v22  ;;  %v10257_v22 = vld [vmem:[%s13121_s14 + $0xe0] sm:$0xff]  }
 0xc67   : > { %v10258_v24 = vld [vmem:[%s13121_s14 + $0xa0] sm:$0xff]  }
 0xc68   : > { %v7082_v45 = vrot.slane %v7081_v43, 1 }
 0xc6a   : > { %v7083_v63 = vadd.f32 %v7082_v45, %v7081_v43  ;;  %v10259_v43 = vld [vmem:[%s13121_s14 + $0x78] sm:$0xff]   ;;  %v10261_v45 = vld [vmem:[%s13121_s14 + $0xe8] sm:$0xff]  }
 0xc6c   : > { %v7084_v26 = vsel %vm7076_vm0, %v7083_v63, -inf }
 0xc6d   : > { %7085 = vmax.xlane.f32.xlu1 %v7084_v26  ;;  %v10262_v26 = vld [vmem:[%s13121_s14 + $0xa8] sm:$0xff]  }
 0xc7e   : > { %v7367_v18 = vpop.f32.mrb[44].mxu0 }
 0xc7f   : > { %v7373_v17 = vsel %vm7076_vm0, %v7367_v18, 0.0  ;;  %v7369_v42 = vpop.f32.mrb[45].mxu0  ;;  %v10263_v18 = vld [vmem:[%s13121_s14 + $0x140] sm:$0xff]  }
 0xc80   : > { %v7374_v9 = vrot.slane %v7373_v17, 4  ;;  %v7370_v14 = vpop.f32.mrb[46].mxu0  ;;  %v10266_v42 = vld [vmem:[%s13121_s14 + $0xb0] sm:$0xff]  }
 0xc81   : > { %v7371_v32 = vpop.f32.mrb[47].mxu0  ;;  %v10270_v14 = vld [vmem:[%s13121_s14 + $0xb8] sm:$0xff]  }
 0xc82   : > { %v7375_v13 = vadd.f32 %v7374_v9, %v7373_v17  ;;  %v10264_v17 = vld [vmem:[%s13121_s14 + $0xf0] sm:$0xff]   ;;  %v10268_v9 = vld [vmem:[%s13121_s14 + $0xf8] sm:$0xff]  }
 0xc84   : > { %v7376_v28 = vrot.slane %v7375_v13, 2 }
 0xc86   : > { %v7377_v29 = vadd.f32 %v7376_v28, %v7375_v13 }
 0xc88   : > { %v7378_v31 = vrot.slane %v7377_v29, 1 }
 0xc8a   : > { %v7379_v38 = vadd.f32 %v7378_v31, %v7377_v29 }
 0xc8c   : > { %v7380_v53 = vsel %vm7076_vm0, %v7379_v38, -inf }
 0xc8d   : > { %7381 = vmax.xlane.f32.xlu0 %v7380_v53 }
 0xcfa   : > { %v7086_v58 = vpop.xlane.xlu1 %7085 }
 0xcfb   : > { %v7087_v5 = vsub.f32 %v7083_v63, %v7086_v58  ;;  %v10260_v63 = vld [vmem:[%s13121_s14 + $0x38] sm:$0xff]  }
 0xcfd   : > { %v7088_v12 = vmul.f32 1.442695, %v7087_v5 }
 0xcff   : > { %10291 = vpow2.f32 %v7088_v12 }
 0xd09   : > { %v10292_v52 = vpop.eup %10291 }
 0xd0a   : > { %v7090_v55 = vsel %vm7076_vm0, %v10292_v52, 0.0 }
 0xd0b   : > { %7091 = vadd.xlane.f32.xlu1 %v7090_v55 }
 0xd1a   : > { %v7382_v59 = vpop.xlane.xlu0 %7381 }
 0xd1b   : > { %v7383_v60 = vsub.f32 %v7379_v38, %v7382_v59 }
 0xd1d   : > { %v7384_v40 = vmul.f32 1.442695, %v7383_v60 }
 0xd1f   : > { %10293 = vpow2.f32 %v7384_v40 }
 0xd29   : > { %v10294_v34 = vpop.eup %10293 }
 0xd2a   : > { %v7386_v25 = vsel %vm7076_vm0, %v10294_v34, 0.0 }
 0xd2b   : > { %7387 = vadd.xlane.f32.xlu0 %v7386_v25 }
 0xd98   : > { %v7092_v46 = vpop.xlane.xlu1 %7091 }
 0xd99   : > { %10295 = vrcp.f32 %v7092_v46 }
 0xda3   : > { %v10296_v4 = vpop.eup %10295 }
 0xda4   : > { %v7094_v62 = vmul.f32 %v10296_v4, %v10292_v52 }
 0xda6   : > { %v7095_v61 = vpack.c.bf16 %v7094_v62, %v7094_v62 }
 0xda8   : > { %8879 = vmatmul.mubr.msk.bf16.vlgmr.msra.gmra.mrb[56].mxu1 %vm7076_vm0, %v7095_v61 }
 0xda9   : > { %7160 = vmatpush1.bf16.msra.mxu1 %v7107_v7  ;;  %7191 = vmatprep.mubr.bf16.mxu1 %v10359_v39 }
 0xdaa   : > { %8882 = vmatprep.subr.msk.bf16.mxu1 %vm7099_vm1, %v12832_v35 }
 0xdb0   : > { %8881 = vmatmul.mubr.msk.bf16.vlgmr.msra.gmra.mrb[60].mxu1 %vm7076_vm0, %v7095_v61 }
 0xdb1   : > { %7201 = vmatpush1.bf16.msra.mxu1 %v7113_v30  ;;  %7232 = vmatprep.mubr.bf16.mxu1 %v10359_v39  ;;  %v10267_v30 = vld [vmem:[%s13121_s14 + $0x148] sm:$0xff]  }
 0xdb2   : > { %8884 = vmatprep.subr.msk.bf16.mxu1 %vm7099_vm1, %v12844_v1  ;;  %v7408_v1 = vsel %vm7099_vm1, %v12884_v50, 0  ;;  %v10246_v50 = vld [vmem:[%s13121_s14 + $0x88] sm:$0xff]  }
 0xdb8   : > { %8883 = vmatmul.mubr.msk.bf16.vlgmr.msra.gmra.mrb[64].mxu1 %vm7076_vm0, %v7095_v61  ;;  %v7388_v36 = vpop.xlane.xlu0 %7387  ;;  %v10265_v61 = vld [vmem:[%s13121_s14 + $0x100] sm:$0xff]  }
 0xdb9   : > { %10297 = vrcp.f32 %v7388_v36  ;;  %7414 = vmatpush1.bf16.msra.mxu1 %v7396_v3  ;;  %7445 = vmatprep.mubr.bf16.mxu1 %v10359_v39 }
 0xdba   : > { %8886 = vmatprep.subr.msk.bf16.mxu1 %vm7099_vm1, %v12862_v6  ;;  %v10236_v6 = vld [vmem:[%s13121_s14] sm:$0xff]  }
 0xdbb   : > { %8948 = vmatpush3.bf16.msra.mxu0 %v10236_v6 }
 0xdbc   : > { %8949 = vmatprep.subr.bf16.mxu0 %v10237_v10 }
 0xdc3   : > { %v10298_v37 = vpop.eup %10297 }
 0xdc4   : > { %v7390_v35 = vmul.f32 %v10298_v37, %v10294_v34 }
 0xdc6   : > { %v7391_v15 = vpack.c.bf16 %v7390_v35, %v7390_v35  ;;  %v10269_v35 = vld [vmem:[%s13121_s14 + $0x108] sm:$0xff]  }
 0xdc8   : > { %8885 = vmatmul.mubr.msk.bf16.vlgmr.msra.gmra.mrb[68].mxu1 %vm7076_vm0, %v7391_v15 }
 0xdc9   : > { %7455 = vmatpush1.bf16.msra.mxu1 %v7402_v8  ;;  %7486 = vmatprep.mubr.bf16.mxu1 %v10359_v39 }
 0xdca   : > { %8888 = vmatprep.subr.msk.bf16.mxu1 %vm7099_vm1, %v12876_v56  ;;  %v10241_v56 = vld [vmem:[%s13121_s14 + $0xc0] sm:$0xff]  }
 0xdd0   : > { %8887 = vmatmul.mubr.msk.bf16.vlgmr.msra.gmra.mrb[72].mxu1 %vm7076_vm0, %v7391_v15 }
 0xdd1   : > { %7496 = vmatpush1.bf16.msra.mxu1 %v7408_v1  ;;  %7527 = vmatprep.mubr.bf16.mxu1 %v10359_v39  ;;  %v10238_v39 = vld [vmem:[%s13121_s14 + $0x8] sm:$0xff]   ;;  %v10271_v1 = vld [vmem:[%s13121_s14 + $0x150] sm:$0xff]  }
 0xdd2   : > { %8950 = vmatpush3.bf16.msra.mxu0 %v10238_v39  ;;  %8969 = vmatprep.subr.bf16.mxu1 %v10241_v56  ;;  %v10273_v56 = vld [vmem:[%s13121_s14 + $0x158] sm:$0xff]  }
 0xdd3   : > { %8951 = vmatprep.subr.bf16.mxu0 %v10239_v11  ;;  %v10272_v11 = vld [vmem:[%s13121_s14 + $0x110] sm:$0xff]  }
 0xdd6   : > { %8952 = vmatpush3.bf16.msra.mxu0 %v10240_v54 }
 0xdd7   : > { %8953 = vmatprep.subr.bf16.mxu0 %v10243_v49 }
 0xdd8   : > { %8889 = vmatmul.mubr.msk.bf16.vlgmr.msra.gmra.mrb[76].mxu1 %vm7076_vm0, %v7391_v15 }
 0xdd9   : > { %8970 = vmatpush3.bf16.msra.mxu1 %v10242_v16 }
 0xdda   : > { %8971 = vmatprep.subr.bf16.mxu1 %v10245_v20  ;;  %8954 = vmatpush3.bf16.msra.mxu0 %v10244_v33  ;;  %v10274_v20 = vld [vmem:[%s13121_s14 + $0x118] sm:$0xff]  }
 0xddb   : > { %8955 = vmatprep.subr.bf16.mxu0 %v10247_v51 }
 0xddd   : > { %8972 = vmatpush3.bf16.msra.mxu1 %v10246_v50 }
 0xdde   : > { %8973 = vmatprep.subr.bf16.mxu1 %v10249_v44  ;;  %8956 = vmatpush3.bf16.msra.mxu0 %v10248_v47  ;;  %v10275_v44 = vld [vmem:[%s13121_s14 + $0x160] sm:$0xff]  }
 0xddf   : > { %8957 = vmatprep.subr.bf16.mxu0 %v10251_v0 }
 0xde1   : > { %8974 = vmatpush3.bf16.msra.mxu1 %v10250_v27 }
 0xde2   : > { %8975 = vmatprep.subr.bf16.mxu1 %v10253_v41  ;;  %8958 = vmatpush3.bf16.msra.mxu0 %v10252_v57  ;;  %v10276_v57 = vld [vmem:[%s13121_s14 + $0x120] sm:$0xff]  }
 0xde3   : > { %8959 = vmatprep.subr.bf16.mxu0 %v10255_v23  ;;  %v10278_v23 = vld [vmem:[%s13121_s14 + $0x128] sm:$0xff]  }
 0xde5   : > { %8976 = vmatpush3.bf16.msra.mxu1 %v10254_v21  ;;  %v10277_v21 = vld [vmem:[%s13121_s14 + $0x168] sm:$0xff]  }
 0xde6   : > { %8960 = vmatpush3.bf16.msra.mxu0 %v10256_v19  ;;  %8977 = vmatprep.subr.bf16.mxu1 %v10257_v22  ;;  %v10279_v19 = vld [vmem:[%s13121_s14 + $0x170] sm:$0xff]  }
 0xde7   : > { %8961 = vmatprep.subr.bf16.mxu0 %v10259_v43  ;;  %v10280_v22 = vld [vmem:[%s13121_s14 + $0x130] sm:$0xff]   ;;  %v10282_v43 = vld [vmem:[%s13121_s14 + $0x138] sm:$0xff]  }
 0xde9   : > { %8978 = vmatpush3.bf16.msra.mxu1 %v10258_v24  ;;  %v10281_v24 = vld [vmem:[%s13121_s14 + $0x178] sm:$0xff]  }
 0xdea   : > { %8979 = vmatprep.subr.bf16.mxu1 %v10261_v45  ;;  %8962 = vmatpush3.bf16.msra.mxu0 %v10260_v63 }
 0xdeb   : > { %8991 = vmatprep.subr.bf16.mxu0 %v10263_v18 }
 0xded   : > { %8980 = vmatpush3.bf16.msra.mxu1 %v10262_v26 }
 0xdee   : > { %8981 = vmatprep.subr.bf16.mxu1 %v10264_v17 }
 0xdf1   : > { %8982 = vmatpush3.bf16.msra.mxu1 %v10266_v42 }
 0xdf2   : > { %8983 = vmatprep.subr.bf16.mxu1 %v10268_v9  ;;  %v8890_v9 = vld [vmem:[%s13122_s15] ss:$0 sm:$0xff] }
 0xdf5   : > { %8984 = vmatpush3.bf16.msra.mxu1 %v10270_v14 }
 0xe7b   : > { %v7152_v32 = vpop.f32.mrb[56].mxu1 }
 0xe7c   : > { %v7154_v13 = vpop.f32.mrb[57].mxu1 }
 0xe7d   : > { %v7156_v28 = vpop.f32.mrb[58].mxu1 }
 0xe7e   : > { %v7157_v29 = vpop.f32.mrb[59].mxu1 }
 0xe83   : > { %v7193_v31 = vpop.f32.mrb[60].mxu1 }
 0xe84   : > { %v7195_v38 = vpop.f32.mrb[61].mxu1 }
 0xe85   : > { %v7197_v53 = vpop.f32.mrb[62].mxu1 }
 0xe86   : > { %v7198_v58 = vpop.f32.mrb[63].mxu1 }
 0xe8b   : > { %v7234_v5 = vpop.f32.mrb[64].mxu1 }
 0xe8c   : > { %v7236_v12 = vpop.f32.mrb[65].mxu1 }
 0xe8d   : > { %v7238_v52 = vpop.f32.mrb[66].mxu1 }
 0xe8e   : > { %v7239_v55 = vpop.f32.mrb[67].mxu1 }
 0xe9b   : > { %v7447_v59 = vpop.f32.mrb[68].mxu1 }
 0xe9c   : > { %v7542_v60 = vrot.slane %v7447_v59, 7  ;;  %v7449_v40 = vpop.f32.mrb[69].mxu1 }
 0xe9d   : > { %v7543_v2 = vrot.slane %v7449_v40, 7  ;;  %v7451_v34 = vpop.f32.mrb[70].mxu1 }
 0xe9e   : > { %v7555_v25 = vsel %vm7554_vm2, %v7152_v32, %v7542_v60  ;;  %v7452_v46 = vpop.f32.mrb[71].mxu1 }
 0xe9f   : > { %v7556_v4 = vsel %vm7554_vm2, %v7154_v13, %v7543_v2  ;;  %v7561_v7 = vpack.c.bf16 %v7555_v25, %v7555_v25 }
 0xea0   : > { %v7562_v62 = vpack.c.bf16 %v7556_v4, %v7556_v4 }
 0xea2   : > { %7990 = vmatprep.mubr.bf16.mxu0 %v7562_v62 }
 0xea3   : > { %v7488_v3 = vpop.f32.mrb[72].mxu1  ;;  %7991 = vmatmul.mubr.bf16.vlgmr.msra.gmra.mrb[48].mxu0 %v7561_v7 }
 0xea4   : > { %v7544_v36 = vrot.slane %v7488_v3, 7  ;;  %8992 = vmatpush3.bf16.msra.mxu0 %v10265_v61  ;;  %v7490_v37 = vpop.f32.mrb[73].mxu1 }
 0xea5   : > { %v7545_v15 = vrot.slane %v7490_v37, 7  ;;  %v7492_v8 = vpop.f32.mrb[74].mxu1  ;;  %8993 = vmatprep.subr.bf16.mxu0 %v10267_v30 }
 0xea6   : > { %v7557_v48 = vsel %vm7554_vm2, %v7193_v31, %v7544_v36  ;;  %v7493_v6 = vpop.f32.mrb[75].mxu1 }
 0xea7   : > { %v7558_v10 = vsel %vm7554_vm2, %v7195_v38, %v7545_v15  ;;  %v7563_v54 = vpack.c.bf16 %v7557_v48, %v7557_v48 }
 0xea8   : > { %8994 = vmatpush3.bf16.msra.mxu0 %v10269_v35  ;;  %v7564_v39 = vpack.c.bf16 %v7558_v10, %v7558_v10 }
 0xea9   : > { %8995 = vmatprep.subr.bf16.mxu0 %v10271_v1 }
 0xeaa   : > { %8030 = vmatprep.mubr.bf16.mxu1 %v7564_v39 }
 0xeab   : > { %v7529_v16 = vpop.f32.mrb[76].mxu1  ;;  %8031 = vmatmul.mubr.bf16.vlgmr.msra.gmra.mrb[80].mxu1 %v7563_v54 }
 0xeac   : > { %v7546_v49 = vrot.slane %v7529_v16, 7  ;;  %8996 = vmatpush3.bf16.msra.mxu0 %v10272_v11  ;;  %v7531_v33 = vpop.f32.mrb[77].mxu1 }
 0xead   : > { %v7547_v50 = vrot.slane %v7531_v33, 7  ;;  %v7533_v51 = vpop.f32.mrb[78].mxu1  ;;  %8997 = vmatprep.subr.bf16.mxu0 %v10273_v56 }
 0xeae   : > { %v7559_v47 = vsel %vm7554_vm2, %v7234_v5, %v7546_v49  ;;  %v7534_v27 = vpop.f32.mrb[79].mxu1 }
 0xeaf   : > { %v7560_v0 = vsel %vm7554_vm2, %v7236_v12, %v7547_v50  ;;  %v7565_v45 = vpack.c.bf16 %v7559_v47, %v7559_v47 }
 0xeb0   : > { %8998 = vmatpush3.bf16.msra.mxu0 %v10274_v20  ;;  %v7566_v41 = vpack.c.bf16 %v7560_v0, %v7560_v0 }
 0xeb1   : > { %8999 = vmatprep.subr.bf16.mxu0 %v10275_v44 }
 0xeb2   : > { %8070 = vmatprep.mubr.bf16.mxu0 %v7566_v41 }
 0xeb4   : > { %9000 = vmatpush3.bf16.msra.mxu0 %v10276_v57 }
 0xeb5   : > { %9001 = vmatprep.subr.bf16.mxu0 %v10277_v21 }
 0xeb8   : > { %9002 = vmatpush3.bf16.msra.mxu0 %v10278_v23 }
 0xeb9   : > { %9003 = vmatprep.subr.bf16.mxu0 %v10279_v19 }
 0xebc   : > { %9004 = vmatpush3.bf16.msra.mxu0 %v10280_v22 }
 0xebd   : > { %9005 = vmatprep.subr.bf16.mxu0 %v10281_v24 }
 0xec0   : > { %9006 = vmatpush3.bf16.msra.mxu0 %v10282_v43 }
 0xec3   : > { %8071 = vmatmul.mubr.bf16.vlgmr.msra.gmra.mrb[52].mxu0 %v7565_v45 }
 0xf76   : > { %v8963_v63 = vpop.f32.mrb[48].mxu0 }
 0xf77   : > { %v8964_v26 = vpop.f32.mrb[49].mxu0 }
 0xf78   : > { %v8965_v18 = vadd.f32 %v8964_v26, %v8963_v63  ;;  %v8966_v17 = vpop.f32.mrb[50].mxu0 }
 0xf79   : > { %v8967_v42 = vpop.f32.mrb[51].mxu0 }
 0xf7a   : > { %v7993_v13 = vadd.f32 %v8965_v18, %v8890_v9 }
 0xf7e   : > { %v8985_v14 = vpop.f32.mrb[80].mxu1 }
 0xf7f   : > { %v8986_v32 = vpop.f32.mrb[81].mxu1 }
 0xf80   : > { %v8987_v28 = vadd.f32 %v8986_v32, %v8985_v14  ;;  %v8988_v29 = vpop.f32.mrb[82].mxu1 }
 0xf81   : > { %v8989_v31 = vpop.f32.mrb[83].mxu1 }
 0xf82   : > { %v8033_v38 = vadd.f32 %v8987_v28, %v7993_v13 }
 0xf96   : > { %v9007_v53 = vpop.f32.mrb[52].mxu0 }
 0xf97   : > { %v9008_v58 = vpop.f32.mrb[53].mxu0 }
 0xf98   : > { %v9009_v5 = vadd.f32 %v9008_v58, %v9007_v53  ;;  %v9010_v12 = vpop.f32.mrb[54].mxu0 }
 0xf99   : > { %v9011_v52 = vpop.f32.mrb[55].mxu0 }
 0xf9a   : > { %v8073_v55 = vadd.f32 %v9009_v5, %v8033_v38 }
 0xf9c   : > { %8079 = vst.msk [vmem:[#allocation3] sm:$0x3] %vm8078_vm3, %v8073_v55 }
 0xf9d PF: > { %p9155_p6 = scmp.eq.s32.totalorder %s10452_s22, 11  ;;  %s10360_s0 = smov [#allocation3]  }
 0xf9e   : > { %s8087_s18 = sshll.u32 %s10360_s0, 4  ;;  %s8088_s18 = int_to_ptr.vmem [resolvable:$true] %s8087_s18 }
 0xf9f   : > { %s10316_s19 = scalar_lea.vmem %s8088_s18, 32  ;;  %p10323_p10 = scmp.lt.s32.totalorder %s8088_s18, %s8088_s18 }
 0xfa0   : > { %p10317_p7 = scmp.ne.s32.totalorder %s8088_s18, %s10316_s19  ;;  %p10324_p11 = scmp.lt.s32.totalorder %s10316_s19, %s10316_s19 }
 0xfa2   : > { %p10318_p8 = pnand %p10317_p7, %p9155_p6  ;;  %p10325_p12 = por %p10324_p11, %p10323_p10 }
 0xfa4   : > { %p10319_p9 = pneg %p10318_p8 }
 0xfa6   : > { %p10326_p13 = pnand %p10325_p12, %p10319_p9 }
 0xfa8   : > { %10329 = shalt.err (!%p10326_p13)
}
 0xfa9   : > { %s10330_s28 = scalar_lea.hbm %s13123_s16, 32 }
 0xfaa   : > { %p10331_p0 = scmp.ne.s32.totalorder %s13123_s16, %s10330_s28  ;;  %p10336_p3 = scmp.lt.u32.totalorder %s10330_s28, %s13123_s16 }
 0xfac   : > { %p10332_p1 = pnand %p10331_p0, %p9155_p6 }
 0xfae   : > { %p10333_p2 = pneg %p10332_p1 }
 0xfb0   : > { %p10338_p4 = pnand %p10336_p3, %p10333_p2 }
 0xfb2   : > { %10341 = shalt.err (!%p10338_p4)
}
 0xfb3   : > { %9152 = dma.vmem_to_hbm [thread:$0]  (%p9155_p6), %s8088_s18, 32, %s13123_s16, [#allocation4]  }
 0xfb4   : > { %10347 = dma.done.wait (%p9155_p6), [#allocation4], 32  }
 0xfb5   : > { %10349 = vsyncadd (%p9155_p6), [#allocation4], 4294967264 }
 0xfb6 PF: > { %s27_s21 = sadd.s32 1, %s10352_s21  }
 0xfb7   : > { %p24_p5 = scmp.ge.s32.totalorder %s27_s21, 14  }
 0xfb9   :  { %26 = sbr.rel (!%p24_p5) target bundleno = 3 (0x3), region = 125 }
 0xfc0   :  { %8100 = vsyncpa [#allocation4], 1 }
 0xfc1   :  { %8102 = vsyncpa [#allocation4 + $0x1], 1 }

</bundles_post_ra>
